<compile_context>
chip_gen: v7x
topology: tpu7x:2x2x1
jax: 0.10.0
libtpu: 0.0.40
codegen_flags: <defaults>
</compile_context>

<pallas_src>
import math
import functools

import jax
import jax.numpy as jnp
from jax.experimental import pallas as pl
from jax.experimental.pallas import tpu as pltpu

EPS = 1e-5          # PyTorch nn.LayerNorm default
NEG_INF = -1e9
_ROW_CAP = 256      # rows per tile (multiple of 8); keeps FF/vocab tiles well under v7x 64 MiB VMEM

# Set to jnp.bfloat16 on v6e/v7x for ~2x MXU throughput (accumulation stays f32).
MATMUL_DTYPE = jnp.float32


def _mm(a, b):
    return jnp.dot(a.astype(MATMUL_DTYPE), b.astype(MATMUL_DTYPE),
                   preferred_element_type=jnp.float32)


def _mm_nt(a, b):
    # a @ b.T without an explicit transpose op.
    return jax.lax.dot_general(
        a.astype(MATMUL_DTYPE), b.astype(MATMUL_DTYPE),
        (((1,), (1,)), ((), ())), preferred_element_type=jnp.float32)


def _ln_rows(x, g, b):
    xf = x.astype(jnp.float32)
    mu = jnp.mean(xf, axis=-1, keepdims=True)
    var = jnp.mean(jnp.square(xf - mu), axis=-1, keepdims=True)
    return (xf - mu) * jax.lax.rsqrt(var + EPS) * g + b


# ----------------------------------------------------------------------------
# Row-tiled fused kernels (kernel signature: row-tiled refs, full refs, outputs)
# ----------------------------------------------------------------------------
def _linear_kernel(x_ref, w_ref, b_ref, o_ref):
    o_ref[...] = (_mm(x_ref[...], w_ref[...]) + b_ref[...]).astype(o_ref.dtype)


def _ln_linear_kernel(x_ref, g_ref, b_ref, w_ref, bias_ref, o_ref):
    y = _ln_rows(x_ref[...], g_ref[...], b_ref[...])
    o_ref[...] = (_mm(y, w_ref[...]) + bias_ref[...]).astype(o_ref.dtype)


def _linear_residual_kernel(x_ref, res_ref, w_ref, bias_ref, o_ref):
    out = res_ref[...].astype(jnp.float32) + _mm(x_ref[...], w_ref[...]) + bias_ref[...]
    o_ref[...] = out.astype(o_ref.dtype)


def _ln_ffn_residual_kernel(x_ref, g_ref, b_ref, w1_ref, b1_ref, w2_ref, b2_ref, o_ref):
    x = x_ref[...]
    y = _ln_rows(x, g_ref[...], b_ref[...])
    h = jnp.maximum(_mm(y, w1_ref[...]) + b1_ref[...], 0.0)
    out = x.astype(jnp.float32) + _mm(h, w2_ref[...]) + b2_ref[...]
    o_ref[...] = out.astype(o_ref.dtype)


def _layernorm_kernel(x_ref, g_ref, b_ref, o_ref):
    o_ref[...] = _ln_rows(x_ref[...], g_ref[...], b_ref[...]).astype(o_ref.dtype)


def _ln_linear_softmax_kernel(x_ref, g_ref, b_ref, w_ref, bias_ref,
                              logit_ref, prob_ref):
    y = _ln_rows(x_ref[...], g_ref[...], b_ref[...])
    logits = _mm(y, w_ref[...]) + bias_ref[...]
    logit_ref[...] = logits.astype(logit_ref.dtype)
    z = logits - jnp.max(logits, axis=-1, keepdims=True)
    e = jnp.exp(z)
    # exact division for the module's returned probabilities
    prob_ref[...] = (e / jnp.sum(e, axis=-1, keepdims=True)).astype(prob_ref.dtype)


# ----------------------------------------------------------------------------
# Attention kernels: grid over batch; all heads handled in-kernel on the fused
# QKV tile.  Causal mask generated in-kernel (no HBM mask traffic).
# ----------------------------------------------------------------------------
def _attn_body(q, k, v, o_ref, heads, scale, causal):
    sq, d = q.shape
    sk = k.shape[0]
    dk = d // heads
    bias = None
    if causal:
        row = jax.lax.broadcasted_iota(jnp.int32, (sq, sk), 0)
        col = jax.lax.broadcasted_iota(jnp.int32, (sq, sk), 1)
        bias = jnp.where(col <= row, 0.0, NEG_INF).astype(jnp.float32)
    for h in range(heads):
        lo, hi = h * dk, (h + 1) * dk
        s = _mm_nt(q[:, lo:hi], k[:, lo:hi]) * scale
        if bias is not None:
            s = s + bias
        s = s - jnp.max(s, axis=-1, keepdims=True)
        p = jnp.exp(s)
        p = p * pl.reciprocal(jnp.sum(p, axis=-1, keepdims=True), approx=True)
        o_ref[0, :, lo:hi] = _mm(p, v[:, lo:hi]).astype(o_ref.dtype)


def _self_attn_kernel(qkv_ref, o_ref, *, heads, scale, causal):
    d = o_ref.shape[-1]
    qkv = qkv_ref[0].astype(jnp.float32)
    _attn_body(qkv[:, :d], qkv[:, d:2 * d], qkv[:, 2 * d:], o_ref,
               heads, scale, causal)


def _cross_attn_kernel(q_ref, kv_ref, o_ref, *, heads, scale):
    d = o_ref.shape[-1]
    q = q_ref[0].astype(jnp.float32)
    kv = kv_ref[0].astype(jnp.float32)
    _attn_body(q, kv[:, :d], kv[:, d:], o_ref, heads, scale, causal=False)


# ----------------------------------------------------------------------------
# pallas_call wrappers
# ----------------------------------------------------------------------------
def _row_tile(m, cap=_ROW_CAP):
    if m <= cap:
        return m
    t = cap - (cap % 8)
    while t >= 8:
        if m % t == 0:
            return t
        t -= 8
    return m  # fallback: single full block


def _call_rowwise(kernel, row_inputs, full_inputs, out_feats, dtype):
    m = row_inputs[0].shape[0]
    tm = _row_tile(m)
    grid = (m // tm,)
    in_specs = [pl.BlockSpec((tm, a.shape[1]), lambda i: (i, 0)) for a in row_inputs]
    in_specs += [pl.BlockSpec(a.shape, lambda i: (0, 0)) for a in full_inputs]
    multi = isinstance(out_feats, (tuple, list))
    feats = tuple(out_feats) if multi else (out_feats,)
    out_shape = tuple(jax.ShapeDtypeStruct((m, f), dtype) for f in feats)
    out_specs = tuple(pl.BlockSpec((tm, f), lambda i: (i, 0)) for f in feats)
    if not multi:
        out_shape, out_specs = out_shape[0], out_specs[0]
    return pl.pallas_call(
        kernel,
        grid=grid,
        in_specs=in_specs,
        out_specs=out_specs,
        out_shape=out_shape,
        compiler_params=pltpu.CompilerParams(dimension_semantics=("parallel",)),
    )(*row_inputs, *full_inputs)


def pallas_linear(x2d, w, b):
    return _call_rowwise(_linear_kernel, [x2d], [w, b.reshape(1, -1)],
                         w.shape[1], x2d.dtype)


def pallas_ln_linear(x2d, g, b, w, bias):
    return _call_rowwise(_ln_linear_kernel, [x2d],
                         [g.reshape(1, -1), b.reshape(1, -1), w, bias.reshape(1, -1)],
                         w.shape[1], x2d.dtype)


def pallas_linear_residual(x2d, res2d, w, b):
    return _call_rowwise(_linear_residual_kernel, [x2d, res2d],
                         [w, b.reshape(1, -1)], w.shape[1], x2d.dtype)


def pallas_ln_ffn_residual(x2d, g, b, w1, b1, w2, b2):
    return _call_rowwise(_ln_ffn_residual_kernel, [x2d],
                         [g.reshape(1, -1), b.reshape(1, -1),
                          w1, b1.reshape(1, -1), w2, b2.reshape(1, -1)],
                         w2.shape[1], x2d.dtype)


def pallas_layernorm(x2d, g, b):
    return _call_rowwise(_layernorm_kernel, [x2d],
                         [g.reshape(1, -1), b.reshape(1, -1)],
                         x2d.shape[1], x2d.dtype)


def pallas_ln_linear_softmax(x2d, g, b, w, bias):
    return _call_rowwise(_ln_linear_softmax_kernel, [x2d],
                         [g.reshape(1, -1), b.reshape(1, -1), w, bias.reshape(1, -1)],
                         (w.shape[1], w.shape[1]), x2d.dtype)


def pallas_self_attention(qkv, heads, causal):
    B, S, threeD = qkv.shape
    D = threeD // 3
    scale = 1.0 / math.sqrt(D // heads)
    kernel = functools.partial(_self_attn_kernel, heads=heads, scale=scale, causal=causal)
    return pl.pallas_call(
        kernel,
        grid=(B,),
        in_specs=[pl.BlockSpec((1, S, threeD), lambda i: (i, 0, 0))],
        out_specs=pl.BlockSpec((1, S, D), lambda i: (i, 0, 0)),
        out_shape=jax.ShapeDtypeStruct((B, S, D), qkv.dtype),
        compiler_params=pltpu.CompilerParams(dimension_semantics=("parallel",)),
    )(qkv)


def pallas_cross_attention(q, kv, heads):
    B, T, D = q.shape
    S = kv.shape[1]
    scale = 1.0 / math.sqrt(D // heads)
    kernel = functools.partial(_cross_attn_kernel, heads=heads, scale=scale)
    return pl.pallas_call(
        kernel,
        grid=(B,),
        in_specs=[pl.BlockSpec((1, T, D), lambda i: (i, 0, 0)),
                  pl.BlockSpec((1, S, 2 * D), lambda i: (i, 0, 0))],
        out_specs=pl.BlockSpec((1, T, D), lambda i: (i, 0, 0)),
        out_shape=jax.ShapeDtypeStruct((B, T, D), q.dtype),
        compiler_params=pltpu.CompilerParams(dimension_semantics=("parallel",)),
    )(q, kv)


# ----------------------------------------------------------------------------
# Model glue (plain JAX around the kernels: reshapes, embedding gather, PE)
# ----------------------------------------------------------------------------
def sinusoidal_pe(max_len, d_model):
    pos = jnp.arange(max_len, dtype=jnp.float32)[:, None]
    i = jnp.arange(d_model // 2, dtype=jnp.float32)[None, :]
    angle = pos / jnp.power(10000.0, (2.0 * i) / d_model)
    pe = jnp.zeros((max_len, d_model), jnp.float32)
    pe = pe.at[:, 0::2].set(jnp.sin(angle))
    pe = pe.at[:, 1::2].set(jnp.cos(angle))
    return pe


def encoder_layer(x2d, p, heads, B, S, D):
    qkv = pallas_ln_linear(x2d, p["ln1_g"], p["ln1_b"],
                           p["attn"]["wqkv"], p["attn"]["bqkv"])
    o = pallas_self_attention(qkv.reshape(B, S, 3 * D), heads, causal=False)
    x2d = pallas_linear_residual(o.reshape(B * S, D), x2d,
                                 p["attn"]["wo"], p["attn"]["bo"])
    x2d = pallas_ln_ffn_residual(x2d, p["ln2_g"], p["ln2_b"],
                                 p["ff_w1"], p["ff_b1"], p["ff_w2"], p["ff_b2"])
    return x2d


def decoder_layer(x2d, e2d, p, heads, B, T, S, D):
    # causal self-attention
    qkv = pallas_ln_linear(x2d, p["ln1_g"], p["ln1_b"],
                           p["self_attn"]["wqkv"], p["self_attn"]["bqkv"])
    o = pallas_self_attention(qkv.reshape(B, T, 3 * D), heads, causal=True)
    x2d = pallas_linear_residual(o.reshape(B * T, D), x2d,
                                 p["self_attn"]["wo"], p["self_attn"]["bo"])
    # cross-attention (no padding mask for continuous fMRI encoder input)
    q = pallas_ln_linear(x2d, p["ln2_g"], p["ln2_b"],
                         p["cross_attn"]["wq"], p["cross_attn"]["bq"])
    kv = pallas_linear(e2d, p["cross_attn"]["wkv"], p["cross_attn"]["bkv"])
    o = pallas_cross_attention(q.reshape(B, T, D), kv.reshape(B, S, 2 * D), heads)
    x2d = pallas_linear_residual(o.reshape(B * T, D), x2d,
                                 p["cross_attn"]["wo"], p["cross_attn"]["bo"])
    # feed-forward
    x2d = pallas_ln_ffn_residual(x2d, p["ln3_g"], p["ln3_b"],
                                 p["ff_w1"], p["ff_b1"], p["ff_w2"], p["ff_b2"])
    return x2d


def run_encoder(src, params, heads):
    B, S, F = src.shape
    D = params["embed_w"].shape[1]
    x2d = pallas_linear(src.reshape(B * S, F), params["embed_w"], params["embed_b"])
    x = x2d.reshape(B, S, D) * math.sqrt(D) + params["pe"][:S][None]
    x2d = x.reshape(B * S, D)
    for lp in params["layers"]:
        x2d = encoder_layer(x2d, lp, heads, B, S, D)
    e2d = pallas_layernorm(x2d, params["norm_g"], params["norm_b"])
    return e2d, S, D


def run_decoder(trg, e2d, S, params, heads):
    B, T = trg.shape
    D = params["embed"].shape[1]
    x = jnp.take(params["embed"], trg, axis=0)          # embedding gather (glue)
    x = x * math.sqrt(D) + params["pe"][:T][None]
    x2d = x.reshape(B * T, D)
    for lp in params["layers"]:
        x2d = decoder_layer(x2d, e2d, lp, heads, B, T, S, D)
    return x2d                                          # final LN fused into head


def transformer_forward(src, trg, params, heads):
    e2d, S, D = run_encoder(src, params["encoder"], heads)
    d2d = run_decoder(trg, e2d, S, params["decoder"], heads)
    B, T = trg.shape
    V = params["out_w"].shape[1]
    logits2d, probs2d = pallas_ln_linear_softmax(
        d2d, params["decoder"]["norm_g"], params["decoder"]["norm_b"],
        params["out_w"], params["out_b"])
    return logits2d.reshape(B, T, V), probs2d.reshape(B, T, V)


# ----------------------------------------------------------------------------
# Deterministic parameter initialization (fused QKV / KV weight layouts)
# ----------------------------------------------------------------------------
def init_params(key, src_feat, trg_vocab, max_seq, d_model, d_ff, N):
    keys = list(jax.random.split(key, 512))
    ki = iter(keys)
    ones_d = jnp.ones((d_model,), jnp.float32)
    zeros_d = jnp.zeros((d_model,), jnp.float32)

    def nrm(shape):
        return 0.02 * jax.random.normal(next(ki), shape, jnp.float32)

    def attn_self():
        return {"wqkv": nrm((d_model, 3 * d_model)),
                "bqkv": jnp.zeros((3 * d_model,), jnp.float32),
                "wo": nrm((d_model, d_model)), "bo": zeros_d}

    def attn_cross():
        return {"wq": nrm((d_model, d_model)), "bq": zeros_d,
                "wkv": nrm((d_model, 2 * d_model)),
                "bkv": jnp.zeros((2 * d_model,), jnp.float32),
                "wo": nrm((d_model, d_model)), "bo": zeros_d}

    def ff():
        return {"ff_w1": nrm((d_model, d_ff)),
                "ff_b1": jnp.zeros((d_ff,), jnp.float32),
                "ff_w2": nrm((d_ff, d_model)),
                "ff_b2": zeros_d}

    def enc_layer():
        p = {"ln1_g": ones_d, "ln1_b": zeros_d,
             "ln2_g": ones_d, "ln2_b": zeros_d,
             "attn": attn_self()}
        p.update(ff())
        return p

    def dec_layer():
        p = {"ln1_g": ones_d, "ln1_b": zeros_d,
             "ln2_g": ones_d, "ln2_b": zeros_d,
             "ln3_g": ones_d, "ln3_b": zeros_d,
             "self_attn": attn_self(),
             "cross_attn": attn_cross()}
        p.update(ff())
        return p

    encoder = {
        "embed_w": nrm((src_feat, d_model)),
        "embed_b": zeros_d,
        "pe": sinusoidal_pe(max_seq, d_model),
        "layers": [enc_layer() for _ in range(N)],
        "norm_g": ones_d, "norm_b": zeros_d,
    }
    decoder = {
        "embed": nrm((trg_vocab, d_model)),
        "pe": sinusoidal_pe(max_seq, d_model),
        "layers": [dec_layer() for _ in range(N)],
        "norm_g": ones_d, "norm_b": zeros_d,
    }
    return {
        "encoder": encoder,
        "decoder": decoder,
        "out_w": nrm((d_model, trg_vocab)),
        "out_b": jnp.zeros((trg_vocab,), jnp.float32),
    }


# ----------------------------------------------------------------------------
if __name__ == "__main__":
    # small shapes consistent with the module's forward
    B = 2
    time_steps = 8          # src sequence length
    src_fmri_features = 16
    max_seq_length = 8
    trg_len = 8
    trg_vocab = 11
    d_model = 32
    d_ff = 64
    N = 2
    heads = 4

    key = jax.random.PRNGKey(0)
    k_src, k_trg, k_par = jax.random.split(key, 3)
    src = jax.random.normal(k_src, (B, time_steps, src_fmri_features), jnp.float32)
    trg = jax.random.randint(k_trg, (B, trg_len), 0, trg_vocab, jnp.int32)

    params = init_params(k_par, src_fmri_features, trg_vocab, max_seq_length,
                         d_model, d_ff, N)

    fwd = jax.jit(functools.partial(transformer_forward, heads=heads))
    logits, probs = fwd(src, trg, params)
    jax.block_until_ready((logits, probs))

    assert logits.shape == (B, trg_len, trg_vocab)
    assert probs.shape == (B, trg_len, trg_vocab)
    assert bool(jnp.all(jnp.isfinite(logits)))
    assert bool(jnp.all(jnp.isfinite(probs)))
    # softmax rows sum to 1
    assert bool(jnp.allclose(jnp.sum(probs, axis=2), 1.0, atol=1e-4))
    print("KERNEL_OK")
</pallas_src>

<mosaic_0001>
module attributes {stable_mosaic.version = 11 : i64} {
  func.func @_linear_kernel(%arg0: i32, %arg1: memref<16x16xf32, #tpu.memory_space<vmem>>, %arg2: memref<16x32xf32, #tpu.memory_space<vmem>>, %arg3: memref<1x32xf32, #tpu.memory_space<vmem>>, %arg4: memref<16x32xf32, #tpu.memory_space<vmem>>) attributes {dimension_semantics = [#tpu.dimension_semantics<parallel>], iteration_bounds = array<i64: 1>, scalar_prefetch = 0 : i64, scratch_operands = 0 : i64, tpu.core_type = #tpu.core_type<tc>, window_params = [{transform_indices = @transform_0, window_bounds = array<i64: 16, 16>}, {pipeline_mode = #tpu.pipeline_mode<synchronous>, transform_indices = @transform_1, window_bounds = array<i64: 16, 32>}, {pipeline_mode = #tpu.pipeline_mode<synchronous>, transform_indices = @transform_2, window_bounds = array<i64: 1, 32>}, {transform_indices = @transform_3, window_bounds = array<i64: 16, 32>}]} {
    %c0 = arith.constant 0 : index
    %c0_0 = arith.constant 0 : index
    %0 = vector.load %arg1[%c0, %c0_0] : memref<16x16xf32, #tpu.memory_space<vmem>>, vector<16x16xf32>
    %c0_1 = arith.constant 0 : index
    %c0_2 = arith.constant 0 : index
    %1 = vector.load %arg2[%c0_1, %c0_2] : memref<16x32xf32, #tpu.memory_space<vmem>>, vector<16x32xf32>
    %cst = arith.constant dense<0.000000e+00> : vector<16x32xf32>
    %2 = tpu.matmul %0, %1, %cst {dimension_numbers = #tpu.dot_dimension_numbers<[1], [0], [0], [1], [0, 0, 1, 1], [], []>} : vector<16x16xf32>, vector<16x32xf32>, vector<16x32xf32> -> vector<16x32xf32>
    %c0_3 = arith.constant 0 : index
    %c0_4 = arith.constant 0 : index
    %3 = vector.load %arg3[%c0_3, %c0_4] : memref<1x32xf32, #tpu.memory_space<vmem>>, vector<1x32xf32>
    %4 = vector.broadcast %3 : vector<1x32xf32> to vector<16x32xf32>
    %5 = arith.addf %2, %4 : vector<16x32xf32>
    %c0_5 = arith.constant 0 : index
    %c0_6 = arith.constant 0 : index
    %6 = vector.load %arg4[%c0_5, %c0_6] : memref<16x32xf32, #tpu.memory_space<vmem>>, vector<16x32xf32>
    tpu.vector_store %arg4[%c0_5, %c0_6], %5 {strides = array<i32>} : memref<16x32xf32, #tpu.memory_space<vmem>>, vector<16x32xf32>,
    return
  }
  func.func @transform_0(%arg0: i32) -> (i32, i32) {
    %c0_i32 = arith.constant 0 : i32
    %c0_i32_0 = arith.constant 0 : i32
    return %arg0, %c0_i32 : i32, i32
  }
  func.func @transform_1(%arg0: i32) -> (i32, i32) {
    %c0_i32 = arith.constant 0 : i32
    %c0_i32_0 = arith.constant 0 : i32
    %c0_i32_1 = arith.constant 0 : i32
    return %c0_i32, %c0_i32_0 : i32, i32
  }
  func.func @transform_2(%arg0: i32) -> (i32, i32) {
    %c0_i32 = arith.constant 0 : i32
    %c0_i32_0 = arith.constant 0 : i32
    %c0_i32_1 = arith.constant 0 : i32
    return %c0_i32, %c0_i32_0 : i32, i32
  }
  func.func @transform_3(%arg0: i32) -> (i32, i32) {
    %c0_i32 = arith.constant 0 : i32
    %c0_i32_0 = arith.constant 0 : i32
    return %arg0, %c0_i32 : i32, i32
  }
}

module attributes {stable_mosaic.version = 11 : i64} {
  func.func @_self_attn_kernel(%arg0: i32, %arg1: memref<1x8x96xf32, #tpu.memory_space<vmem>>, %arg2: memref<1x8x32xf32, #tpu.memory_space<vmem>>) attributes {dimension_semantics = [#tpu.dimension_semantics<parallel>], iteration_bounds = array<i64: 2>, scalar_prefetch = 0 : i64, scratch_operands = 0 : i64, tpu.core_type = #tpu.core_type<tc>, window_params = [{transform_indices = @transform_0, window_bounds = array<i64: 1, 8, 96>}, {transform_indices = @transform_1, window_bounds = array<i64: 1, 8, 32>}]} {
    %c0 = arith.constant 0 : index
    %c0_0 = arith.constant 0 : index
    %c0_1 = arith.constant 0 : index
    %0 = vector.load %arg1[%c0, %c0_0, %c0_1] : memref<1x8x96xf32, #tpu.memory_space<vmem>>, vector<1x8x96xf32>
    %1 = vector.shape_cast %0 : vector<1x8x96xf32> to vector<8x96xf32>
    %2 = vector.extract_strided_slice %1 {offsets = [0, 0], sizes = [8, 32], strides = [1, 1]} : vector<8x96xf32> to vector<8x32xf32>
    %3 = vector.extract_strided_slice %1 {offsets = [0, 32], sizes = [8, 32], strides = [1, 1]} : vector<8x96xf32> to vector<8x32xf32>
    %4 = vector.extract_strided_slice %1 {offsets = [0, 64], sizes = [8, 32], strides = [1, 1]} : vector<8x96xf32> to vector<8x32xf32>
    %5 = vector.extract_strided_slice %2 {offsets = [0, 0], sizes = [8, 8], strides = [1, 1]} : vector<8x32xf32> to vector<8x8xf32>
    %6 = vector.extract_strided_slice %3 {offsets = [0, 0], sizes = [8, 8], strides = [1, 1]} : vector<8x32xf32> to vector<8x8xf32>
    %cst = arith.constant dense<0.000000e+00> : vector<8x8xf32>
    %7 = tpu.matmul %5, %6, %cst {dimension_numbers = #tpu.dot_dimension_numbers<[1], [1], [0], [0], [0, 0, 1, 0], [], []>} : vector<8x8xf32>, vector<8x8xf32>, vector<8x8xf32> -> vector<8x8xf32>
    %cst_2 = arith.constant 0.353553385 : f32
    %8 = vector.broadcast %cst_2 : f32 to vector<8x8xf32>
    %9 = arith.mulf %7, %8 : vector<8x8xf32>
    %cst_3 = arith.constant dense<0xFF800000> : vector<8xf32>
    %10 = vector.multi_reduction <maximumf>, %9, %cst_3 [1] : vector<8x8xf32> to vector<8xf32>
    %11 = vector.shape_cast %10 : vector<8xf32> to vector<8x1xf32>
    %12 = vector.broadcast %11 : vector<8x1xf32> to vector<8x8xf32>
    %13 = arith.subf %9, %12 : vector<8x8xf32>
    %14 = math.exp %13 : vector<8x8xf32>
    %cst_4 = arith.constant dense<0.000000e+00> : vector<8xf32>
    %15 = vector.multi_reduction <add>, %14, %cst_4 [1] : vector<8x8xf32> to vector<8xf32>
    %16 = vector.shape_cast %15 : vector<8xf32> to vector<8x1xf32>
    %17 = tpu.reciprocal %16 {approx = true} : vector<8x1xf32> -> vector<8x1xf32>
    %18 = vector.broadcast %17 : vector<8x1xf32> to vector<8x8xf32>
    %19 = arith.mulf %14, %18 : vector<8x8xf32>
    %20 = vector.extract_strided_slice %4 {offsets = [0, 0], sizes = [8, 8], strides = [1, 1]} : vector<8x32xf32> to vector<8x8xf32>
    %cst_5 = arith.constant dense<0.000000e+00> : vector<8x8xf32>
    %21 = tpu.matmul %19, %20, %cst_5 {dimension_numbers = #tpu.dot_dimension_numbers<[1], [0], [0], [1], [0, 0, 1, 1], [], []>} : vector<8x8xf32>, vector<8x8xf32>, vector<8x8xf32> -> vector<8x8xf32>
    %c0_6 = arith.constant 0 : index
    %c0_7 = arith.constant 0 : index
    %c0_8 = arith.constant 0 : index
    %22 = vector.load %arg2[%c0_6, %c0_7, %c0_8] : memref<1x8x32xf32, #tpu.memory_space<vmem>>, vector<1x8x8xf32>
    %23 = vector.shape_cast %22 : vector<1x8x8xf32> to vector<8x8xf32>
    %24 = vector.shape_cast %21 : vector<8x8xf32> to vector<1x8x8xf32>
    tpu.vector_store %arg2[%c0_6, %c0_7, %c0_8], %24 {strides = array<i32>} : memref<1x8x32xf32, #tpu.memory_space<vmem>>, vector<1x8x8xf32>,
    %25 = vector.extract_strided_slice %2 {offsets = [0, 8], sizes = [8, 8], strides = [1, 1]} : vector<8x32xf32> to vector<8x8xf32>
    %26 = vector.extract_strided_slice %3 {offsets = [0, 8], sizes = [8, 8], strides = [1, 1]} : vector<8x32xf32> to vector<8x8xf32>
    %cst_9 = arith.constant dense<0.000000e+00> : vector<8x8xf32>
    %27 = tpu.matmul %25, %26, %cst_9 {dimension_numbers = #tpu.dot_dimension_numbers<[1], [1], [0], [0], [0, 0, 1, 0], [], []>} : vector<8x8xf32>, vector<8x8xf32>, vector<8x8xf32> -> vector<8x8xf32>
    %cst_10 = arith.constant 0.353553385 : f32
    %28 = vector.broadcast %cst_10 : f32 to vector<8x8xf32>
    %29 = arith.mulf %27, %28 : vector<8x8xf32>
    %cst_11 = arith.constant dense<0xFF800000> : vector<8xf32>
    %30 = vector.multi_reduction <maximumf>, %29, %cst_11 [1] : vector<8x8xf32> to vector<8xf32>
    %31 = vector.shape_cast %30 : vector<8xf32> to vector<8x1xf32>
    %32 = vector.broadcast %31 : vector<8x1xf32> to vector<8x8xf32>
    %33 = arith.subf %29, %32 : vector<8x8xf32>
    %34 = math.exp %33 : vector<8x8xf32>
    %cst_12 = arith.constant dense<0.000000e+00> : vector<8xf32>
    %35 = vector.multi_reduction <add>, %34, %cst_12 [1] : vector<8x8xf32> to vector<8xf32>
    %36 = vector.shape_cast %35 : vector<8xf32> to vector<8x1xf32>
    %37 = tpu.reciprocal %36 {approx = true} : vector<8x1xf32> -> vector<8x1xf32>
    %38 = vector.broadcast %37 : vector<8x1xf32> to vector<8x8xf32>
    %39 = arith.mulf %34, %38 : vector<8x8xf32>
    %40 = vector.extract_strided_slice %4 {offsets = [0, 8], sizes = [8, 8], strides = [1, 1]} : vector<8x32xf32> to vector<8x8xf32>
    %cst_13 = arith.constant dense<0.000000e+00> : vector<8x8xf32>
    %41 = tpu.matmul %39, %40, %cst_13 {dimension_numbers = #tpu.dot_dimension_numbers<[1], [0], [0], [1], [0, 0, 1, 1], [], []>} : vector<8x8xf32>, vector<8x8xf32>, vector<8x8xf32> -> vector<8x8xf32>
    %c0_14 = arith.constant 0 : index
    %c0_15 = arith.constant 0 : index
    %c8 = arith.constant 8 : index
    %42 = vector.load %arg2[%c0_14, %c0_15, %c8] : memref<1x8x32xf32, #tpu.memory_space<vmem>>, vector<1x8x8xf32>
    %43 = vector.shape_cast %42 : vector<1x8x8xf32> to vector<8x8xf32>
    %44 = vector.shape_cast %41 : vector<8x8xf32> to vector<1x8x8xf32>
    tpu.vector_store %arg2[%c0_14, %c0_15, %c8], %44 {strides = array<i32>} : memref<1x8x32xf32, #tpu.memory_space<vmem>>, vector<1x8x8xf32>,
    %45 = vector.extract_strided_slice %2 {offsets = [0, 16], sizes = [8, 8], strides = [1, 1]} : vector<8x32xf32> to vector<8x8xf32>
    %46 = vector.extract_strided_slice %3 {offsets = [0, 16], sizes = [8, 8], strides = [1, 1]} : vector<8x32xf32> to vector<8x8xf32>
    %cst_16 = arith.constant dense<0.000000e+00> : vector<8x8xf32>
    %47 = tpu.matmul %45, %46, %cst_16 {dimension_numbers = #tpu.dot_dimension_numbers<[1], [1], [0], [0], [0, 0, 1, 0], [], []>} : vector<8x8xf32>, vector<8x8xf32>, vector<8x8xf32> -> vector<8x8xf32>
    %cst_17 = arith.constant 0.353553385 : f32
    %48 = vector.broadcast %cst_17 : f32 to vector<8x8xf32>
    %49 = arith.mulf %47, %48 : vector<8x8xf32>
    %cst_18 = arith.constant dense<0xFF800000> : vector<8xf32>
    %50 = vector.multi_reduction <maximumf>, %49, %cst_18 [1] : vector<8x8xf32> to vector<8xf32>
    %51 = vector.shape_cast %50 : vector<8xf32> to vector<8x1xf32>
    %52 = vector.broadcast %51 : vector<8x1xf32> to vector<8x8xf32>
    %53 = arith.subf %49, %52 : vector<8x8xf32>
    %54 = math.exp %53 : vector<8x8xf32>
    %cst_19 = arith.constant dense<0.000000e+00> : vector<8xf32>
    %55 = vector.multi_reduction <add>, %54, %cst_19 [1] : vector<8x8xf32> to vector<8xf32>
    %56 = vector.shape_cast %55 : vector<8xf32> to vector<8x1xf32>
    %57 = tpu.reciprocal %56 {approx = true} : vector<8x1xf32> -> vector<8x1xf32>
    %58 = vector.broadcast %57 : vector<8x1xf32> to vector<8x8xf32>
    %59 = arith.mulf %54, %58 : vector<8x8xf32>
    %60 = vector.extract_strided_slice %4 {offsets = [0, 16], sizes = [8, 8], strides = [1, 1]} : vector<8x32xf32> to vector<8x8xf32>
    %cst_20 = arith.constant dense<0.000000e+00> : vector<8x8xf32>
    %61 = tpu.matmul %59, %60, %cst_20 {dimension_numbers = #tpu.dot_dimension_numbers<[1], [0], [0], [1], [0, 0, 1, 1], [], []>} : vector<8x8xf32>, vector<8x8xf32>, vector<8x8xf32> -> vector<8x8xf32>
    %c0_21 = arith.constant 0 : index
    %c0_22 = arith.constant 0 : index
    %c16 = arith.constant 16 : index
    %62 = vector.load %arg2[%c0_21, %c0_22, %c16] : memref<1x8x32xf32, #tpu.memory_space<vmem>>, vector<1x8x8xf32>
    %63 = vector.shape_cast %62 : vector<1x8x8xf32> to vector<8x8xf32>
    %64 = vector.shape_cast %61 : vector<8x8xf32> to vector<1x8x8xf32>
    tpu.vector_store %arg2[%c0_21, %c0_22, %c16], %64 {strides = array<i32>} : memref<1x8x32xf32, #tpu.memory_space<vmem>>, vector<1x8x8xf32>,
    %65 = vector.extract_strided_slice %2 {offsets = [0, 24], sizes = [8, 8], strides = [1, 1]} : vector<8x32xf32> to vector<8x8xf32>
    %66 = vector.extract_strided_slice %3 {offsets = [0, 24], sizes = [8, 8], strides = [1, 1]} : vector<8x32xf32> to vector<8x8xf32>
    %cst_23 = arith.constant dense<0.000000e+00> : vector<8x8xf32>
    %67 = tpu.matmul %65, %66, %cst_23 {dimension_numbers = #tpu.dot_dimension_numbers<[1], [1], [0], [0], [0, 0, 1, 0], [], []>} : vector<8x8xf32>, vector<8x8xf32>, vector<8x8xf32> -> vector<8x8xf32>
    %cst_24 = arith.constant 0.353553385 : f32
    %68 = vector.broadcast %cst_24 : f32 to vector<8x8xf32>
    %69 = arith.mulf %67, %68 : vector<8x8xf32>
    %cst_25 = arith.constant dense<0xFF800000> : vector<8xf32>
    %70 = vector.multi_reduction <maximumf>, %69, %cst_25 [1] : vector<8x8xf32> to vector<8xf32>
    %71 = vector.shape_cast %70 : vector<8xf32> to vector<8x1xf32>
    %72 = vector.broadcast %71 : vector<8x1xf32> to vector<8x8xf32>
    %73 = arith.subf %69, %72 : vector<8x8xf32>
    %74 = math.exp %73 : vector<8x8xf32>
    %cst_26 = arith.constant dense<0.000000e+00> : vector<8xf32>
    %75 = vector.multi_reduction <add>, %74, %cst_26 [1] : vector<8x8xf32> to vector<8xf32>
    %76 = vector.shape_cast %75 : vector<8xf32> to vector<8x1xf32>
    %77 = tpu.reciprocal %76 {approx = true} : vector<8x1xf32> -> vector<8x1xf32>
    %78 = vector.broadcast %77 : vector<8x1xf32> to vector<8x8xf32>
    %79 = arith.mulf %74, %78 : vector<8x8xf32>
    %80 = vector.extract_strided_slice %4 {offsets = [0, 24], sizes = [8, 8], strides = [1, 1]} : vector<8x32xf32> to vector<8x8xf32>
    %cst_27 = arith.constant dense<0.000000e+00> : vector<8x8xf32>
    %81 = tpu.matmul %79, %80, %cst_27 {dimension_numbers = #tpu.dot_dimension_numbers<[1], [0], [0], [1], [0, 0, 1, 1], [], []>} : vector<8x8xf32>, vector<8x8xf32>, vector<8x8xf32> -> vector<8x8xf32>
    %c0_28 = arith.constant 0 : index
    %c0_29 = arith.constant 0 : index
    %c24 = arith.constant 24 : index
    %82 = vector.load %arg2[%c0_28, %c0_29, %c24] : memref<1x8x32xf32, #tpu.memory_space<vmem>>, vector<1x8x8xf32>
    %83 = vector.shape_cast %82 : vector<1x8x8xf32> to vector<8x8xf32>
    %84 = vector.shape_cast %81 : vector<8x8xf32> to vector<1x8x8xf32>
    tpu.vector_store %arg2[%c0_28, %c0_29, %c24], %84 {strides = array<i32>} : memref<1x8x32xf32, #tpu.memory_space<vmem>>, vector<1x8x8xf32>,
    return
  }
  func.func @transform_0(%arg0: i32) -> (i32, i32, i32) {
    %c0_i32 = arith.constant 0 : i32
    %c0_i32_0 = arith.constant 0 : i32
    %c0_i32_1 = arith.constant 0 : i32
    return %arg0, %c0_i32, %c0_i32_0 : i32, i32, i32
  }
  func.func @transform_1(%arg0: i32) -> (i32, i32, i32) {
    %c0_i32 = arith.constant 0 : i32
    %c0_i32_0 = arith.constant 0 : i32
    %c0_i32_1 = arith.constant 0 : i32
    return %arg0, %c0_i32, %c0_i32_0 : i32, i32, i32
  }
}

module attributes {stable_mosaic.version = 11 : i64} {
  func.func @_ln_linear_kernel(%arg0: i32, %arg1: memref<16x32xf32, #tpu.memory_space<vmem>>, %arg2: memref<1x32xf32, #tpu.memory_space<vmem>>, %arg3: memref<1x32xf32, #tpu.memory_space<vmem>>, %arg4: memref<32x96xf32, #tpu.memory_space<vmem>>, %arg5: memref<1x96xf32, #tpu.memory_space<vmem>>, %arg6: memref<16x96xf32, #tpu.memory_space<vmem>>) attributes {dimension_semantics = [#tpu.dimension_semantics<parallel>], iteration_bounds = array<i64: 1>, scalar_prefetch = 0 : i64, scratch_operands = 0 : i64, tpu.core_type = #tpu.core_type<tc>, window_params = [{transform_indices = @transform_0, window_bounds = array<i64: 16, 32>}, {pipeline_mode = #tpu.pipeline_mode<synchronous>, transform_indices = @transform_1, window_bounds = array<i64: 1, 32>}, {pipeline_mode = #tpu.pipeline_mode<synchronous>, transform_indices = @transform_2, window_bounds = array<i64: 1, 32>}, {pipeline_mode = #tpu.pipeline_mode<synchronous>, transform_indices = @transform_3, window_bounds = array<i64: 32, 96>}, {pipeline_mode = #tpu.pipeline_mode<synchronous>, transform_indices = @transform_4, window_bounds = array<i64: 1, 96>}, {transform_indices = @transform_5, window_bounds = array<i64: 16, 96>}]} {
    %c0 = arith.constant 0 : index
    %c0_0 = arith.constant 0 : index
    %0 = vector.load %arg1[%c0, %c0_0] : memref<16x32xf32, #tpu.memory_space<vmem>>, vector<16x32xf32>
    %c0_1 = arith.constant 0 : index
    %c0_2 = arith.constant 0 : index
    %1 = vector.load %arg2[%c0_1, %c0_2] : memref<1x32xf32, #tpu.memory_space<vmem>>, vector<1x32xf32>
    %c0_3 = arith.constant 0 : index
    %c0_4 = arith.constant 0 : index
    %2 = vector.load %arg3[%c0_3, %c0_4] : memref<1x32xf32, #tpu.memory_space<vmem>>, vector<1x32xf32>
    %cst = arith.constant dense<0.000000e+00> : vector<16xf32>
    %3 = vector.multi_reduction <add>, %0, %cst [1] : vector<16x32xf32> to vector<16xf32>
    %4 = vector.shape_cast %3 : vector<16xf32> to vector<16x1xf32>
    %cst_5 = arith.constant 3.200000e+01 : f32
    %5 = vector.broadcast %cst_5 : f32 to vector<16x1xf32>
    %6 = arith.divf %4, %5 : vector<16x1xf32>
    %7 = vector.broadcast %6 : vector<16x1xf32> to vector<16x32xf32>
    %8 = arith.subf %0, %7 : vector<16x32xf32>
    %9 = arith.mulf %8, %8 : vector<16x32xf32>
    %cst_6 = arith.constant dense<0.000000e+00> : vector<16xf32>
    %10 = vector.multi_reduction <add>, %9, %cst_6 [1] : vector<16x32xf32> to vector<16xf32>
    %11 = vector.shape_cast %10 : vector<16xf32> to vector<16x1xf32>
    %cst_7 = arith.constant 3.200000e+01 : f32
    %12 = vector.broadcast %cst_7 : f32 to vector<16x1xf32>
    %13 = arith.divf %11, %12 : vector<16x1xf32>
    %14 = vector.broadcast %6 : vector<16x1xf32> to vector<16x32xf32>
    %15 = arith.subf %0, %14 : vector<16x32xf32>
    %cst_8 = arith.constant 9.99999974E-6 : f32
    %16 = vector.broadcast %cst_8 : f32 to vector<16x1xf32>
    %17 = arith.addf %13, %16 : vector<16x1xf32>
    %18 = math.rsqrt %17 : vector<16x1xf32>
    %19 = vector.broadcast %18 : vector<16x1xf32> to vector<16x32xf32>
    %20 = arith.mulf %15, %19 : vector<16x32xf32>
    %21 = vector.broadcast %1 : vector<1x32xf32> to vector<16x32xf32>
    %22 = arith.mulf %20, %21 : vector<16x32xf32>
    %23 = vector.broadcast %2 : vector<1x32xf32> to vector<16x32xf32>
    %24 = arith.addf %22, %23 : vector<16x32xf32>
    %c0_9 = arith.constant 0 : index
    %c0_10 = arith.constant 0 : index
    %25 = vector.load %arg4[%c0_9, %c0_10] : memref<32x96xf32, #tpu.memory_space<vmem>>, vector<32x96xf32>
    %cst_11 = arith.constant dense<0.000000e+00> : vector<16x96xf32>
    %26 = tpu.matmul %24, %25, %cst_11 {dimension_numbers = #tpu.dot_dimension_numbers<[1], [0], [0], [1], [0, 0, 1, 1], [], []>} : vector<16x32xf32>, vector<32x96xf32>, vector<16x96xf32> -> vector<16x96xf32>
    %c0_12 = arith.constant 0 : index
    %c0_13 = arith.constant 0 : index
    %27 = vector.load %arg5[%c0_12, %c0_13] : memref<1x96xf32, #tpu.memory_space<vmem>>, vector<1x96xf32>
    %28 = vector.broadcast %27 : vector<1x96xf32> to vector<16x96xf32>
    %29 = arith.addf %26, %28 : vector<16x96xf32>
    %c0_14 = arith.constant 0 : index
    %c0_15 = arith.constant 0 : index
    %30 = vector.load %arg6[%c0_14, %c0_15] : memref<16x96xf32, #tpu.memory_space<vmem>>, vector<16x96xf32>
    tpu.vector_store %arg6[%c0_14, %c0_15], %29 {strides = array<i32>} : memref<16x96xf32, #tpu.memory_space<vmem>>, vector<16x96xf32>,
    return
  }
  func.func @transform_0(%arg0: i32) -> (i32, i32) {
    %c0_i32 = arith.constant 0 : i32
    %c0_i32_0 = arith.constant 0 : i32
    return %arg0, %c0_i32 : i32, i32
  }
  func.func @transform_1(%arg0: i32) -> (i32, i32) {
    %c0_i32 = arith.constant 0 : i32
    %c0_i32_0 = arith.constant 0 : i32
    %c0_i32_1 = arith.constant 0 : i32
    return %c0_i32, %c0_i32_0 : i32, i32
  }
  func.func @transform_2(%arg0: i32) -> (i32, i32) {
    %c0_i32 = arith.constant 0 : i32
    %c0_i32_0 = arith.constant 0 : i32
    %c0_i32_1 = arith.constant 0 : i32
    return %c0_i32, %c0_i32_0 : i32, i32
  }
  func.func @transform_3(%arg0: i32) -> (i32, i32) {
    %c0_i32 = arith.constant 0 : i32
    %c0_i32_0 = arith.constant 0 : i32
    %c0_i32_1 = arith.constant 0 : i32
    return %c0_i32, %c0_i32_0 : i32, i32
  }
  func.func @transform_4(%arg0: i32) -> (i32, i32) {
    %c0_i32 = arith.constant 0 : i32
    %c0_i32_0 = arith.constant 0 : i32
    %c0_i32_1 = arith.constant 0 : i32
    return %c0_i32, %c0_i32_0 : i32, i32
  }
  func.func @transform_5(%arg0: i32) -> (i32, i32) {
    %c0_i32 = arith.constant 0 : i32
    %c0_i32_0 = arith.constant 0 : i32
    return %arg0, %c0_i32 : i32, i32
  }
}

module attributes {stable_mosaic.version = 11 : i64} {
  func.func @_linear_residual_kernel(%arg0: i32, %arg1: memref<16x32xf32, #tpu.memory_space<vmem>>, %arg2: memref<16x32xf32, #tpu.memory_space<vmem>>, %arg3: memref<32x32xf32, #tpu.memory_space<vmem>>, %arg4: memref<1x32xf32, #tpu.memory_space<vmem>>, %arg5: memref<16x32xf32, #tpu.memory_space<vmem>>) attributes {dimension_semantics = [#tpu.dimension_semantics<parallel>], iteration_bounds = array<i64: 1>, scalar_prefetch = 0 : i64, scratch_operands = 0 : i64, tpu.core_type = #tpu.core_type<tc>, window_params = [{transform_indices = @transform_0, window_bounds = array<i64: 16, 32>}, {transform_indices = @transform_1, window_bounds = array<i64: 16, 32>}, {pipeline_mode = #tpu.pipeline_mode<synchronous>, transform_indices = @transform_2, window_bounds = array<i64: 32, 32>}, {pipeline_mode = #tpu.pipeline_mode<synchronous>, transform_indices = @transform_3, window_bounds = array<i64: 1, 32>}, {transform_indices = @transform_4, window_bounds = array<i64: 16, 32>}]} {
    %c0 = arith.constant 0 : index
    %c0_0 = arith.constant 0 : index
    %0 = vector.load %arg2[%c0, %c0_0] : memref<16x32xf32, #tpu.memory_space<vmem>>, vector<16x32xf32>
    %c0_1 = arith.constant 0 : index
    %c0_2 = arith.constant 0 : index
    %1 = vector.load %arg1[%c0_1, %c0_2] : memref<16x32xf32, #tpu.memory_space<vmem>>, vector<16x32xf32>
    %c0_3 = arith.constant 0 : index
    %c0_4 = arith.constant 0 : index
    %2 = vector.load %arg3[%c0_3, %c0_4] : memref<32x32xf32, #tpu.memory_space<vmem>>, vector<32x32xf32>
    %cst = arith.constant dense<0.000000e+00> : vector<16x32xf32>
    %3 = tpu.matmul %1, %2, %cst {dimension_numbers = #tpu.dot_dimension_numbers<[1], [0], [0], [1], [0, 0, 1, 1], [], []>} : vector<16x32xf32>, vector<32x32xf32>, vector<16x32xf32> -> vector<16x32xf32>
    %4 = arith.addf %0, %3 : vector<16x32xf32>
    %c0_5 = arith.constant 0 : index
    %c0_6 = arith.constant 0 : index
    %5 = vector.load %arg4[%c0_5, %c0_6] : memref<1x32xf32, #tpu.memory_space<vmem>>, vector<1x32xf32>
    %6 = vector.broadcast %5 : vector<1x32xf32> to vector<16x32xf32>
    %7 = arith.addf %4, %6 : vector<16x32xf32>
    %c0_7 = arith.constant 0 : index
    %c0_8 = arith.constant 0 : index
    %8 = vector.load %arg5[%c0_7, %c0_8] : memref<16x32xf32, #tpu.memory_space<vmem>>, vector<16x32xf32>
    tpu.vector_store %arg5[%c0_7, %c0_8], %7 {strides = array<i32>} : memref<16x32xf32, #tpu.memory_space<vmem>>, vector<16x32xf32>,
    return
  }
  func.func @transform_0(%arg0: i32) -> (i32, i32) {
    %c0_i32 = arith.constant 0 : i32
    %c0_i32_0 = arith.constant 0 : i32
    return %arg0, %c0_i32 : i32, i32
  }
  func.func @transform_1(%arg0: i32) -> (i32, i32) {
    %c0_i32 = arith.constant 0 : i32
    %c0_i32_0 = arith.constant 0 : i32
    return %arg0, %c0_i32 : i32, i32
  }
  func.func @transform_2(%arg0: i32) -> (i32, i32) {
    %c0_i32 = arith.constant 0 : i32
    %c0_i32_0 = arith.constant 0 : i32
    %c0_i32_1 = arith.constant 0 : i32
    return %c0_i32, %c0_i32_0 : i32, i32
  }
  func.func @transform_3(%arg0: i32) -> (i32, i32) {
    %c0_i32 = arith.constant 0 : i32
    %c0_i32_0 = arith.constant 0 : i32
    %c0_i32_1 = arith.constant 0 : i32
    return %c0_i32, %c0_i32_0 : i32, i32
  }
  func.func @transform_4(%arg0: i32) -> (i32, i32) {
    %c0_i32 = arith.constant 0 : i32
    %c0_i32_0 = arith.constant 0 : i32
    return %arg0, %c0_i32 : i32, i32
  }
}

module attributes {stable_mosaic.version = 11 : i64} {
  func.func @_ln_ffn_residual_kernel(%arg0: i32, %arg1: memref<16x32xf32, #tpu.memory_space<vmem>>, %arg2: memref<1x32xf32, #tpu.memory_space<vmem>>, %arg3: memref<1x32xf32, #tpu.memory_space<vmem>>, %arg4: memref<32x64xf32, #tpu.memory_space<vmem>>, %arg5: memref<1x64xf32, #tpu.memory_space<vmem>>, %arg6: memref<64x32xf32, #tpu.memory_space<vmem>>, %arg7: memref<1x32xf32, #tpu.memory_space<vmem>>, %arg8: memref<16x32xf32, #tpu.memory_space<vmem>>) attributes {dimension_semantics = [#tpu.dimension_semantics<parallel>], iteration_bounds = array<i64: 1>, scalar_prefetch = 0 : i64, scratch_operands = 0 : i64, tpu.core_type = #tpu.core_type<tc>, window_params = [{transform_indices = @transform_0, window_bounds = array<i64: 16, 32>}, {pipeline_mode = #tpu.pipeline_mode<synchronous>, transform_indices = @transform_1, window_bounds = array<i64: 1, 32>}, {pipeline_mode = #tpu.pipeline_mode<synchronous>, transform_indices = @transform_2, window_bounds = array<i64: 1, 32>}, {pipeline_mode = #tpu.pipeline_mode<synchronous>, transform_indices = @transform_3, window_bounds = array<i64: 32, 64>}, {pipeline_mode = #tpu.pipeline_mode<synchronous>, transform_indices = @transform_4, window_bounds = array<i64: 1, 64>}, {pipeline_mode = #tpu.pipeline_mode<synchronous>, transform_indices = @transform_5, window_bounds = array<i64: 64, 32>}, {pipeline_mode = #tpu.pipeline_mode<synchronous>, transform_indices = @transform_6, window_bounds = array<i64: 1, 32>}, {transform_indices = @transform_7, window_bounds = array<i64: 16, 32>}]} {
    %c0 = arith.constant 0 : index
    %c0_0 = arith.constant 0 : index
    %0 = vector.load %arg1[%c0, %c0_0] : memref<16x32xf32, #tpu.memory_space<vmem>>, vector<16x32xf32>
    %c0_1 = arith.constant 0 : index
    %c0_2 = arith.constant 0 : index
    %1 = vector.load %arg2[%c0_1, %c0_2] : memref<1x32xf32, #tpu.memory_space<vmem>>, vector<1x32xf32>
    %c0_3 = arith.constant 0 : index
    %c0_4 = arith.constant 0 : index
    %2 = vector.load %arg3[%c0_3, %c0_4] : memref<1x32xf32, #tpu.memory_space<vmem>>, vector<1x32xf32>
    %cst = arith.constant dense<0.000000e+00> : vector<16xf32>
    %3 = vector.multi_reduction <add>, %0, %cst [1] : vector<16x32xf32> to vector<16xf32>
    %4 = vector.shape_cast %3 : vector<16xf32> to vector<16x1xf32>
    %cst_5 = arith.constant 3.200000e+01 : f32
    %5 = vector.broadcast %cst_5 : f32 to vector<16x1xf32>
    %6 = arith.divf %4, %5 : vector<16x1xf32>
    %7 = vector.broadcast %6 : vector<16x1xf32> to vector<16x32xf32>
    %8 = arith.subf %0, %7 : vector<16x32xf32>
    %9 = arith.mulf %8, %8 : vector<16x32xf32>
    %cst_6 = arith.constant dense<0.000000e+00> : vector<16xf32>
    %10 = vector.multi_reduction <add>, %9, %cst_6 [1] : vector<16x32xf32> to vector<16xf32>
    %11 = vector.shape_cast %10 : vector<16xf32> to vector<16x1xf32>
    %cst_7 = arith.constant 3.200000e+01 : f32
    %12 = vector.broadcast %cst_7 : f32 to vector<16x1xf32>
    %13 = arith.divf %11, %12 : vector<16x1xf32>
    %14 = vector.broadcast %6 : vector<16x1xf32> to vector<16x32xf32>
    %15 = arith.subf %0, %14 : vector<16x32xf32>
    %cst_8 = arith.constant 9.99999974E-6 : f32
    %16 = vector.broadcast %cst_8 : f32 to vector<16x1xf32>
    %17 = arith.addf %13, %16 : vector<16x1xf32>
    %18 = math.rsqrt %17 : vector<16x1xf32>
    %19 = vector.broadcast %18 : vector<16x1xf32> to vector<16x32xf32>
    %20 = arith.mulf %15, %19 : vector<16x32xf32>
    %21 = vector.broadcast %1 : vector<1x32xf32> to vector<16x32xf32>
    %22 = arith.mulf %20, %21 : vector<16x32xf32>
    %23 = vector.broadcast %2 : vector<1x32xf32> to vector<16x32xf32>
    %24 = arith.addf %22, %23 : vector<16x32xf32>
    %c0_9 = arith.constant 0 : index
    %c0_10 = arith.constant 0 : index
    %25 = vector.load %arg4[%c0_9, %c0_10] : memref<32x64xf32, #tpu.memory_space<vmem>>, vector<32x64xf32>
    %cst_11 = arith.constant dense<0.000000e+00> : vector<16x64xf32>
    %26 = tpu.matmul %24, %25, %cst_11 {dimension_numbers = #tpu.dot_dimension_numbers<[1], [0], [0], [1], [0, 0, 1, 1], [], []>} : vector<16x32xf32>, vector<32x64xf32>, vector<16x64xf32> -> vector<16x64xf32>
    %c0_12 = arith.constant 0 : index
    %c0_13 = arith.constant 0 : index
    %27 = vector.load %arg5[%c0_12, %c0_13] : memref<1x64xf32, #tpu.memory_space<vmem>>, vector<1x64xf32>
    %28 = vector.broadcast %27 : vector<1x64xf32> to vector<16x64xf32>
    %29 = arith.addf %26, %28 : vector<16x64xf32>
    %cst_14 = arith.constant 0.000000e+00 : f32
    %30 = vector.broadcast %cst_14 : f32 to vector<16x64xf32>
    %31 = arith.maximumf %29, %30 : vector<16x64xf32>
    %c0_15 = arith.constant 0 : index
    %c0_16 = arith.constant 0 : index
    %32 = vector.load %arg6[%c0_15, %c0_16] : memref<64x32xf32, #tpu.memory_space<vmem>>, vector<64x32xf32>
    %cst_17 = arith.constant dense<0.000000e+00> : vector<16x32xf32>
    %33 = tpu.matmul %31, %32, %cst_17 {dimension_numbers = #tpu.dot_dimension_numbers<[1], [0], [0], [1], [0, 0, 1, 1], [], []>} : vector<16x64xf32>, vector<64x32xf32>, vector<16x32xf32> -> vector<16x32xf32>
    %34 = arith.addf %0, %33 : vector<16x32xf32>
    %c0_18 = arith.constant 0 : index
    %c0_19 = arith.constant 0 : index
    %35 = vector.load %arg7[%c0_18, %c0_19] : memref<1x32xf32, #tpu.memory_space<vmem>>, vector<1x32xf32>
    %36 = vector.broadcast %35 : vector<1x32xf32> to vector<16x32xf32>
    %37 = arith.addf %34, %36 : vector<16x32xf32>
    %c0_20 = arith.constant 0 : index
    %c0_21 = arith.constant 0 : index
    %38 = vector.load %arg8[%c0_20, %c0_21] : memref<16x32xf32, #tpu.memory_space<vmem>>, vector<16x32xf32>
    tpu.vector_store %arg8[%c0_20, %c0_21], %37 {strides = array<i32>} : memref<16x32xf32, #tpu.memory_space<vmem>>, vector<16x32xf32>,
    return
  }
  func.func @transform_0(%arg0: i32) -> (i32, i32) {
    %c0_i32 = arith.constant 0 : i32
    %c0_i32_0 = arith.constant 0 : i32
    return %arg0, %c0_i32 : i32, i32
  }
  func.func @transform_1(%arg0: i32) -> (i32, i32) {
    %c0_i32 = arith.constant 0 : i32
    %c0_i32_0 = arith.constant 0 : i32
    %c0_i32_1 = arith.constant 0 : i32
    return %c0_i32, %c0_i32_0 : i32, i32
  }
  func.func @transform_2(%arg0: i32) -> (i32, i32) {
    %c0_i32 = arith.constant 0 : i32
    %c0_i32_0 = arith.constant 0 : i32
    %c0_i32_1 = arith.constant 0 : i32
    return %c0_i32, %c0_i32_0 : i32, i32
  }
  func.func @transform_3(%arg0: i32) -> (i32, i32) {
    %c0_i32 = arith.constant 0 : i32
    %c0_i32_0 = arith.constant 0 : i32
    %c0_i32_1 = arith.constant 0 : i32
    return %c0_i32, %c0_i32_0 : i32, i32
  }
  func.func @transform_4(%arg0: i32) -> (i32, i32) {
    %c0_i32 = arith.constant 0 : i32
    %c0_i32_0 = arith.constant 0 : i32
    %c0_i32_1 = arith.constant 0 : i32
    return %c0_i32, %c0_i32_0 : i32, i32
  }
  func.func @transform_5(%arg0: i32) -> (i32, i32) {
    %c0_i32 = arith.constant 0 : i32
    %c0_i32_0 = arith.constant 0 : i32
    %c0_i32_1 = arith.constant 0 : i32
    return %c0_i32, %c0_i32_0 : i32, i32
  }
  func.func @transform_6(%arg0: i32) -> (i32, i32) {
    %c0_i32 = arith.constant 0 : i32
    %c0_i32_0 = arith.constant 0 : i32
    %c0_i32_1 = arith.constant 0 : i32
    return %c0_i32, %c0_i32_0 : i32, i32
  }
  func.func @transform_7(%arg0: i32) -> (i32, i32) {
    %c0_i32 = arith.constant 0 : i32
    %c0_i32_0 = arith.constant 0 : i32
    return %arg0, %c0_i32 : i32, i32
  }
}

module attributes {stable_mosaic.version = 11 : i64} {
  func.func @_layernorm_kernel(%arg0: i32, %arg1: memref<16x32xf32, #tpu.memory_space<vmem>>, %arg2: memref<1x32xf32, #tpu.memory_space<vmem>>, %arg3: memref<1x32xf32, #tpu.memory_space<vmem>>, %arg4: memref<16x32xf32, #tpu.memory_space<vmem>>) attributes {dimension_semantics = [#tpu.dimension_semantics<parallel>], iteration_bounds = array<i64: 1>, scalar_prefetch = 0 : i64, scratch_operands = 0 : i64, tpu.core_type = #tpu.core_type<tc>, window_params = [{transform_indices = @transform_0, window_bounds = array<i64: 16, 32>}, {pipeline_mode = #tpu.pipeline_mode<synchronous>, transform_indices = @transform_1, window_bounds = array<i64: 1, 32>}, {pipeline_mode = #tpu.pipeline_mode<synchronous>, transform_indices = @transform_2, window_bounds = array<i64: 1, 32>}, {transform_indices = @transform_3, window_bounds = array<i64: 16, 32>}]} {
    %c0 = arith.constant 0 : index
    %c0_0 = arith.constant 0 : index
    %0 = vector.load %arg1[%c0, %c0_0] : memref<16x32xf32, #tpu.memory_space<vmem>>, vector<16x32xf32>
    %c0_1 = arith.constant 0 : index
    %c0_2 = arith.constant 0 : index
    %1 = vector.load %arg2[%c0_1, %c0_2] : memref<1x32xf32, #tpu.memory_space<vmem>>, vector<1x32xf32>
    %c0_3 = arith.constant 0 : index
    %c0_4 = arith.constant 0 : index
    %2 = vector.load %arg3[%c0_3, %c0_4] : memref<1x32xf32, #tpu.memory_space<vmem>>, vector<1x32xf32>
    %cst = arith.constant dense<0.000000e+00> : vector<16xf32>
    %3 = vector.multi_reduction <add>, %0, %cst [1] : vector<16x32xf32> to vector<16xf32>
    %4 = vector.shape_cast %3 : vector<16xf32> to vector<16x1xf32>
    %cst_5 = arith.constant 3.200000e+01 : f32
    %5 = vector.broadcast %cst_5 : f32 to vector<16x1xf32>
    %6 = arith.divf %4, %5 : vector<16x1xf32>
    %7 = vector.broadcast %6 : vector<16x1xf32> to vector<16x32xf32>
    %8 = arith.subf %0, %7 : vector<16x32xf32>
    %9 = arith.mulf %8, %8 : vector<16x32xf32>
    %cst_6 = arith.constant dense<0.000000e+00> : vector<16xf32>
    %10 = vector.multi_reduction <add>, %9, %cst_6 [1] : vector<16x32xf32> to vector<16xf32>
    %11 = vector.shape_cast %10 : vector<16xf32> to vector<16x1xf32>
    %cst_7 = arith.constant 3.200000e+01 : f32
    %12 = vector.broadcast %cst_7 : f32 to vector<16x1xf32>
    %13 = arith.divf %11, %12 : vector<16x1xf32>
    %14 = vector.broadcast %6 : vector<16x1xf32> to vector<16x32xf32>
    %15 = arith.subf %0, %14 : vector<16x32xf32>
    %cst_8 = arith.constant 9.99999974E-6 : f32
    %16 = vector.broadcast %cst_8 : f32 to vector<16x1xf32>
    %17 = arith.addf %13, %16 : vector<16x1xf32>
    %18 = math.rsqrt %17 : vector<16x1xf32>
    %19 = vector.broadcast %18 : vector<16x1xf32> to vector<16x32xf32>
    %20 = arith.mulf %15, %19 : vector<16x32xf32>
    %21 = vector.broadcast %1 : vector<1x32xf32> to vector<16x32xf32>
    %22 = arith.mulf %20, %21 : vector<16x32xf32>
    %23 = vector.broadcast %2 : vector<1x32xf32> to vector<16x32xf32>
    %24 = arith.addf %22, %23 : vector<16x32xf32>
    %c0_9 = arith.constant 0 : index
    %c0_10 = arith.constant 0 : index
    %25 = vector.load %arg4[%c0_9, %c0_10] : memref<16x32xf32, #tpu.memory_space<vmem>>, vector<16x32xf32>
    tpu.vector_store %arg4[%c0_9, %c0_10], %24 {strides = array<i32>} : memref<16x32xf32, #tpu.memory_space<vmem>>, vector<16x32xf32>,
    return
  }
  func.func @transform_0(%arg0: i32) -> (i32, i32) {
    %c0_i32 = arith.constant 0 : i32
    %c0_i32_0 = arith.constant 0 : i32
    return %arg0, %c0_i32 : i32, i32
  }
  func.func @transform_1(%arg0: i32) -> (i32, i32) {
    %c0_i32 = arith.constant 0 : i32
    %c0_i32_0 = arith.constant 0 : i32
    %c0_i32_1 = arith.constant 0 : i32
    return %c0_i32, %c0_i32_0 : i32, i32
  }
  func.func @transform_2(%arg0: i32) -> (i32, i32) {
    %c0_i32 = arith.constant 0 : i32
    %c0_i32_0 = arith.constant 0 : i32
    %c0_i32_1 = arith.constant 0 : i32
    return %c0_i32, %c0_i32_0 : i32, i32
  }
  func.func @transform_3(%arg0: i32) -> (i32, i32) {
    %c0_i32 = arith.constant 0 : i32
    %c0_i32_0 = arith.constant 0 : i32
    return %arg0, %c0_i32 : i32, i32
  }
}

module attributes {stable_mosaic.version = 11 : i64} {
  func.func @_linear_kernel(%arg0: i32, %arg1: memref<16x32xf32, #tpu.memory_space<vmem>>, %arg2: memref<32x64xf32, #tpu.memory_space<vmem>>, %arg3: memref<1x64xf32, #tpu.memory_space<vmem>>, %arg4: memref<16x64xf32, #tpu.memory_space<vmem>>) attributes {dimension_semantics = [#tpu.dimension_semantics<parallel>], iteration_bounds = array<i64: 1>, scalar_prefetch = 0 : i64, scratch_operands = 0 : i64, tpu.core_type = #tpu.core_type<tc>, window_params = [{transform_indices = @transform_0, window_bounds = array<i64: 16, 32>}, {pipeline_mode = #tpu.pipeline_mode<synchronous>, transform_indices = @transform_1, window_bounds = array<i64: 32, 64>}, {pipeline_mode = #tpu.pipeline_mode<synchronous>, transform_indices = @transform_2, window_bounds = array<i64: 1, 64>}, {transform_indices = @transform_3, window_bounds = array<i64: 16, 64>}]} {
    %c0 = arith.constant 0 : index
    %c0_0 = arith.constant 0 : index
    %0 = vector.load %arg1[%c0, %c0_0] : memref<16x32xf32, #tpu.memory_space<vmem>>, vector<16x32xf32>
    %c0_1 = arith.constant 0 : index
    %c0_2 = arith.constant 0 : index
    %1 = vector.load %arg2[%c0_1, %c0_2] : memref<32x64xf32, #tpu.memory_space<vmem>>, vector<32x64xf32>
    %cst = arith.constant dense<0.000000e+00> : vector<16x64xf32>
    %2 = tpu.matmul %0, %1, %cst {dimension_numbers = #tpu.dot_dimension_numbers<[1], [0], [0], [1], [0, 0, 1, 1], [], []>} : vector<16x32xf32>, vector<32x64xf32>, vector<16x64xf32> -> vector<16x64xf32>
    %c0_3 = arith.constant 0 : index
    %c0_4 = arith.constant 0 : index
    %3 = vector.load %arg3[%c0_3, %c0_4] : memref<1x64xf32, #tpu.memory_space<vmem>>, vector<1x64xf32>
    %4 = vector.broadcast %3 : vector<1x64xf32> to vector<16x64xf32>
    %5 = arith.addf %2, %4 : vector<16x64xf32>
    %c0_5 = arith.constant 0 : index
    %c0_6 = arith.constant 0 : index
    %6 = vector.load %arg4[%c0_5, %c0_6] : memref<16x64xf32, #tpu.memory_space<vmem>>, vector<16x64xf32>
    tpu.vector_store %arg4[%c0_5, %c0_6], %5 {strides = array<i32>} : memref<16x64xf32, #tpu.memory_space<vmem>>, vector<16x64xf32>,
    return
  }
  func.func @transform_0(%arg0: i32) -> (i32, i32) {
    %c0_i32 = arith.constant 0 : i32
    %c0_i32_0 = arith.constant 0 : i32
    return %arg0, %c0_i32 : i32, i32
  }
  func.func @transform_1(%arg0: i32) -> (i32, i32) {
    %c0_i32 = arith.constant 0 : i32
    %c0_i32_0 = arith.constant 0 : i32
    %c0_i32_1 = arith.constant 0 : i32
    return %c0_i32, %c0_i32_0 : i32, i32
  }
  func.func @transform_2(%arg0: i32) -> (i32, i32) {
    %c0_i32 = arith.constant 0 : i32
    %c0_i32_0 = arith.constant 0 : i32
    %c0_i32_1 = arith.constant 0 : i32
    return %c0_i32, %c0_i32_0 : i32, i32
  }
  func.func @transform_3(%arg0: i32) -> (i32, i32) {
    %c0_i32 = arith.constant 0 : i32
    %c0_i32_0 = arith.constant 0 : i32
    return %arg0, %c0_i32 : i32, i32
  }
}

module attributes {stable_mosaic.version = 11 : i64} {
  func.func @_self_attn_kernel(%arg0: i32, %arg1: memref<1x8x96xf32, #tpu.memory_space<vmem>>, %arg2: memref<1x8x32xf32, #tpu.memory_space<vmem>>) attributes {dimension_semantics = [#tpu.dimension_semantics<parallel>], iteration_bounds = array<i64: 2>, scalar_prefetch = 0 : i64, scratch_operands = 0 : i64, tpu.core_type = #tpu.core_type<tc>, window_params = [{transform_indices = @transform_0, window_bounds = array<i64: 1, 8, 96>}, {transform_indices = @transform_1, window_bounds = array<i64: 1, 8, 32>}]} {
    %c0 = arith.constant 0 : index
    %c0_0 = arith.constant 0 : index
    %c0_1 = arith.constant 0 : index
    %0 = vector.load %arg1[%c0, %c0_0, %c0_1] : memref<1x8x96xf32, #tpu.memory_space<vmem>>, vector<1x8x96xf32>
    %1 = vector.shape_cast %0 : vector<1x8x96xf32> to vector<8x96xf32>
    %2 = vector.extract_strided_slice %1 {offsets = [0, 0], sizes = [8, 32], strides = [1, 1]} : vector<8x96xf32> to vector<8x32xf32>
    %3 = vector.extract_strided_slice %1 {offsets = [0, 32], sizes = [8, 32], strides = [1, 1]} : vector<8x96xf32> to vector<8x32xf32>
    %4 = vector.extract_strided_slice %1 {offsets = [0, 64], sizes = [8, 32], strides = [1, 1]} : vector<8x96xf32> to vector<8x32xf32>
    %5 = tpu.iota {dimensions = array<i32: 0>} : vector<8x8xi32>
    %6 = tpu.iota {dimensions = array<i32: 1>} : vector<8x8xi32>
    %7 = arith.cmpi sle, %6, %5 : vector<8x8xi32>
    %cst = arith.constant 0.000000e+00 : f32
    %cst_2 = arith.constant -1.000000e+09 : f32
    %8 = vector.broadcast %cst : f32 to vector<8x8xf32>
    %9 = vector.broadcast %cst_2 : f32 to vector<8x8xf32>
    %10 = arith.select %7, %8, %9 : vector<8x8xi1>, vector<8x8xf32>
    %11 = vector.extract_strided_slice %2 {offsets = [0, 0], sizes = [8, 8], strides = [1, 1]} : vector<8x32xf32> to vector<8x8xf32>
    %12 = vector.extract_strided_slice %3 {offsets = [0, 0], sizes = [8, 8], strides = [1, 1]} : vector<8x32xf32> to vector<8x8xf32>
    %cst_3 = arith.constant dense<0.000000e+00> : vector<8x8xf32>
    %13 = tpu.matmul %11, %12, %cst_3 {dimension_numbers = #tpu.dot_dimension_numbers<[1], [1], [0], [0], [0, 0, 1, 0], [], []>} : vector<8x8xf32>, vector<8x8xf32>, vector<8x8xf32> -> vector<8x8xf32>
    %cst_4 = arith.constant 0.353553385 : f32
    %14 = vector.broadcast %cst_4 : f32 to vector<8x8xf32>
    %15 = arith.mulf %13, %14 : vector<8x8xf32>
    %16 = arith.addf %15, %10 : vector<8x8xf32>
    %cst_5 = arith.constant dense<0xFF800000> : vector<8xf32>
    %17 = vector.multi_reduction <maximumf>, %16, %cst_5 [1] : vector<8x8xf32> to vector<8xf32>
    %18 = vector.shape_cast %17 : vector<8xf32> to vector<8x1xf32>
    %19 = vector.broadcast %18 : vector<8x1xf32> to vector<8x8xf32>
    %20 = arith.subf %16, %19 : vector<8x8xf32>
    %21 = math.exp %20 : vector<8x8xf32>
    %cst_6 = arith.constant dense<0.000000e+00> : vector<8xf32>
    %22 = vector.multi_reduction <add>, %21, %cst_6 [1] : vector<8x8xf32> to vector<8xf32>
    %23 = vector.shape_cast %22 : vector<8xf32> to vector<8x1xf32>
    %24 = tpu.reciprocal %23 {approx = true} : vector<8x1xf32> -> vector<8x1xf32>
    %25 = vector.broadcast %24 : vector<8x1xf32> to vector<8x8xf32>
    %26 = arith.mulf %21, %25 : vector<8x8xf32>
    %27 = vector.extract_strided_slice %4 {offsets = [0, 0], sizes = [8, 8], strides = [1, 1]} : vector<8x32xf32> to vector<8x8xf32>
    %cst_7 = arith.constant dense<0.000000e+00> : vector<8x8xf32>
    %28 = tpu.matmul %26, %27, %cst_7 {dimension_numbers = #tpu.dot_dimension_numbers<[1], [0], [0], [1], [0, 0, 1, 1], [], []>} : vector<8x8xf32>, vector<8x8xf32>, vector<8x8xf32> -> vector<8x8xf32>
    %c0_8 = arith.constant 0 : index
    %c0_9 = arith.constant 0 : index
    %c0_10 = arith.constant 0 : index
    %29 = vector.load %arg2[%c0_8, %c0_9, %c0_10] : memref<1x8x32xf32, #tpu.memory_space<vmem>>, vector<1x8x8xf32>
    %30 = vector.shape_cast %29 : vector<1x8x8xf32> to vector<8x8xf32>
    %31 = vector.shape_cast %28 : vector<8x8xf32> to vector<1x8x8xf32>
    tpu.vector_store %arg2[%c0_8, %c0_9, %c0_10], %31 {strides = array<i32>} : memref<1x8x32xf32, #tpu.memory_space<vmem>>, vector<1x8x8xf32>,
    %32 = vector.extract_strided_slice %2 {offsets = [0, 8], sizes = [8, 8], strides = [1, 1]} : vector<8x32xf32> to vector<8x8xf32>
    %33 = vector.extract_strided_slice %3 {offsets = [0, 8], sizes = [8, 8], strides = [1, 1]} : vector<8x32xf32> to vector<8x8xf32>
    %cst_11 = arith.constant dense<0.000000e+00> : vector<8x8xf32>
    %34 = tpu.matmul %32, %33, %cst_11 {dimension_numbers = #tpu.dot_dimension_numbers<[1], [1], [0], [0], [0, 0, 1, 0], [], []>} : vector<8x8xf32>, vector<8x8xf32>, vector<8x8xf32> -> vector<8x8xf32>
    %cst_12 = arith.constant 0.353553385 : f32
    %35 = vector.broadcast %cst_12 : f32 to vector<8x8xf32>
    %36 = arith.mulf %34, %35 : vector<8x8xf32>
    %37 = arith.addf %36, %10 : vector<8x8xf32>
    %cst_13 = arith.constant dense<0xFF800000> : vector<8xf32>
    %38 = vector.multi_reduction <maximumf>, %37, %cst_13 [1] : vector<8x8xf32> to vector<8xf32>
    %39 = vector.shape_cast %38 : vector<8xf32> to vector<8x1xf32>
    %40 = vector.broadcast %39 : vector<8x1xf32> to vector<8x8xf32>
    %41 = arith.subf %37, %40 : vector<8x8xf32>
    %42 = math.exp %41 : vector<8x8xf32>
    %cst_14 = arith.constant dense<0.000000e+00> : vector<8xf32>
    %43 = vector.multi_reduction <add>, %42, %cst_14 [1] : vector<8x8xf32> to vector<8xf32>
    %44 = vector.shape_cast %43 : vector<8xf32> to vector<8x1xf32>
    %45 = tpu.reciprocal %44 {approx = true} : vector<8x1xf32> -> vector<8x1xf32>
    %46 = vector.broadcast %45 : vector<8x1xf32> to vector<8x8xf32>
    %47 = arith.mulf %42, %46 : vector<8x8xf32>
    %48 = vector.extract_strided_slice %4 {offsets = [0, 8], sizes = [8, 8], strides = [1, 1]} : vector<8x32xf32> to vector<8x8xf32>
    %cst_15 = arith.constant dense<0.000000e+00> : vector<8x8xf32>
    %49 = tpu.matmul %47, %48, %cst_15 {dimension_numbers = #tpu.dot_dimension_numbers<[1], [0], [0], [1], [0, 0, 1, 1], [], []>} : vector<8x8xf32>, vector<8x8xf32>, vector<8x8xf32> -> vector<8x8xf32>
    %c0_16 = arith.constant 0 : index
    %c0_17 = arith.constant 0 : index
    %c8 = arith.constant 8 : index
    %50 = vector.load %arg2[%c0_16, %c0_17, %c8] : memref<1x8x32xf32, #tpu.memory_space<vmem>>, vector<1x8x8xf32>
    %51 = vector.shape_cast %50 : vector<1x8x8xf32> to vector<8x8xf32>
    %52 = vector.shape_cast %49 : vector<8x8xf32> to vector<1x8x8xf32>
    tpu.vector_store %arg2[%c0_16, %c0_17, %c8], %52 {strides = array<i32>} : memref<1x8x32xf32, #tpu.memory_space<vmem>>, vector<1x8x8xf32>,
    %53 = vector.extract_strided_slice %2 {offsets = [0, 16], sizes = [8, 8], strides = [1, 1]} : vector<8x32xf32> to vector<8x8xf32>
    %54 = vector.extract_strided_slice %3 {offsets = [0, 16], sizes = [8, 8], strides = [1, 1]} : vector<8x32xf32> to vector<8x8xf32>
    %cst_18 = arith.constant dense<0.000000e+00> : vector<8x8xf32>
    %55 = tpu.matmul %53, %54, %cst_18 {dimension_numbers = #tpu.dot_dimension_numbers<[1], [1], [0], [0], [0, 0, 1, 0], [], []>} : vector<8x8xf32>, vector<8x8xf32>, vector<8x8xf32> -> vector<8x8xf32>
    %cst_19 = arith.constant 0.353553385 : f32
    %56 = vector.broadcast %cst_19 : f32 to vector<8x8xf32>
    %57 = arith.mulf %55, %56 : vector<8x8xf32>
    %58 = arith.addf %57, %10 : vector<8x8xf32>
    %cst_20 = arith.constant dense<0xFF800000> : vector<8xf32>
    %59 = vector.multi_reduction <maximumf>, %58, %cst_20 [1] : vector<8x8xf32> to vector<8xf32>
    %60 = vector.shape_cast %59 : vector<8xf32> to vector<8x1xf32>
    %61 = vector.broadcast %60 : vector<8x1xf32> to vector<8x8xf32>
    %62 = arith.subf %58, %61 : vector<8x8xf32>
    %63 = math.exp %62 : vector<8x8xf32>
    %cst_21 = arith.constant dense<0.000000e+00> : vector<8xf32>
    %64 = vector.multi_reduction <add>, %63, %cst_21 [1] : vector<8x8xf32> to vector<8xf32>
    %65 = vector.shape_cast %64 : vector<8xf32> to vector<8x1xf32>
    %66 = tpu.reciprocal %65 {approx = true} : vector<8x1xf32> -> vector<8x1xf32>
    %67 = vector.broadcast %66 : vector<8x1xf32> to vector<8x8xf32>
    %68 = arith.mulf %63, %67 : vector<8x8xf32>
    %69 = vector.extract_strided_slice %4 {offsets = [0, 16], sizes = [8, 8], strides = [1, 1]} : vector<8x32xf32> to vector<8x8xf32>
    %cst_22 = arith.constant dense<0.000000e+00> : vector<8x8xf32>
    %70 = tpu.matmul %68, %69, %cst_22 {dimension_numbers = #tpu.dot_dimension_numbers<[1], [0], [0], [1], [0, 0, 1, 1], [], []>} : vector<8x8xf32>, vector<8x8xf32>, vector<8x8xf32> -> vector<8x8xf32>
    %c0_23 = arith.constant 0 : index
    %c0_24 = arith.constant 0 : index
    %c16 = arith.constant 16 : index
    %71 = vector.load %arg2[%c0_23, %c0_24, %c16] : memref<1x8x32xf32, #tpu.memory_space<vmem>>, vector<1x8x8xf32>
    %72 = vector.shape_cast %71 : vector<1x8x8xf32> to vector<8x8xf32>
    %73 = vector.shape_cast %70 : vector<8x8xf32> to vector<1x8x8xf32>
    tpu.vector_store %arg2[%c0_23, %c0_24, %c16], %73 {strides = array<i32>} : memref<1x8x32xf32, #tpu.memory_space<vmem>>, vector<1x8x8xf32>,
    %74 = vector.extract_strided_slice %2 {offsets = [0, 24], sizes = [8, 8], strides = [1, 1]} : vector<8x32xf32> to vector<8x8xf32>
    %75 = vector.extract_strided_slice %3 {offsets = [0, 24], sizes = [8, 8], strides = [1, 1]} : vector<8x32xf32> to vector<8x8xf32>
    %cst_25 = arith.constant dense<0.000000e+00> : vector<8x8xf32>
    %76 = tpu.matmul %74, %75, %cst_25 {dimension_numbers = #tpu.dot_dimension_numbers<[1], [1], [0], [0], [0, 0, 1, 0], [], []>} : vector<8x8xf32>, vector<8x8xf32>, vector<8x8xf32> -> vector<8x8xf32>
    %cst_26 = arith.constant 0.353553385 : f32
    %77 = vector.broadcast %cst_26 : f32 to vector<8x8xf32>
    %78 = arith.mulf %76, %77 : vector<8x8xf32>
    %79 = arith.addf %78, %10 : vector<8x8xf32>
    %cst_27 = arith.constant dense<0xFF800000> : vector<8xf32>
    %80 = vector.multi_reduction <maximumf>, %79, %cst_27 [1] : vector<8x8xf32> to vector<8xf32>
    %81 = vector.shape_cast %80 : vector<8xf32> to vector<8x1xf32>
    %82 = vector.broadcast %81 : vector<8x1xf32> to vector<8x8xf32>
    %83 = arith.subf %79, %82 : vector<8x8xf32>
    %84 = math.exp %83 : vector<8x8xf32>
    %cst_28 = arith.constant dense<0.000000e+00> : vector<8xf32>
    %85 = vector.multi_reduction <add>, %84, %cst_28 [1] : vector<8x8xf32> to vector<8xf32>
    %86 = vector.shape_cast %85 : vector<8xf32> to vector<8x1xf32>
    %87 = tpu.reciprocal %86 {approx = true} : vector<8x1xf32> -> vector<8x1xf32>
    %88 = vector.broadcast %87 : vector<8x1xf32> to vector<8x8xf32>
    %89 = arith.mulf %84, %88 : vector<8x8xf32>
    %90 = vector.extract_strided_slice %4 {offsets = [0, 24], sizes = [8, 8], strides = [1, 1]} : vector<8x32xf32> to vector<8x8xf32>
    %cst_29 = arith.constant dense<0.000000e+00> : vector<8x8xf32>
    %91 = tpu.matmul %89, %90, %cst_29 {dimension_numbers = #tpu.dot_dimension_numbers<[1], [0], [0], [1], [0, 0, 1, 1], [], []>} : vector<8x8xf32>, vector<8x8xf32>, vector<8x8xf32> -> vector<8x8xf32>
    %c0_30 = arith.constant 0 : index
    %c0_31 = arith.constant 0 : index
    %c24 = arith.constant 24 : index
    %92 = vector.load %arg2[%c0_30, %c0_31, %c24] : memref<1x8x32xf32, #tpu.memory_space<vmem>>, vector<1x8x8xf32>
    %93 = vector.shape_cast %92 : vector<1x8x8xf32> to vector<8x8xf32>
    %94 = vector.shape_cast %91 : vector<8x8xf32> to vector<1x8x8xf32>
    tpu.vector_store %arg2[%c0_30, %c0_31, %c24], %94 {strides = array<i32>} : memref<1x8x32xf32, #tpu.memory_space<vmem>>, vector<1x8x8xf32>,
    return
  }
  func.func @transform_0(%arg0: i32) -> (i32, i32, i32) {
    %c0_i32 = arith.constant 0 : i32
    %c0_i32_0 = arith.constant 0 : i32
    %c0_i32_1 = arith.constant 0 : i32
    return %arg0, %c0_i32, %c0_i32_0 : i32, i32, i32
  }
  func.func @transform_1(%arg0: i32) -> (i32, i32, i32) {
    %c0_i32 = arith.constant 0 : i32
    %c0_i32_0 = arith.constant 0 : i32
    %c0_i32_1 = arith.constant 0 : i32
    return %arg0, %c0_i32, %c0_i32_0 : i32, i32, i32
  }
}

module attributes {stable_mosaic.version = 11 : i64} {
  func.func @_ln_linear_kernel(%arg0: i32, %arg1: memref<16x32xf32, #tpu.memory_space<vmem>>, %arg2: memref<1x32xf32, #tpu.memory_space<vmem>>, %arg3: memref<1x32xf32, #tpu.memory_space<vmem>>, %arg4: memref<32x32xf32, #tpu.memory_space<vmem>>, %arg5: memref<1x32xf32, #tpu.memory_space<vmem>>, %arg6: memref<16x32xf32, #tpu.memory_space<vmem>>) attributes {dimension_semantics = [#tpu.dimension_semantics<parallel>], iteration_bounds = array<i64: 1>, scalar_prefetch = 0 : i64, scratch_operands = 0 : i64, tpu.core_type = #tpu.core_type<tc>, window_params = [{transform_indices = @transform_0, window_bounds = array<i64: 16, 32>}, {pipeline_mode = #tpu.pipeline_mode<synchronous>, transform_indices = @transform_1, window_bounds = array<i64: 1, 32>}, {pipeline_mode = #tpu.pipeline_mode<synchronous>, transform_indices = @transform_2, window_bounds = array<i64: 1, 32>}, {pipeline_mode = #tpu.pipeline_mode<synchronous>, transform_indices = @transform_3, window_bounds = array<i64: 32, 32>}, {pipeline_mode = #tpu.pipeline_mode<synchronous>, transform_indices = @transform_4, window_bounds = array<i64: 1, 32>}, {transform_indices = @transform_5, window_bounds = array<i64: 16, 32>}]} {
    %c0 = arith.constant 0 : index
    %c0_0 = arith.constant 0 : index
    %0 = vector.load %arg1[%c0, %c0_0] : memref<16x32xf32, #tpu.memory_space<vmem>>, vector<16x32xf32>
    %c0_1 = arith.constant 0 : index
    %c0_2 = arith.constant 0 : index
    %1 = vector.load %arg2[%c0_1, %c0_2] : memref<1x32xf32, #tpu.memory_space<vmem>>, vector<1x32xf32>
    %c0_3 = arith.constant 0 : index
    %c0_4 = arith.constant 0 : index
    %2 = vector.load %arg3[%c0_3, %c0_4] : memref<1x32xf32, #tpu.memory_space<vmem>>, vector<1x32xf32>
    %cst = arith.constant dense<0.000000e+00> : vector<16xf32>
    %3 = vector.multi_reduction <add>, %0, %cst [1] : vector<16x32xf32> to vector<16xf32>
    %4 = vector.shape_cast %3 : vector<16xf32> to vector<16x1xf32>
    %cst_5 = arith.constant 3.200000e+01 : f32
    %5 = vector.broadcast %cst_5 : f32 to vector<16x1xf32>
    %6 = arith.divf %4, %5 : vector<16x1xf32>
    %7 = vector.broadcast %6 : vector<16x1xf32> to vector<16x32xf32>
    %8 = arith.subf %0, %7 : vector<16x32xf32>
    %9 = arith.mulf %8, %8 : vector<16x32xf32>
    %cst_6 = arith.constant dense<0.000000e+00> : vector<16xf32>
    %10 = vector.multi_reduction <add>, %9, %cst_6 [1] : vector<16x32xf32> to vector<16xf32>
    %11 = vector.shape_cast %10 : vector<16xf32> to vector<16x1xf32>
    %cst_7 = arith.constant 3.200000e+01 : f32
    %12 = vector.broadcast %cst_7 : f32 to vector<16x1xf32>
    %13 = arith.divf %11, %12 : vector<16x1xf32>
    %14 = vector.broadcast %6 : vector<16x1xf32> to vector<16x32xf32>
    %15 = arith.subf %0, %14 : vector<16x32xf32>
    %cst_8 = arith.constant 9.99999974E-6 : f32
    %16 = vector.broadcast %cst_8 : f32 to vector<16x1xf32>
    %17 = arith.addf %13, %16 : vector<16x1xf32>
    %18 = math.rsqrt %17 : vector<16x1xf32>
    %19 = vector.broadcast %18 : vector<16x1xf32> to vector<16x32xf32>
    %20 = arith.mulf %15, %19 : vector<16x32xf32>
    %21 = vector.broadcast %1 : vector<1x32xf32> to vector<16x32xf32>
    %22 = arith.mulf %20, %21 : vector<16x32xf32>
    %23 = vector.broadcast %2 : vector<1x32xf32> to vector<16x32xf32>
    %24 = arith.addf %22, %23 : vector<16x32xf32>
    %c0_9 = arith.constant 0 : index
    %c0_10 = arith.constant 0 : index
    %25 = vector.load %arg4[%c0_9, %c0_10] : memref<32x32xf32, #tpu.memory_space<vmem>>, vector<32x32xf32>
    %cst_11 = arith.constant dense<0.000000e+00> : vector<16x32xf32>
    %26 = tpu.matmul %24, %25, %cst_11 {dimension_numbers = #tpu.dot_dimension_numbers<[1], [0], [0], [1], [0, 0, 1, 1], [], []>} : vector<16x32xf32>, vector<32x32xf32>, vector<16x32xf32> -> vector<16x32xf32>
    %c0_12 = arith.constant 0 : index
    %c0_13 = arith.constant 0 : index
    %27 = vector.load %arg5[%c0_12, %c0_13] : memref<1x32xf32, #tpu.memory_space<vmem>>, vector<1x32xf32>
    %28 = vector.broadcast %27 : vector<1x32xf32> to vector<16x32xf32>
    %29 = arith.addf %26, %28 : vector<16x32xf32>
    %c0_14 = arith.constant 0 : index
    %c0_15 = arith.constant 0 : index
    %30 = vector.load %arg6[%c0_14, %c0_15] : memref<16x32xf32, #tpu.memory_space<vmem>>, vector<16x32xf32>
    tpu.vector_store %arg6[%c0_14, %c0_15], %29 {strides = array<i32>} : memref<16x32xf32, #tpu.memory_space<vmem>>, vector<16x32xf32>,
    return
  }
  func.func @transform_0(%arg0: i32) -> (i32, i32) {
    %c0_i32 = arith.constant 0 : i32
    %c0_i32_0 = arith.constant 0 : i32
    return %arg0, %c0_i32 : i32, i32
  }
  func.func @transform_1(%arg0: i32) -> (i32, i32) {
    %c0_i32 = arith.constant 0 : i32
    %c0_i32_0 = arith.constant 0 : i32
    %c0_i32_1 = arith.constant 0 : i32
    return %c0_i32, %c0_i32_0 : i32, i32
  }
  func.func @transform_2(%arg0: i32) -> (i32, i32) {
    %c0_i32 = arith.constant 0 : i32
    %c0_i32_0 = arith.constant 0 : i32
    %c0_i32_1 = arith.constant 0 : i32
    return %c0_i32, %c0_i32_0 : i32, i32
  }
  func.func @transform_3(%arg0: i32) -> (i32, i32) {
    %c0_i32 = arith.constant 0 : i32
    %c0_i32_0 = arith.constant 0 : i32
    %c0_i32_1 = arith.constant 0 : i32
    return %c0_i32, %c0_i32_0 : i32, i32
  }
  func.func @transform_4(%arg0: i32) -> (i32, i32) {
    %c0_i32 = arith.constant 0 : i32
    %c0_i32_0 = arith.constant 0 : i32
    %c0_i32_1 = arith.constant 0 : i32
    return %c0_i32, %c0_i32_0 : i32, i32
  }
  func.func @transform_5(%arg0: i32) -> (i32, i32) {
    %c0_i32 = arith.constant 0 : i32
    %c0_i32_0 = arith.constant 0 : i32
    return %arg0, %c0_i32 : i32, i32
  }
}

module attributes {stable_mosaic.version = 11 : i64} {
  func.func @_cross_attn_kernel(%arg0: i32, %arg1: memref<1x8x32xf32, #tpu.memory_space<vmem>>, %arg2: memref<1x8x64xf32, #tpu.memory_space<vmem>>, %arg3: memref<1x8x32xf32, #tpu.memory_space<vmem>>) attributes {dimension_semantics = [#tpu.dimension_semantics<parallel>], iteration_bounds = array<i64: 2>, scalar_prefetch = 0 : i64, scratch_operands = 0 : i64, tpu.core_type = #tpu.core_type<tc>, window_params = [{transform_indices = @transform_0, window_bounds = array<i64: 1, 8, 32>}, {transform_indices = @transform_1, window_bounds = array<i64: 1, 8, 64>}, {transform_indices = @transform_2, window_bounds = array<i64: 1, 8, 32>}]} {
    %c0 = arith.constant 0 : index
    %c0_0 = arith.constant 0 : index
    %c0_1 = arith.constant 0 : index
    %0 = vector.load %arg1[%c0, %c0_0, %c0_1] : memref<1x8x32xf32, #tpu.memory_space<vmem>>, vector<1x8x32xf32>
    %1 = vector.shape_cast %0 : vector<1x8x32xf32> to vector<8x32xf32>
    %c0_2 = arith.constant 0 : index
    %c0_3 = arith.constant 0 : index
    %c0_4 = arith.constant 0 : index
    %2 = vector.load %arg2[%c0_2, %c0_3, %c0_4] : memref<1x8x64xf32, #tpu.memory_space<vmem>>, vector<1x8x64xf32>
    %3 = vector.shape_cast %2 : vector<1x8x64xf32> to vector<8x64xf32>
    %4 = vector.extract_strided_slice %3 {offsets = [0, 0], sizes = [8, 32], strides = [1, 1]} : vector<8x64xf32> to vector<8x32xf32>
    %5 = vector.extract_strided_slice %3 {offsets = [0, 32], sizes = [8, 32], strides = [1, 1]} : vector<8x64xf32> to vector<8x32xf32>
    %6 = vector.extract_strided_slice %1 {offsets = [0, 0], sizes = [8, 8], strides = [1, 1]} : vector<8x32xf32> to vector<8x8xf32>
    %7 = vector.extract_strided_slice %4 {offsets = [0, 0], sizes = [8, 8], strides = [1, 1]} : vector<8x32xf32> to vector<8x8xf32>
    %cst = arith.constant dense<0.000000e+00> : vector<8x8xf32>
    %8 = tpu.matmul %6, %7, %cst {dimension_numbers = #tpu.dot_dimension_numbers<[1], [1], [0], [0], [0, 0, 1, 0], [], []>} : vector<8x8xf32>, vector<8x8xf32>, vector<8x8xf32> -> vector<8x8xf32>
    %cst_5 = arith.constant 0.353553385 : f32
    %9 = vector.broadcast %cst_5 : f32 to vector<8x8xf32>
    %10 = arith.mulf %8, %9 : vector<8x8xf32>
    %cst_6 = arith.constant dense<0xFF800000> : vector<8xf32>
    %11 = vector.multi_reduction <maximumf>, %10, %cst_6 [1] : vector<8x8xf32> to vector<8xf32>
    %12 = vector.shape_cast %11 : vector<8xf32> to vector<8x1xf32>
    %13 = vector.broadcast %12 : vector<8x1xf32> to vector<8x8xf32>
    %14 = arith.subf %10, %13 : vector<8x8xf32>
    %15 = math.exp %14 : vector<8x8xf32>
    %cst_7 = arith.constant dense<0.000000e+00> : vector<8xf32>
    %16 = vector.multi_reduction <add>, %15, %cst_7 [1] : vector<8x8xf32> to vector<8xf32>
    %17 = vector.shape_cast %16 : vector<8xf32> to vector<8x1xf32>
    %18 = tpu.reciprocal %17 {approx = true} : vector<8x1xf32> -> vector<8x1xf32>
    %19 = vector.broadcast %18 : vector<8x1xf32> to vector<8x8xf32>
    %20 = arith.mulf %15, %19 : vector<8x8xf32>
    %21 = vector.extract_strided_slice %5 {offsets = [0, 0], sizes = [8, 8], strides = [1, 1]} : vector<8x32xf32> to vector<8x8xf32>
    %cst_8 = arith.constant dense<0.000000e+00> : vector<8x8xf32>
    %22 = tpu.matmul %20, %21, %cst_8 {dimension_numbers = #tpu.dot_dimension_numbers<[1], [0], [0], [1], [0, 0, 1, 1], [], []>} : vector<8x8xf32>, vector<8x8xf32>, vector<8x8xf32> -> vector<8x8xf32>
    %c0_9 = arith.constant 0 : index
    %c0_10 = arith.constant 0 : index
    %c0_11 = arith.constant 0 : index
    %23 = vector.load %arg3[%c0_9, %c0_10, %c0_11] : memref<1x8x32xf32, #tpu.memory_space<vmem>>, vector<1x8x8xf32>
    %24 = vector.shape_cast %23 : vector<1x8x8xf32> to vector<8x8xf32>
    %25 = vector.shape_cast %22 : vector<8x8xf32> to vector<1x8x8xf32>
    tpu.vector_store %arg3[%c0_9, %c0_10, %c0_11], %25 {strides = array<i32>} : memref<1x8x32xf32, #tpu.memory_space<vmem>>, vector<1x8x8xf32>,
    %26 = vector.extract_strided_slice %1 {offsets = [0, 8], sizes = [8, 8], strides = [1, 1]} : vector<8x32xf32> to vector<8x8xf32>
    %27 = vector.extract_strided_slice %4 {offsets = [0, 8], sizes = [8, 8], strides = [1, 1]} : vector<8x32xf32> to vector<8x8xf32>
    %cst_12 = arith.constant dense<0.000000e+00> : vector<8x8xf32>
    %28 = tpu.matmul %26, %27, %cst_12 {dimension_numbers = #tpu.dot_dimension_numbers<[1], [1], [0], [0], [0, 0, 1, 0], [], []>} : vector<8x8xf32>, vector<8x8xf32>, vector<8x8xf32> -> vector<8x8xf32>
    %cst_13 = arith.constant 0.353553385 : f32
    %29 = vector.broadcast %cst_13 : f32 to vector<8x8xf32>
    %30 = arith.mulf %28, %29 : vector<8x8xf32>
    %cst_14 = arith.constant dense<0xFF800000> : vector<8xf32>
    %31 = vector.multi_reduction <maximumf>, %30, %cst_14 [1] : vector<8x8xf32> to vector<8xf32>
    %32 = vector.shape_cast %31 : vector<8xf32> to vector<8x1xf32>
    %33 = vector.broadcast %32 : vector<8x1xf32> to vector<8x8xf32>
    %34 = arith.subf %30, %33 : vector<8x8xf32>
    %35 = math.exp %34 : vector<8x8xf32>
    %cst_15 = arith.constant dense<0.000000e+00> : vector<8xf32>
    %36 = vector.multi_reduction <add>, %35, %cst_15 [1] : vector<8x8xf32> to vector<8xf32>
    %37 = vector.shape_cast %36 : vector<8xf32> to vector<8x1xf32>
    %38 = tpu.reciprocal %37 {approx = true} : vector<8x1xf32> -> vector<8x1xf32>
    %39 = vector.broadcast %38 : vector<8x1xf32> to vector<8x8xf32>
    %40 = arith.mulf %35, %39 : vector<8x8xf32>
    %41 = vector.extract_strided_slice %5 {offsets = [0, 8], sizes = [8, 8], strides = [1, 1]} : vector<8x32xf32> to vector<8x8xf32>
    %cst_16 = arith.constant dense<0.000000e+00> : vector<8x8xf32>
    %42 = tpu.matmul %40, %41, %cst_16 {dimension_numbers = #tpu.dot_dimension_numbers<[1], [0], [0], [1], [0, 0, 1, 1], [], []>} : vector<8x8xf32>, vector<8x8xf32>, vector<8x8xf32> -> vector<8x8xf32>
    %c0_17 = arith.constant 0 : index
    %c0_18 = arith.constant 0 : index
    %c8 = arith.constant 8 : index
    %43 = vector.load %arg3[%c0_17, %c0_18, %c8] : memref<1x8x32xf32, #tpu.memory_space<vmem>>, vector<1x8x8xf32>
    %44 = vector.shape_cast %43 : vector<1x8x8xf32> to vector<8x8xf32>
    %45 = vector.shape_cast %42 : vector<8x8xf32> to vector<1x8x8xf32>
    tpu.vector_store %arg3[%c0_17, %c0_18, %c8], %45 {strides = array<i32>} : memref<1x8x32xf32, #tpu.memory_space<vmem>>, vector<1x8x8xf32>,
    %46 = vector.extract_strided_slice %1 {offsets = [0, 16], sizes = [8, 8], strides = [1, 1]} : vector<8x32xf32> to vector<8x8xf32>
    %47 = vector.extract_strided_slice %4 {offsets = [0, 16], sizes = [8, 8], strides = [1, 1]} : vector<8x32xf32> to vector<8x8xf32>
    %cst_19 = arith.constant dense<0.000000e+00> : vector<8x8xf32>
    %48 = tpu.matmul %46, %47, %cst_19 {dimension_numbers = #tpu.dot_dimension_numbers<[1], [1], [0], [0], [0, 0, 1, 0], [], []>} : vector<8x8xf32>, vector<8x8xf32>, vector<8x8xf32> -> vector<8x8xf32>
    %cst_20 = arith.constant 0.353553385 : f32
    %49 = vector.broadcast %cst_20 : f32 to vector<8x8xf32>
    %50 = arith.mulf %48, %49 : vector<8x8xf32>
    %cst_21 = arith.constant dense<0xFF800000> : vector<8xf32>
    %51 = vector.multi_reduction <maximumf>, %50, %cst_21 [1] : vector<8x8xf32> to vector<8xf32>
    %52 = vector.shape_cast %51 : vector<8xf32> to vector<8x1xf32>
    %53 = vector.broadcast %52 : vector<8x1xf32> to vector<8x8xf32>
    %54 = arith.subf %50, %53 : vector<8x8xf32>
    %55 = math.exp %54 : vector<8x8xf32>
    %cst_22 = arith.constant dense<0.000000e+00> : vector<8xf32>
    %56 = vector.multi_reduction <add>, %55, %cst_22 [1] : vector<8x8xf32> to vector<8xf32>
    %57 = vector.shape_cast %56 : vector<8xf32> to vector<8x1xf32>
    %58 = tpu.reciprocal %57 {approx = true} : vector<8x1xf32> -> vector<8x1xf32>
    %59 = vector.broadcast %58 : vector<8x1xf32> to vector<8x8xf32>
    %60 = arith.mulf %55, %59 : vector<8x8xf32>
    %61 = vector.extract_strided_slice %5 {offsets = [0, 16], sizes = [8, 8], strides = [1, 1]} : vector<8x32xf32> to vector<8x8xf32>
    %cst_23 = arith.constant dense<0.000000e+00> : vector<8x8xf32>
    %62 = tpu.matmul %60, %61, %cst_23 {dimension_numbers = #tpu.dot_dimension_numbers<[1], [0], [0], [1], [0, 0, 1, 1], [], []>} : vector<8x8xf32>, vector<8x8xf32>, vector<8x8xf32> -> vector<8x8xf32>
    %c0_24 = arith.constant 0 : index
    %c0_25 = arith.constant 0 : index
    %c16 = arith.constant 16 : index
    %63 = vector.load %arg3[%c0_24, %c0_25, %c16] : memref<1x8x32xf32, #tpu.memory_space<vmem>>, vector<1x8x8xf32>
    %64 = vector.shape_cast %63 : vector<1x8x8xf32> to vector<8x8xf32>
    %65 = vector.shape_cast %62 : vector<8x8xf32> to vector<1x8x8xf32>
    tpu.vector_store %arg3[%c0_24, %c0_25, %c16], %65 {strides = array<i32>} : memref<1x8x32xf32, #tpu.memory_space<vmem>>, vector<1x8x8xf32>,
    %66 = vector.extract_strided_slice %1 {offsets = [0, 24], sizes = [8, 8], strides = [1, 1]} : vector<8x32xf32> to vector<8x8xf32>
    %67 = vector.extract_strided_slice %4 {offsets = [0, 24], sizes = [8, 8], strides = [1, 1]} : vector<8x32xf32> to vector<8x8xf32>
    %cst_26 = arith.constant dense<0.000000e+00> : vector<8x8xf32>
    %68 = tpu.matmul %66, %67, %cst_26 {dimension_numbers = #tpu.dot_dimension_numbers<[1], [1], [0], [0], [0, 0, 1, 0], [], []>} : vector<8x8xf32>, vector<8x8xf32>, vector<8x8xf32> -> vector<8x8xf32>
    %cst_27 = arith.constant 0.353553385 : f32
    %69 = vector.broadcast %cst_27 : f32 to vector<8x8xf32>
    %70 = arith.mulf %68, %69 : vector<8x8xf32>
    %cst_28 = arith.constant dense<0xFF800000> : vector<8xf32>
    %71 = vector.multi_reduction <maximumf>, %70, %cst_28 [1] : vector<8x8xf32> to vector<8xf32>
    %72 = vector.shape_cast %71 : vector<8xf32> to vector<8x1xf32>
    %73 = vector.broadcast %72 : vector<8x1xf32> to vector<8x8xf32>
    %74 = arith.subf %70, %73 : vector<8x8xf32>
    %75 = math.exp %74 : vector<8x8xf32>
    %cst_29 = arith.constant dense<0.000000e+00> : vector<8xf32>
    %76 = vector.multi_reduction <add>, %75, %cst_29 [1] : vector<8x8xf32> to vector<8xf32>
    %77 = vector.shape_cast %76 : vector<8xf32> to vector<8x1xf32>
    %78 = tpu.reciprocal %77 {approx = true} : vector<8x1xf32> -> vector<8x1xf32>
    %79 = vector.broadcast %78 : vector<8x1xf32> to vector<8x8xf32>
    %80 = arith.mulf %75, %79 : vector<8x8xf32>
    %81 = vector.extract_strided_slice %5 {offsets = [0, 24], sizes = [8, 8], strides = [1, 1]} : vector<8x32xf32> to vector<8x8xf32>
    %cst_30 = arith.constant dense<0.000000e+00> : vector<8x8xf32>
    %82 = tpu.matmul %80, %81, %cst_30 {dimension_numbers = #tpu.dot_dimension_numbers<[1], [0], [0], [1], [0, 0, 1, 1], [], []>} : vector<8x8xf32>, vector<8x8xf32>, vector<8x8xf32> -> vector<8x8xf32>
    %c0_31 = arith.constant 0 : index
    %c0_32 = arith.constant 0 : index
    %c24 = arith.constant 24 : index
    %83 = vector.load %arg3[%c0_31, %c0_32, %c24] : memref<1x8x32xf32, #tpu.memory_space<vmem>>, vector<1x8x8xf32>
    %84 = vector.shape_cast %83 : vector<1x8x8xf32> to vector<8x8xf32>
    %85 = vector.shape_cast %82 : vector<8x8xf32> to vector<1x8x8xf32>
    tpu.vector_store %arg3[%c0_31, %c0_32, %c24], %85 {strides = array<i32>} : memref<1x8x32xf32, #tpu.memory_space<vmem>>, vector<1x8x8xf32>,
    return
  }
  func.func @transform_0(%arg0: i32) -> (i32, i32, i32) {
    %c0_i32 = arith.constant 0 : i32
    %c0_i32_0 = arith.constant 0 : i32
    %c0_i32_1 = arith.constant 0 : i32
    return %arg0, %c0_i32, %c0_i32_0 : i32, i32, i32
  }
  func.func @transform_1(%arg0: i32) -> (i32, i32, i32) {
    %c0_i32 = arith.constant 0 : i32
    %c0_i32_0 = arith.constant 0 : i32
    %c0_i32_1 = arith.constant 0 : i32
    return %arg0, %c0_i32, %c0_i32_0 : i32, i32, i32
  }
  func.func @transform_2(%arg0: i32) -> (i32, i32, i32) {
    %c0_i32 = arith.constant 0 : i32
    %c0_i32_0 = arith.constant 0 : i32
    %c0_i32_1 = arith.constant 0 : i32
    return %arg0, %c0_i32, %c0_i32_0 : i32, i32, i32
  }
}

module attributes {stable_mosaic.version = 11 : i64} {
  func.func @_ln_linear_softmax_kernel(%arg0: i32, %arg1: memref<16x32xf32, #tpu.memory_space<vmem>>, %arg2: memref<1x32xf32, #tpu.memory_space<vmem>>, %arg3: memref<1x32xf32, #tpu.memory_space<vmem>>, %arg4: memref<32x11xf32, #tpu.memory_space<vmem>>, %arg5: memref<1x11xf32, #tpu.memory_space<vmem>>, %arg6: memref<16x11xf32, #tpu.memory_space<vmem>>, %arg7: memref<16x11xf32, #tpu.memory_space<vmem>>) attributes {dimension_semantics = [#tpu.dimension_semantics<parallel>], iteration_bounds = array<i64: 1>, scalar_prefetch = 0 : i64, scratch_operands = 0 : i64, tpu.core_type = #tpu.core_type<tc>, window_params = [{transform_indices = @transform_0, window_bounds = array<i64: 16, 32>}, {pipeline_mode = #tpu.pipeline_mode<synchronous>, transform_indices = @transform_1, window_bounds = array<i64: 1, 32>}, {pipeline_mode = #tpu.pipeline_mode<synchronous>, transform_indices = @transform_2, window_bounds = array<i64: 1, 32>}, {pipeline_mode = #tpu.pipeline_mode<synchronous>, transform_indices = @transform_3, window_bounds = array<i64: 32, 11>}, {pipeline_mode = #tpu.pipeline_mode<synchronous>, transform_indices = @transform_4, window_bounds = array<i64: 1, 11>}, {transform_indices = @transform_5, window_bounds = array<i64: 16, 11>}, {transform_indices = @transform_6, window_bounds = array<i64: 16, 11>}]} {
    %c0 = arith.constant 0 : index
    %c0_0 = arith.constant 0 : index
    %0 = vector.load %arg1[%c0, %c0_0] : memref<16x32xf32, #tpu.memory_space<vmem>>, vector<16x32xf32>
    %c0_1 = arith.constant 0 : index
    %c0_2 = arith.constant 0 : index
    %1 = vector.load %arg2[%c0_1, %c0_2] : memref<1x32xf32, #tpu.memory_space<vmem>>, vector<1x32xf32>
    %c0_3 = arith.constant 0 : index
    %c0_4 = arith.constant 0 : index
    %2 = vector.load %arg3[%c0_3, %c0_4] : memref<1x32xf32, #tpu.memory_space<vmem>>, vector<1x32xf32>
    %cst = arith.constant dense<0.000000e+00> : vector<16xf32>
    %3 = vector.multi_reduction <add>, %0, %cst [1] : vector<16x32xf32> to vector<16xf32>
    %4 = vector.shape_cast %3 : vector<16xf32> to vector<16x1xf32>
    %cst_5 = arith.constant 3.200000e+01 : f32
    %5 = vector.broadcast %cst_5 : f32 to vector<16x1xf32>
    %6 = arith.divf %4, %5 : vector<16x1xf32>
    %7 = vector.broadcast %6 : vector<16x1xf32> to vector<16x32xf32>
    %8 = arith.subf %0, %7 : vector<16x32xf32>
    %9 = arith.mulf %8, %8 : vector<16x32xf32>
    %cst_6 = arith.constant dense<0.000000e+00> : vector<16xf32>
    %10 = vector.multi_reduction <add>, %9, %cst_6 [1] : vector<16x32xf32> to vector<16xf32>
    %11 = vector.shape_cast %10 : vector<16xf32> to vector<16x1xf32>
    %cst_7 = arith.constant 3.200000e+01 : f32
    %12 = vector.broadcast %cst_7 : f32 to vector<16x1xf32>
    %13 = arith.divf %11, %12 : vector<16x1xf32>
    %14 = vector.broadcast %6 : vector<16x1xf32> to vector<16x32xf32>
    %15 = arith.subf %0, %14 : vector<16x32xf32>
    %cst_8 = arith.constant 9.99999974E-6 : f32
    %16 = vector.broadcast %cst_8 : f32 to vector<16x1xf32>
    %17 = arith.addf %13, %16 : vector<16x1xf32>
    %18 = math.rsqrt %17 : vector<16x1xf32>
    %19 = vector.broadcast %18 : vector<16x1xf32> to vector<16x32xf32>
    %20 = arith.mulf %15, %19 : vector<16x32xf32>
    %21 = vector.broadcast %1 : vector<1x32xf32> to vector<16x32xf32>
    %22 = arith.mulf %20, %21 : vector<16x32xf32>
    %23 = vector.broadcast %2 : vector<1x32xf32> to vector<16x32xf32>
    %24 = arith.addf %22, %23 : vector<16x32xf32>
    %c0_9 = arith.constant 0 : index
    %c0_10 = arith.constant 0 : index
    %25 = vector.load %arg4[%c0_9, %c0_10] : memref<32x11xf32, #tpu.memory_space<vmem>>, vector<32x11xf32>
    %cst_11 = arith.constant dense<0.000000e+00> : vector<16x11xf32>
    %26 = tpu.matmul %24, %25, %cst_11 {dimension_numbers = #tpu.dot_dimension_numbers<[1], [0], [0], [1], [0, 0, 1, 1], [], []>} : vector<16x32xf32>, vector<32x11xf32>, vector<16x11xf32> -> vector<16x11xf32>
    %c0_12 = arith.constant 0 : index
    %c0_13 = arith.constant 0 : index
    %27 = vector.load %arg5[%c0_12, %c0_13] : memref<1x11xf32, #tpu.memory_space<vmem>>, vector<1x11xf32>
    %28 = vector.broadcast %27 : vector<1x11xf32> to vector<16x11xf32>
    %29 = arith.addf %26, %28 : vector<16x11xf32>
    %c0_14 = arith.constant 0 : index
    %c0_15 = arith.constant 0 : index
    %30 = vector.load %arg6[%c0_14, %c0_15] : memref<16x11xf32, #tpu.memory_space<vmem>>, vector<16x11xf32>
    tpu.vector_store %arg6[%c0_14, %c0_15], %29 {strides = array<i32>} : memref<16x11xf32, #tpu.memory_space<vmem>>, vector<16x11xf32>,
    %cst_16 = arith.constant dense<0xFF800000> : vector<16xf32>
    %31 = vector.multi_reduction <maximumf>, %29, %cst_16 [1] : vector<16x11xf32> to vector<16xf32>
    %32 = vector.shape_cast %31 : vector<16xf32> to vector<16x1xf32>
    %33 = vector.broadcast %32 : vector<16x1xf32> to vector<16x11xf32>
    %34 = arith.subf %29, %33 : vector<16x11xf32>
    %35 = math.exp %34 : vector<16x11xf32>
    %cst_17 = arith.constant dense<0.000000e+00> : vector<16xf32>
    %36 = vector.multi_reduction <add>, %35, %cst_17 [1] : vector<16x11xf32> to vector<16xf32>
    %37 = vector.shape_cast %36 : vector<16xf32> to vector<16x1xf32>
    %38 = vector.broadcast %37 : vector<16x1xf32> to vector<16x11xf32>
    %39 = arith.divf %35, %38 : vector<16x11xf32>
    %c0_18 = arith.constant 0 : index
    %c0_19 = arith.constant 0 : index
    %40 = vector.load %arg7[%c0_18, %c0_19] : memref<16x11xf32, #tpu.memory_space<vmem>>, vector<16x11xf32>
    tpu.vector_store %arg7[%c0_18, %c0_19], %39 {strides = array<i32>} : memref<16x11xf32, #tpu.memory_space<vmem>>, vector<16x11xf32>,
    return
  }
  func.func @transform_0(%arg0: i32) -> (i32, i32) {
    %c0_i32 = arith.constant 0 : i32
    %c0_i32_0 = arith.constant 0 : i32
    return %arg0, %c0_i32 : i32, i32
  }
  func.func @transform_1(%arg0: i32) -> (i32, i32) {
    %c0_i32 = arith.constant 0 : i32
    %c0_i32_0 = arith.constant 0 : i32
    %c0_i32_1 = arith.constant 0 : i32
    return %c0_i32, %c0_i32_0 : i32, i32
  }
  func.func @transform_2(%arg0: i32) -> (i32, i32) {
    %c0_i32 = arith.constant 0 : i32
    %c0_i32_0 = arith.constant 0 : i32
    %c0_i32_1 = arith.constant 0 : i32
    return %c0_i32, %c0_i32_0 : i32, i32
  }
  func.func @transform_3(%arg0: i32) -> (i32, i32) {
    %c0_i32 = arith.constant 0 : i32
    %c0_i32_0 = arith.constant 0 : i32
    %c0_i32_1 = arith.constant 0 : i32
    return %c0_i32, %c0_i32_0 : i32, i32
  }
  func.func @transform_4(%arg0: i32) -> (i32, i32) {
    %c0_i32 = arith.constant 0 : i32
    %c0_i32_0 = arith.constant 0 : i32
    %c0_i32_1 = arith.constant 0 : i32
    return %c0_i32, %c0_i32_0 : i32, i32
  }
  func.func @transform_5(%arg0: i32) -> (i32, i32) {
    %c0_i32 = arith.constant 0 : i32
    %c0_i32_0 = arith.constant 0 : i32
    return %arg0, %c0_i32 : i32, i32
  }
  func.func @transform_6(%arg0: i32) -> (i32, i32) {
    %c0_i32 = arith.constant 0 : i32
    %c0_i32_0 = arith.constant 0 : i32
    return %arg0, %c0_i32 : i32, i32
  }
}

</mosaic_0001>

<bundles_post_ra>
// kernel: transformer_forward.28
= control target key start
LH: loop header
LB: loop body
LE: loop exit
PB: predicated region body
PF: predicated region fallthrough
CT: control target
= control target key end

     0   :  { %vm24_vm0 = vcmask 261120   ;;  %vm160_vm1 = vcmask 785408   ;;  %s270_s0 = inlined_call_operand.vmem [shape: f32[16,32], index: 0, kind: input, shape index: {}]   ;;  %s271_s3 = inlined_call_operand.vmem [shape: f32[32,96], index: 3, kind: input, shape index: {}]   ;;  %s272_s1 = inlined_call_operand.vmem [shape: f32[1,32], index: 1, kind: input, shape index: {}]   ;;  %s273_s2 = inlined_call_operand.vmem [shape: f32[1,32], index: 2, kind: input, shape index: {}]   ;;  %s274_s4 = inlined_call_operand.vmem [shape: f32[1,96], index: 4, kind: input, shape index: {}]   ;;  %s275_s5 = inlined_call_operand.vmem [shape: f32[16,96], index: 5, kind: output, shape index: {}]  }
   0x1   :  { %v20_v0 = vld [vmem:[%s270_s0] sm:$0xff]  ;;  %v21_v1 = vld [vmem:[%s270_s0 + $0x8] sm:$0xff]  ;;  %v70_v16 = vld [vmem:[%s271_s3 + $0x10] sm:$0xff] }
   0x2   :  { %v25_v2 = vsel %vm24_vm0, %v20_v0, 0.0  ;;  %v28_v3 = vsel %vm24_vm0, %v21_v1, 0.0  ;;  %v68_v14 = vld [vmem:[%s271_s3] sm:$0xff]  ;;  %v69_v15 = vld [vmem:[%s271_s3 + $0x8] sm:$0xff]  ;;  %v71_v18 = vld [vmem:[%s271_s3 + $0x18] sm:$0xff] }
   0x3   :  { %26 = vadd.xlane.f32.xlu0 %v25_v2  ;;  %v189_v17 = vpack.c.bf16 %v69_v15, %v68_v14  ;;  %v193_v19 = vpack.c.bf16 %v71_v18, %v70_v16  ;;  %v167_v27 = vld [vmem:[%s272_s1] ss:$0 sm:$0xff] }
   0x4   :  { %v168_v29 = vld [vmem:[%s273_s2] ss:$0 sm:$0xff] }
   0x5   :  { %190 = vmatprep.subr.bf16.mxu0 %v189_v17  ;;  %v169_v36 = vld [vmem:[%s274_s4] ss:$0 sm:$0xff] }
   0x6   :  { %192 = vmatpush3.bf16.msra.mxu0 %v189_v17 }
   0x7   :  { %29 = vadd.xlane.f32.xlu0 %v28_v3  ;;  %194 = vmatprep.subr.bf16.mxu0 %v193_v19 }
   0xa   :  { %196 = vmatpush3.bf16.msra.mxu0 %v193_v19 }
  0x90   :  { %v27_v4 = vpop.xlane.xlu0 %26 }
  0x91   :  { %v32_v5 = vmul.f32 0.03125, %v27_v4 }
  0x93   :  { %v34_v6 = vsub.f32 %v20_v0, %v32_v5 }
  0x94   :  { %v30_v7 = vpop.xlane.xlu0 %29 }
  0x95   :  { %v33_v8 = vmul.f32 0.03125, %v30_v7  ;;  %v36_v9 = vmul.f32 %v34_v6, %v34_v6 }
  0x97   :  { %v35_v10 = vsub.f32 %v21_v1, %v33_v8  ;;  %v38_v11 = vsel %vm24_vm0, %v36_v9, 0.0 }
  0x98   :  { %39 = vadd.xlane.f32.xlu1 %v38_v11 }
  0x99   :  { %v37_v12 = vmul.f32 %v35_v10, %v35_v10 }
  0x9b   :  { %v41_v13 = vsel %vm24_vm0, %v37_v12, 0.0 }
  0x9c   :  { %42 = vadd.xlane.f32.xlu1 %v41_v13 }
 0x125   :  { %v40_v20 = vpop.xlane.xlu1 %39 }
 0x126   :  { %v44_v21 = vmul.f32 0.03125, %v40_v20 }
 0x128   :  { %v46_v22 = vadd.f32 1e-05, %v44_v21 }
 0x129   :  { %v43_v23 = vpop.xlane.xlu1 %42 }
 0x12a   :  { %197 = vrsqrt.f32 %v46_v22  ;;  %v45_v24 = vmul.f32 0.03125, %v43_v23 }
 0x12c   :  { %v47_v25 = vadd.f32 1e-05, %v45_v24 }
 0x12e   :  { %199 = vrsqrt.f32 %v47_v25 }
 0x134   :  { %v198_v26 = vpop.eup %197 }
 0x135   :  { %v50_v28 = vmul.f32 %v198_v26, %v34_v6 }
 0x137   :  { %v58_v30 = vmul.f32 %v167_v27, %v50_v28 }
 0x138   :  { %v200_v31 = vpop.eup %199 }
 0x139   :  { %v51_v32 = vmul.f32 %v200_v31, %v35_v10  ;;  %v66_v33 = vadd.f32 %v168_v29, %v58_v30 }
 0x13b   :  { %v59_v34 = vmul.f32 %v167_v27, %v51_v32  ;;  %186 = vmatprep.mubr.msk.f32.mxu0 %vm24_vm0, %v66_v33 }
 0x13d   :  { %v67_v35 = vadd.f32 %v168_v29, %v59_v34 }
 0x13f   :  { %187 = vmatmul.mubr.msk.f32.vlgmr.msra.gmra.mrb[0].mxu0 %vm24_vm0, %v67_v35 }
 0x212   :  { %v188_v37 = vpop.f32.mrb[0].mxu0 }
 0x213   :  { %v157_v38 = vadd.f32 %v188_v37, %v169_v36  ;;  %v151_v39 = vpop.f32.mrb[1].mxu0 }
 0x214   :  { %v152_v40 = vadd.f32 %v169_v36, %v151_v39 }
 0x215   :  { %162 = vst.msk [vmem:[%s275_s5 + $0x8] sm:$0xff] %vm160_vm1, %v157_v38 }
 0x216   :  { %161 = vst.msk [vmem:[%s275_s5] sm:$0xff] %vm160_vm1, %v152_v40 }

// kernel: transformer_forward.27
= control target key start
LH: loop header
LB: loop body
LE: loop exit
PB: predicated region body
PF: predicated region fallthrough
CT: control target
= control target key end

     0   :  { %vm25_vm0 = vcmask 130048   ;;  %vm107_vm1 = vcmask 261120   ;;  %s173_s1 = inlined_call_operand.vmem [shape: f32[16,32], index: 1, kind: input, shape index: {}]   ;;  %s174_s0 = inlined_call_operand.vmem [shape: f32[16,16], index: 0, kind: input, shape index: {}]   ;;  %s175_s2 = inlined_call_operand.vmem [shape: f32[1,32], index: 2, kind: input, shape index: {}]   ;;  %s176_s3 = inlined_call_operand.vmem [shape: f32[16,32], index: 3, kind: output, shape index: {}]  }
   0x1   :  { %v16_v0 = vld [vmem:[%s173_s1] sm:$0xff]  ;;  %v17_v1 = vld [vmem:[%s173_s1 + $0x8] sm:$0xff] }
   0x2   :  { %v14_v2 = vld [vmem:[%s174_s0] sm:$0xff]  ;;  %v128_v3 = vpack.c.bf16 %v17_v1, %v16_v0  ;;  %v15_v4 = vld [vmem:[%s174_s0 + $0x8] sm:$0xff] }
   0x3   :  { %125 = vmatprep.mubr.msk.f32.mxu0 %vm25_vm0, %v14_v2  ;;  %v114_v5 = vld [vmem:[%s175_s2] ss:$0 sm:$0xff] }
   0x4   :  { %129 = vmatprep.subr.bf16.mxu0 %v128_v3 }
   0x5   :  { %131 = vmatpush3.bf16.msra.mxu0 %v128_v3 }
   0x8   :  { %126 = vmatmul.mubr.msk.f32.vlgmr.msra.gmra.mrb[0].mxu0 %vm25_vm0, %v15_v4 }
  0xdb   :  { %v127_v6 = vpop.f32.mrb[0].mxu0 }
  0xdc   :  { %v104_v7 = vadd.f32 %v127_v6, %v114_v5  ;;  %v98_v8 = vpop.f32.mrb[1].mxu0 }
  0xdd   :  { %v99_v9 = vadd.f32 %v114_v5, %v98_v8 }
  0xde   :  { %109 = vst.msk [vmem:[%s176_s3 + $0x8] sm:$0xff] %vm107_vm1, %v104_v7 }
  0xdf   :  { %108 = vst.msk [vmem:[%s176_s3] sm:$0xff] %vm107_vm1, %v99_v9 }

// kernel: transformer_forward.29
= control target key start
LH: loop header
LB: loop body
LE: loop exit
PB: predicated region body
PF: predicated region fallthrough
CT: control target
= control target key end

     0   :  { %s1000_s6 = smov 0   ;;  %s1089_s0 = inlined_call_operand.vmem [shape: f32[2,8,96], index: 0, kind: input, shape index: {}]   ;;  %s1090_s1 = inlined_call_operand.vmem [shape: f32[2,8,32], index: 1, kind: output, shape index: {}]  }
   0x1 LB: > { %s849_s7 = sadd.s32 4294967295, %s972_s6   ;;  %p853_p0 = scmp.ge.s32.totalorder %s972_s6, 1  ;;  %s972_s6 = sphi %s1000_s6, %s11_s6  }
   0x2   : > { %p86_p1 = scmp.lt.s32.totalorder %s972_s6, 3 }
   0x4   : > { %p87_p2 = pnand %p853_p0, %p86_p1 }
   0x5   : > { %p104_p3 = scmp.lt.s32.totalorder (!%p87_p2), %s849_s7, 1  ;;  %v974_v0 = vmov (!%p87_p2), 0.0   ;;  %vm975_vm0 = vmmov (!%p87_p2), 0   ;;  %s976_s12 = smov (!%p87_p2), 96   ;;  %vm116_vm1 = vcmask (!%p87_p2), 64512   ;;  %vm450_vm2 = vcmask (!%p87_p2), 130112  }
   0x6   : > { %90 = sbr.rel (%p87_p2) target bundleno = 1531 (0x5fb), region = 24  ;;  %886 = vmatprep.subr.mxu0 (!%p87_p2), %v974_v0  ;;  %888 = vmatprep.mubr.msk.f32.mxu0 (!%p87_p2), %vm975_vm0, %v974_v0  ;;  %s977_s13 = smov (!%p87_p2), 64   ;;  %vm622_vm3 = vcmask (!%p87_p2), 195712   ;;  %vm794_vm4 = vcmask (!%p87_p2), 261312  }
   0x7   : > { %891 = vmatprep.subr.mxu1 (!%p87_p2), %v974_v0  ;;  %893 = vmatprep.mubr.msk.f32.mxu1 (!%p87_p2), %vm975_vm0, %v974_v0  ;;  %s978_s14 = smov (!%p87_p2), 88   ;;  %s979_s15 = smov (!%p87_p2), 120  }
   0x8   : > { %s980_s16 = smov (!%p87_p2), 80   ;;  %s981_s17 = smov (!%p87_p2), 72  }
   0x9   : > { %s982_s18 = smov (!%p87_p2), 112   ;;  %s983_s19 = smov (!%p87_p2), 104  }
   0xa   : > { %s984_s23 = smov (!%p87_p2), 56   ;;  %s985_s24 = smov (!%p87_p2), 40  }
   0xb   : > { %s986_s25 = smov (!%p87_p2), 48   ;;  %s987_s26 = smov (!%p87_p2), 8  }
   0xc   : > { %s988_s27 = smov (!%p87_p2), 16   ;;  %s989_s28 = smov (!%p87_p2), 24  }
   0xd   : > { %s1092_s7 = smov (!%p104_p3, %s849_s7), 1 }
   0xe   : > { %s854_s8 = sshll.u32 %s1092_s7, 3 }
   0xf   : > { %s107_s11 = scalar_lea.vmem %s1089_s0, %s854_s8  ;;  %s1061_s22 = scalar_lea.vmem %s1090_s1, %s854_s8 }
  0x10   : > { %v1022_v1 = vld [vmem:[%s107_s11] sm:$0xff] }
  0x11   : > { %114 = vrot.lane.b32.xlu0 %v1022_v1, %s976_s12  ;;  %203 = vrot.lane.b32.xlu1 %v1022_v1, %s977_s13 }
  0x15   : > { %282 = vrot.lane.b32.xlu1 %v1022_v1, %s978_s14 }
  0x19   : > { %280 = vrot.lane.b32.xlu1 %v1022_v1, %s979_s15 }
  0x1d   : > { %454 = vrot.lane.b32.xlu1 %v1022_v1, %s980_s16 }
  0x83   : > { %v115_v2 = vpop.permute.xlu0 %114  ;;  %v204_v7 = vpop.permute.xlu1 %203 }
  0x84   : > { %887 = vmatpush3.xpose.msk.msra.mxu0 %vm116_vm1, %v115_v2  ;;  %892 = vmatpush3.msra.mxu1 %v204_v7 }
  0x85   : > { %901 = vmatprep.subr.mxu0 %v974_v0  ;;  %896 = vmatprep.subr.mxu1 %v974_v0 }
  0x87   : > { %889 = vmatmul.mubr.msk.f32.vlgmr.msra.gmra.mrb[0].mxu0 %vm116_vm1, %v1022_v1  ;;  %v283_v13 = vpop.permute.xlu1 %282 }
  0x88   : > { %903 = vmatprep.mubr.msk.f32.mxu0 %vm975_vm0, %v974_v0 }
  0x8b   : > { %v281_v14 = vpop.permute.xlu1 %280 }
  0x8f   : > { %v455_v15 = vpop.permute.xlu1 %454 }
 0x15a   : > { %v187_v3 = vpop.f32.mrb[0].mxu0 }
 0x15b   : > { %v191_v4 = vmul.f32 0.35355338, %v187_v3  ;;  %v890_v5 = vpop.f32.mrb[1].mxu0 }
 0x15d   : > { %v192_v6 = vsel %vm116_vm1, %v191_v4, -inf }
 0x15e   : > { %193 = vmax.xlane.f32.xlu0 %v192_v6 }
 0x174   : > { %626 = vrot.lane.b32.xlu0 %v1022_v1, %s981_s17 }
 0x1eb   : > { %v194_v8 = vpop.xlane.xlu0 %193 }
 0x1ec   : > { %v195_v9 = vsub.f32 %v191_v4, %v194_v8 }
 0x1ee   : > { %v196_v10 = vmul.f32 1.442695, %v195_v9 }
 0x1ef   : > { %v627_v20 = vpop.permute.xlu0 %626 }
 0x1f0   : > { %950 = vpow2.f32 %v196_v10 }
 0x1fa   : > { %v951_v11 = vpop.eup %950 }
 0x1fb   : > { %v198_v12 = vsel %vm116_vm1, %v951_v11, 0.0 }
 0x1fc   : > { %199 = vadd.xlane.f32.xlu1 %v198_v12 }
 0x20d   : > { %452 = vrot.lane.b32.xlu1 %v1022_v1, %s982_s18 }
 0x211   : > { %624 = vrot.lane.b32.xlu1 %v1022_v1, %s983_s19 }
 0x289   : > { %v200_v16 = vpop.xlane.xlu1 %199 }
 0x28a   : > { %952 = vrcp.f32 %v200_v16 }
 0x28d   : > { %v453_v19 = vpop.permute.xlu1 %452 }
 0x291   : > { %v625_v21 = vpop.permute.xlu1 %624 }
 0x294   : > { %v953_v17 = vpop.eup %952 }
 0x295   : > { %v202_v18 = vmul.f32 %v953_v17, %v951_v11 }
 0x297   : > { %894 = vmatmul.mubr.msk.f32.vlgmr.msra.gmra.mrb[0].mxu1 %vm116_vm1, %v202_v18 }
 0x298   : > { %897 = vmatpush3.xpose.msk.msra.mxu1 %vm116_vm1, %v283_v13  ;;  %898 = vmatprep.mubr.msk.f32.mxu1 %vm975_vm0, %v974_v0 }
 0x299   : > { %906 = vmatprep.subr.mxu1 %v974_v0 }
 0x29b   : > { %899 = vmatmul.mubr.msk.f32.vlgmr.msra.gmra.mrb[2].mxu1 %vm116_vm1, %v281_v14 }
 0x29c   : > { %907 = vmatpush3.xpose.msk.msra.mxu1 %vm116_vm1, %v455_v15  ;;  %908 = vmatprep.mubr.msk.f32.mxu1 %vm975_vm0, %v974_v0 }
 0x29d   : > { %916 = vmatprep.subr.mxu1 %v974_v0 }
 0x29f   : > { %909 = vmatmul.mubr.msk.f32.vlgmr.msra.gmra.mrb[4].mxu1 %vm116_vm1, %v453_v19 }
 0x2a0   : > { %917 = vmatpush3.xpose.msk.msra.mxu1 %vm116_vm1, %v627_v20  ;;  %918 = vmatprep.mubr.msk.f32.mxu1 %vm975_vm0, %v974_v0 }
 0x2a3   : > { %919 = vmatmul.mubr.msk.f32.vlgmr.msra.gmra.mrb[6].mxu1 %vm116_vm1, %v625_v21 }
 0x36a   : > { %v275_v22 = vpop.f32.mrb[0].mxu1 }
 0x36b   : > { %279 = vst.msk [vmem:[%s1061_s22] sm:$0xff] %vm116_vm1, %v275_v22  ;;  %v895_v23 = vpop.f32.mrb[1].mxu1 }
 0x36e   : > { %v354_v24 = vpop.f32.mrb[2].mxu1 }
 0x36f   : > { %v358_v25 = vmul.f32 0.35355338, %v354_v24  ;;  %v900_v26 = vpop.f32.mrb[3].mxu1 }
 0x371   : > { %v359_v27 = vsel %vm116_vm1, %v358_v25, -inf }
 0x372   : > { %360 = vmax.xlane.f32.xlu1 %v359_v27  ;;  %v526_v28 = vpop.f32.mrb[4].mxu1 }
 0x373   : > { %v530_v29 = vmul.f32 0.35355338, %v526_v28  ;;  %v910_v30 = vpop.f32.mrb[5].mxu1 }
 0x375   : > { %v531_v31 = vsel %vm116_vm1, %v530_v29, -inf }
 0x376   : > { %532 = vmax.xlane.f32.xlu0 %v531_v31  ;;  %v698_v32 = vpop.f32.mrb[6].mxu1 }
 0x377   : > { %v702_v33 = vmul.f32 0.35355338, %v698_v32  ;;  %v920_v34 = vpop.f32.mrb[7].mxu1 }
 0x379   : > { %v703_v35 = vsel %vm116_vm1, %v702_v33, -inf }
 0x37a   : > { %704 = vmax.xlane.f32.xlu1 %v703_v35 }
 0x38b   : > { %370 = vrot.lane.b32.xlu1 %v1022_v1, %s984_s23 }
 0x3ff   : > { %v361_v36 = vpop.xlane.xlu1 %360 }
 0x400   : > { %v362_v37 = vsub.f32 %v358_v25, %v361_v36 }
 0x402   : > { %v363_v38 = vmul.f32 1.442695, %v362_v37 }
 0x403   : > { %v533_v39 = vpop.xlane.xlu0 %532 }
 0x404   : > { %954 = vpow2.f32 %v363_v38  ;;  %v534_v40 = vsub.f32 %v530_v29, %v533_v39 }
 0x406   : > { %v535_v41 = vmul.f32 1.442695, %v534_v40 }
 0x407   : > { %v705_v42 = vpop.xlane.xlu1 %704 }
 0x408   : > { %956 = vpow2.f32 %v535_v41  ;;  %v706_v43 = vsub.f32 %v702_v33, %v705_v42 }
 0x40a   : > { %v707_v44 = vmul.f32 1.442695, %v706_v43 }
 0x40b   : > { %v371_v45 = vpop.permute.xlu1 %370 }
 0x40c   : > { %958 = vpow2.f32 %v707_v44  ;;  %902 = vmatpush3.msra.mxu0 %v371_v45 }
 0x40d   : > { %911 = vmatprep.subr.mxu0 %v974_v0 }
 0x40e   : > { %v955_v46 = vpop.eup %954 }
 0x40f   : > { %v365_v47 = vsel %vm116_vm1, %v955_v46, 0.0 }
 0x410   : > { %366 = vadd.xlane.f32.xlu1 %v365_v47 }
 0x412   : > { %v957_v48 = vpop.eup %956 }
 0x413   : > { %v537_v49 = vsel %vm116_vm1, %v957_v48, 0.0 }
 0x414   : > { %538 = vadd.xlane.f32.xlu1 %v537_v49 }
 0x416   : > { %v959_v50 = vpop.eup %958 }
 0x417   : > { %v709_v51 = vsel %vm116_vm1, %v959_v50, 0.0 }
 0x418   : > { %710 = vadd.xlane.f32.xlu0 %v709_v51 }
 0x425   : > { %714 = vrot.lane.b32.xlu1 %v1022_v1, %s985_s24 }
 0x42e   : > { %542 = vrot.lane.b32.xlu0 %v1022_v1, %s986_s25 }
 0x49d   : > { %v367_v52 = vpop.xlane.xlu1 %366 }
 0x49e   : > { %960 = vrcp.f32 %v367_v52 }
 0x4a1   : > { %v539_v53 = vpop.xlane.xlu1 %538 }
 0x4a2   : > { %962 = vrcp.f32 %v539_v53 }
 0x4a5   : > { %v711_v54 = vpop.xlane.xlu0 %710  ;;  %v715_v60 = vpop.permute.xlu1 %714 }
 0x4a6   : > { %964 = vrcp.f32 %v711_v54 }
 0x4a8   : > { %v961_v55 = vpop.eup %960 }
 0x4a9   : > { %v369_v56 = vmul.f32 %v961_v55, %v955_v46  ;;  %v543_v57 = vpop.permute.xlu0 %542 }
 0x4ab   : > { %904 = vmatmul.mubr.msk.f32.vlgmr.msra.gmra.mrb[2].mxu0 %vm116_vm1, %v369_v56 }
 0x4ac   : > { %v963_v58 = vpop.eup %962  ;;  %912 = vmatpush3.msra.mxu0 %v543_v57  ;;  %913 = vmatprep.mubr.msk.f32.mxu0 %vm975_vm0, %v974_v0 }
 0x4ad   : > { %v541_v59 = vmul.f32 %v963_v58, %v957_v48  ;;  %921 = vmatprep.subr.mxu0 %v974_v0 }
 0x4af   : > { %914 = vmatmul.mubr.msk.f32.vlgmr.msra.gmra.mrb[4].mxu0 %vm116_vm1, %v541_v59 }
 0x4b0   : > { %v965_v61 = vpop.eup %964  ;;  %922 = vmatpush3.msra.mxu0 %v715_v60  ;;  %923 = vmatprep.mubr.msk.f32.mxu0 %vm975_vm0, %v974_v0 }
 0x4b1   : > { %v713_v62 = vmul.f32 %v965_v61, %v959_v50 }
 0x4b3   : > { %924 = vmatmul.mubr.msk.f32.vlgmr.msra.gmra.mrb[6].mxu0 %vm116_vm1, %v713_v62 }
 0x57e   : > { %v442_v63 = vpop.f32.mrb[2].mxu0 }
 0x57f   : > { %447 = vrot.lane.b32.xlu1 %v442_v63, %s987_s26  ;;  %v905_v1 = vpop.f32.mrb[3].mxu0 }
 0x582   : > { %v614_v2 = vpop.f32.mrb[4].mxu0 }
 0x583   : > { %619 = vrot.lane.b32.xlu0 %v614_v2, %s988_s27  ;;  %v915_v3 = vpop.f32.mrb[5].mxu0 }
 0x586   : > { %v786_v4 = vpop.f32.mrb[6].mxu0 }
 0x587   : > { %791 = vrot.lane.b32.xlu1 %v786_v4, %s989_s28  ;;  %v925_v5 = vpop.f32.mrb[7].mxu0 }
 0x5f1   : > { %v448_v0 = vpop.permute.xlu1 %447 }
 0x5f2   : > { %451 = vst.msk [vmem:[%s1061_s22] sm:$0xff] %vm450_vm2, %v448_v0 }
 0x5f5   : > { %v620_v6 = vpop.permute.xlu0 %619 }
 0x5f6   : > { %623 = vst.msk [vmem:[%s1061_s22] sm:$0xff] %vm622_vm3, %v620_v6 }
 0x5f9   : > { %v792_v7 = vpop.permute.xlu1 %791 }
 0x5fa   : > { %795 = vst.msk [vmem:[%s1061_s22] sm:$0xff] %vm794_vm4, %v792_v7 }
 0x5fb PF: > { %s11_s6 = sadd.s32 1, %s972_s6  }
 0x5fc   : > { %p8_p4 = scmp.ge.s32.totalorder %s11_s6, 4  }
 0x5fe   :  { %10 = sbr.rel (!%p8_p4) target bundleno = 1 (0x1), region = 54 }

// kernel: transformer_forward.30
= control target key start
LH: loop header
LB: loop body
LE: loop exit
PB: predicated region body
PF: predicated region fallthrough
CT: control target
= control target key end

     0   :  { %vm25_vm0 = vcmask 261120   ;;  %s214_s2 = inlined_call_operand.vmem [shape: f32[32,32], index: 2, kind: input, shape index: {}]   ;;  %s215_s0 = inlined_call_operand.vmem [shape: f32[16,32], index: 0, kind: input, shape index: {}]   ;;  %s216_s1 = inlined_call_operand.vmem [shape: f32[16,32], index: 1, kind: input, shape index: {}]   ;;  %s217_s3 = inlined_call_operand.vmem [shape: f32[1,32], index: 3, kind: input, shape index: {}]   ;;  %s218_s4 = inlined_call_operand.vmem [shape: f32[16,32], index: 4, kind: output, shape index: {}]  }
   0x1   :  { %v21_v0 = vld [vmem:[%s214_s2] sm:$0xff]  ;;  %v22_v1 = vld [vmem:[%s214_s2 + $0x8] sm:$0xff]  ;;  %v23_v2 = vld [vmem:[%s214_s2 + $0x10] sm:$0xff] }
   0x2   :  { %v144_v3 = vpack.c.bf16 %v22_v1, %v21_v0  ;;  %v24_v4 = vld [vmem:[%s214_s2 + $0x18] sm:$0xff]  ;;  %v19_v5 = vld [vmem:[%s215_s0] sm:$0xff]  ;;  %v20_v7 = vld [vmem:[%s215_s0 + $0x8] sm:$0xff] }
   0x3   :  { %v148_v6 = vpack.c.bf16 %v24_v4, %v23_v2  ;;  %141 = vmatprep.mubr.msk.f32.mxu0 %vm25_vm0, %v19_v5  ;;  %v18_v8 = vld [vmem:[%s216_s1 + $0x8] sm:$0xff]  ;;  %v17_v9 = vld [vmem:[%s216_s1] sm:$0xff] }
   0x4   :  { %145 = vmatprep.subr.bf16.mxu0 %v144_v3  ;;  %v126_v11 = vld [vmem:[%s217_s3] ss:$0 sm:$0xff] }
   0x5   :  { %147 = vmatpush3.bf16.msra.mxu0 %v144_v3 }
   0x6   :  { %149 = vmatprep.subr.bf16.mxu0 %v148_v6 }
   0x9   :  { %151 = vmatpush3.bf16.msra.mxu0 %v148_v6 }
   0xc   :  { %142 = vmatmul.mubr.msk.f32.vlgmr.msra.gmra.mrb[0].mxu0 %vm25_vm0, %v20_v7 }
  0xdf   :  { %v143_v10 = vpop.f32.mrb[0].mxu0 }
  0xe0   :  { %v108_v12 = vadd.f32 %v143_v10, %v18_v8  ;;  %v98_v13 = vpop.f32.mrb[1].mxu0 }
  0xe1   :  { %v107_v14 = vadd.f32 %v98_v13, %v17_v9 }
  0xe2   :  { %v117_v15 = vadd.f32 %v126_v11, %v108_v12 }
  0xe3   :  { %v116_v16 = vadd.f32 %v126_v11, %v107_v14 }
  0xe4   :  { %119 = vst.msk [vmem:[%s218_s4 + $0x8] sm:$0xff] %vm25_vm0, %v117_v15 }
  0xe5   :  { %118 = vst.msk [vmem:[%s218_s4] sm:$0xff] %vm25_vm0, %v116_v16 }

// kernel: transformer_forward.36
= control target key start
LH: loop header
LB: loop body
LE: loop exit
PB: predicated region body
PF: predicated region fallthrough
CT: control target
= control target key end

     0   :  { %vm18_vm0 = vcmask 261120   ;;  %s118_s0 = inlined_call_operand.vmem [shape: f32[16,32], index: 0, kind: input, shape index: {}]   ;;  %s119_s1 = inlined_call_operand.vmem [shape: f32[1,32], index: 1, kind: input, shape index: {}]   ;;  %s120_s2 = inlined_call_operand.vmem [shape: f32[1,32], index: 2, kind: input, shape index: {}]   ;;  %s121_s3 = inlined_call_operand.vmem [shape: f32[16,32], index: 3, kind: output, shape index: {}]  }
   0x1   :  { %v14_v0 = vld [vmem:[%s118_s0] sm:$0xff]  ;;  %v15_v1 = vld [vmem:[%s118_s0 + $0x8] sm:$0xff] }
   0x2   :  { %v19_v2 = vsel %vm18_vm0, %v14_v0, 0.0  ;;  %v22_v3 = vsel %vm18_vm0, %v15_v1, 0.0  ;;  %v68_v21 = vld [vmem:[%s119_s1] ss:$0 sm:$0xff] }
   0x3   :  { %20 = vadd.xlane.f32.xlu0 %v19_v2  ;;  %v69_v23 = vld [vmem:[%s120_s2] ss:$0 sm:$0xff] }
   0x7   :  { %23 = vadd.xlane.f32.xlu0 %v22_v3 }
  0x90   :  { %v21_v4 = vpop.xlane.xlu0 %20 }
  0x91   :  { %v26_v5 = vmul.f32 0.03125, %v21_v4 }
  0x93   :  { %v28_v6 = vsub.f32 %v14_v0, %v26_v5 }
  0x94   :  { %v24_v7 = vpop.xlane.xlu0 %23 }
  0x95   :  { %v27_v8 = vmul.f32 0.03125, %v24_v7  ;;  %v30_v9 = vmul.f32 %v28_v6, %v28_v6 }
  0x97   :  { %v29_v10 = vsub.f32 %v15_v1, %v27_v8  ;;  %v32_v11 = vsel %vm18_vm0, %v30_v9, 0.0 }
  0x98   :  { %33 = vadd.xlane.f32.xlu1 %v32_v11 }
  0x99   :  { %v31_v12 = vmul.f32 %v29_v10, %v29_v10 }
  0x9b   :  { %v35_v13 = vsel %vm18_vm0, %v31_v12, 0.0 }
  0x9c   :  { %36 = vadd.xlane.f32.xlu1 %v35_v13 }
 0x125   :  { %v34_v14 = vpop.xlane.xlu1 %33 }
 0x126   :  { %v38_v15 = vmul.f32 0.03125, %v34_v14 }
 0x128   :  { %v40_v16 = vadd.f32 1e-05, %v38_v15 }
 0x129   :  { %v37_v17 = vpop.xlane.xlu1 %36 }
 0x12a   :  { %70 = vrsqrt.f32 %v40_v16  ;;  %v39_v18 = vmul.f32 0.03125, %v37_v17 }
 0x12c   :  { %v41_v19 = vadd.f32 1e-05, %v39_v18 }
 0x12e   :  { %72 = vrsqrt.f32 %v41_v19 }
 0x134   :  { %v71_v20 = vpop.eup %70 }
 0x135   :  { %v44_v22 = vmul.f32 %v71_v20, %v28_v6 }
 0x137   :  { %v52_v24 = vmul.f32 %v68_v21, %v44_v22 }
 0x138   :  { %v73_v25 = vpop.eup %72 }
 0x139   :  { %v60_v26 = vadd.f32 %v69_v23, %v52_v24  ;;  %v45_v27 = vmul.f32 %v73_v25, %v29_v10 }
 0x13b   :  { %62 = vst.msk [vmem:[%s121_s3] sm:$0xff] %vm18_vm0, %v60_v26  ;;  %v53_v28 = vmul.f32 %v68_v21, %v45_v27 }
 0x13d   :  { %v61_v29 = vadd.f32 %v69_v23, %v53_v28 }
 0x13f   :  { %63 = vst.msk [vmem:[%s121_s3 + $0x8] sm:$0xff] %vm18_vm0, %v61_v29 }

// kernel: transformer_forward.31
= control target key start
LH: loop header
LB: loop body
LE: loop exit
PB: predicated region body
PF: predicated region fallthrough
CT: control target
= control target key end

     0   :  { %vm30_vm0 = vcmask 261120   ;;  %vm176_vm1 = vcmask 523264   ;;  %s475_s0 = inlined_call_operand.vmem [shape: f32[16,32], index: 0, kind: input, shape index: {}]   ;;  %s476_s3 = inlined_call_operand.vmem [shape: f32[32,64], index: 3, kind: input, shape index: {}]   ;;  %s477_s5 = inlined_call_operand.vmem [shape: f32[64,32], index: 5, kind: input, shape index: {}]   ;;  %s478_s1 = inlined_call_operand.vmem [shape: f32[1,32], index: 1, kind: input, shape index: {}]   ;;  %s479_s2 = inlined_call_operand.vmem [shape: f32[1,32], index: 2, kind: input, shape index: {}]   ;;  %s480_s4 = inlined_call_operand.vmem [shape: f32[1,64], index: 4, kind: input, shape index: {}]   ;;  %s481_s6 = inlined_call_operand.vmem [shape: f32[1,32], index: 6, kind: input, shape index: {}]   ;;  %s482_s7 = inlined_call_operand.vmem [shape: f32[16,32], index: 7, kind: output, shape index: {}]  }
   0x1   :  { %v400_v0 = vld [vmem:[%s475_s0] sm:$0xff]  ;;  %v405_v1 = vld [vmem:[%s475_s0 + $0x8] sm:$0xff]  ;;  %v76_v16 = vld [vmem:[%s476_s3 + $0x10] sm:$0xff] }
   0x2   :  { %v31_v2 = vsel %vm30_vm0, %v400_v0, 0.0  ;;  %v34_v3 = vsel %vm30_vm0, %v405_v1, 0.0  ;;  %v74_v14 = vld [vmem:[%s476_s3] sm:$0xff]  ;;  %v75_v15 = vld [vmem:[%s476_s3 + $0x8] sm:$0xff]  ;;  %v77_v18 = vld [vmem:[%s476_s3 + $0x18] sm:$0xff] }
   0x3   :  { %32 = vadd.xlane.f32.xlu0 %v31_v2  ;;  %v329_v17 = vpack.c.bf16 %v75_v15, %v74_v14  ;;  %v333_v19 = vpack.c.bf16 %v77_v18, %v76_v16  ;;  %v168_v20 = vld [vmem:[%s477_s5] sm:$0xff]  ;;  %v169_v21 = vld [vmem:[%s477_s5 + $0x8] sm:$0xff]  ;;  %v170_v22 = vld [vmem:[%s477_s5 + $0x10] sm:$0xff] }
   0x4   :  { %v337_v23 = vpack.c.bf16 %v169_v21, %v168_v20  ;;  %v171_v24 = vld [vmem:[%s477_s5 + $0x18] sm:$0xff]  ;;  %v172_v26 = vld [vmem:[%s477_s5 + $0x20] sm:$0xff]  ;;  %v173_v27 = vld [vmem:[%s477_s5 + $0x28] sm:$0xff] }
   0x5   :  { %330 = vmatprep.subr.bf16.mxu0 %v329_v17  ;;  %v341_v25 = vpack.c.bf16 %v171_v24, %v170_v22  ;;  %v345_v28 = vpack.c.bf16 %v173_v27, %v172_v26  ;;  %v275_v36 = vld [vmem:[%s478_s1] ss:$0 sm:$0xff]  ;;  %v174_v45 = vld [vmem:[%s477_s5 + $0x30] sm:$0xff]  ;;  %v175_v46 = vld [vmem:[%s477_s5 + $0x38] sm:$0xff] }
   0x6   :  { %332 = vmatpush3.bf16.msra.mxu0 %v329_v17  ;;  %338 = vmatprep.subr.bf16.mxu1 %v337_v23  ;;  %v276_v38 = vld [vmem:[%s479_s2] ss:$0 sm:$0xff]  ;;  %v349_v47 = vpack.c.bf16 %v175_v46, %v174_v45 }
   0x7   :  { %35 = vadd.xlane.f32.xlu0 %v34_v3  ;;  %334 = vmatprep.subr.bf16.mxu0 %v333_v19  ;;  %v277_v48 = vld [vmem:[%s480_s4] ss:$0 sm:$0xff] }
   0x8   :  { %340 = vmatpush3.bf16.msra.mxu1 %v337_v23  ;;  %v282_v56 = vld [vmem:[%s481_s6] ss:$0 sm:$0xff] }
   0x9   :  { %342 = vmatprep.subr.bf16.mxu1 %v341_v25 }
   0xa   :  { %336 = vmatpush3.bf16.msra.mxu0 %v333_v19 }
   0xc   :  { %344 = vmatpush3.bf16.msra.mxu1 %v341_v25 }
   0xd   :  { %346 = vmatprep.subr.bf16.mxu1 %v345_v28 }
  0x10   :  { %348 = vmatpush3.bf16.msra.mxu1 %v345_v28 }
  0x11   :  { %350 = vmatprep.subr.bf16.mxu1 %v349_v47 }
  0x14   :  { %352 = vmatpush3.bf16.msra.mxu1 %v349_v47 }
  0x90   :  { %v33_v4 = vpop.xlane.xlu0 %32 }
  0x91   :  { %v38_v5 = vmul.f32 0.03125, %v33_v4 }
  0x93   :  { %v40_v6 = vsub.f32 %v400_v0, %v38_v5 }
  0x94   :  { %v36_v7 = vpop.xlane.xlu0 %35 }
  0x95   :  { %v39_v8 = vmul.f32 0.03125, %v36_v7  ;;  %v42_v9 = vmul.f32 %v40_v6, %v40_v6 }
  0x97   :  { %v41_v10 = vsub.f32 %v405_v1, %v39_v8  ;;  %v44_v11 = vsel %vm30_vm0, %v42_v9, 0.0 }
  0x98   :  { %45 = vadd.xlane.f32.xlu1 %v44_v11 }
  0x99   :  { %v43_v12 = vmul.f32 %v41_v10, %v41_v10 }
  0x9b   :  { %v47_v13 = vsel %vm30_vm0, %v43_v12, 0.0 }
  0x9c   :  { %48 = vadd.xlane.f32.xlu1 %v47_v13 }
 0x125   :  { %v46_v29 = vpop.xlane.xlu1 %45 }
 0x126   :  { %v50_v30 = vmul.f32 0.03125, %v46_v29 }
 0x128   :  { %v52_v31 = vadd.f32 1e-05, %v50_v30 }
 0x129   :  { %v49_v32 = vpop.xlane.xlu1 %48 }
 0x12a   :  { %353 = vrsqrt.f32 %v52_v31  ;;  %v51_v33 = vmul.f32 0.03125, %v49_v32 }
 0x12c   :  { %v53_v34 = vadd.f32 1e-05, %v51_v33 }
 0x12e   :  { %355 = vrsqrt.f32 %v53_v34 }
 0x134   :  { %v354_v35 = vpop.eup %353 }
 0x135   :  { %v56_v37 = vmul.f32 %v354_v35, %v40_v6 }
 0x137   :  { %v64_v39 = vmul.f32 %v275_v36, %v56_v37 }
 0x138   :  { %v356_v40 = vpop.eup %355 }
 0x139   :  { %v57_v41 = vmul.f32 %v356_v40, %v41_v10  ;;  %v72_v42 = vadd.f32 %v276_v38, %v64_v39 }
 0x13b   :  { %v65_v43 = vmul.f32 %v275_v36, %v57_v41  ;;  %307 = vmatprep.mubr.msk.f32.mxu0 %vm30_vm0, %v72_v42 }
 0x13d   :  { %v73_v44 = vadd.f32 %v276_v38, %v65_v43 }
 0x13f   :  { %308 = vmatmul.mubr.msk.f32.vlgmr.msra.gmra.mrb[0].mxu0 %vm30_vm0, %v73_v44 }
 0x212   :  { %v309_v49 = vpop.f32.mrb[0].mxu0 }
 0x213   :  { %v163_v50 = vadd.f32 %v309_v49, %v277_v48  ;;  %v157_v51 = vpop.f32.mrb[1].mxu0 }
 0x214   :  { %v158_v52 = vadd.f32 %v277_v48, %v157_v51 }
 0x215   :  { %v167_v54 = vmax.f32 %v163_v50, 0.0 }
 0x216   :  { %v166_v53 = vmax.f32 %v158_v52, 0.0 }
 0x218   :  { %326 = vmatprep.mubr.msk.f32.mxu1 %vm176_vm1, %v166_v53 }
 0x219   :  { %327 = vmatmul.mubr.msk.f32.vlgmr.msra.gmra.mrb[0].mxu1 %vm176_vm1, %v167_v54 }
 0x2ec   :  { %v328_v55 = vpop.f32.mrb[0].mxu1 }
 0x2ed   :  { %v259_v57 = vadd.f32 %v328_v55, %v405_v1  ;;  %v249_v58 = vpop.f32.mrb[1].mxu1 }
 0x2ee   :  { %v258_v59 = vadd.f32 %v249_v58, %v400_v0 }
 0x2ef   :  { %v268_v60 = vadd.f32 %v282_v56, %v259_v57 }
 0x2f0   :  { %v267_v61 = vadd.f32 %v282_v56, %v258_v59 }
 0x2f1   :  { %270 = vst.msk [vmem:[%s482_s7 + $0x8] sm:$0xff] %vm30_vm0, %v268_v60 }
 0x2f2   :  { %269 = vst.msk [vmem:[%s482_s7] sm:$0xff] %vm30_vm0, %v267_v61 }

// kernel: transformer_forward.41
= control target key start
LH: loop header
LB: loop body
LE: loop exit
PB: predicated region body
PF: predicated region fallthrough
CT: control target
= control target key end

     0   :  { %vm27_vm0 = vcmask 261120   ;;  %vm109_vm1 = vcmask 523264   ;;  %s191_s1 = inlined_call_operand.vmem [shape: f32[32,64], index: 1, kind: input, shape index: {}]   ;;  %s192_s0 = inlined_call_operand.vmem [shape: f32[16,32], index: 0, kind: input, shape index: {}]   ;;  %s193_s2 = inlined_call_operand.vmem [shape: f32[1,64], index: 2, kind: input, shape index: {}]   ;;  %s194_s3 = inlined_call_operand.vmem [shape: f32[16,64], index: 3, kind: output, shape index: {}]  }
   0x1   :  { %v16_v0 = vld [vmem:[%s191_s1] sm:$0xff]  ;;  %v17_v1 = vld [vmem:[%s191_s1 + $0x8] sm:$0xff]  ;;  %v18_v2 = vld [vmem:[%s191_s1 + $0x10] sm:$0xff] }
   0x2   :  { %v136_v3 = vpack.c.bf16 %v17_v1, %v16_v0  ;;  %v19_v4 = vld [vmem:[%s191_s1 + $0x18] sm:$0xff]  ;;  %v14_v5 = vld [vmem:[%s192_s0] sm:$0xff]  ;;  %v15_v7 = vld [vmem:[%s192_s0 + $0x8] sm:$0xff] }
   0x3   :  { %v140_v6 = vpack.c.bf16 %v19_v4, %v18_v2  ;;  %133 = vmatprep.mubr.msk.f32.mxu0 %vm27_vm0, %v14_v5  ;;  %v116_v8 = vld [vmem:[%s193_s2] ss:$0 sm:$0xff] }
   0x4   :  { %137 = vmatprep.subr.bf16.mxu0 %v136_v3 }
   0x5   :  { %139 = vmatpush3.bf16.msra.mxu0 %v136_v3 }
   0x6   :  { %141 = vmatprep.subr.bf16.mxu0 %v140_v6 }
   0x9   :  { %143 = vmatpush3.bf16.msra.mxu0 %v140_v6 }
   0xc   :  { %134 = vmatmul.mubr.msk.f32.vlgmr.msra.gmra.mrb[0].mxu0 %vm27_vm0, %v15_v7 }
  0xdf   :  { %v135_v9 = vpop.f32.mrb[0].mxu0 }
  0xe0   :  { %v106_v10 = vadd.f32 %v135_v9, %v116_v8  ;;  %v100_v11 = vpop.f32.mrb[1].mxu0 }
  0xe1   :  { %v101_v12 = vadd.f32 %v116_v8, %v100_v11 }
  0xe2   :  { %111 = vst.msk [vmem:[%s194_s3 + $0x8] sm:$0xff] %vm109_vm1, %v106_v10 }
  0xe3   :  { %110 = vst.msk [vmem:[%s194_s3] sm:$0xff] %vm109_vm1, %v101_v12 }

// kernel: transformer_forward.40
= control target key start
LH: loop header
LB: loop body
LE: loop exit
PB: predicated region body
PF: predicated region fallthrough
CT: control target
= control target key end

     0   :  { %vm24_vm0 = vcmask 261120   ;;  %s271_s0 = inlined_call_operand.vmem [shape: f32[16,32], index: 0, kind: input, shape index: {}]   ;;  %s272_s3 = inlined_call_operand.vmem [shape: f32[32,32], index: 3, kind: input, shape index: {}]   ;;  %s273_s1 = inlined_call_operand.vmem [shape: f32[1,32], index: 1, kind: input, shape index: {}]   ;;  %s274_s2 = inlined_call_operand.vmem [shape: f32[1,32], index: 2, kind: input, shape index: {}]   ;;  %s275_s4 = inlined_call_operand.vmem [shape: f32[1,32], index: 4, kind: input, shape index: {}]   ;;  %s276_s5 = inlined_call_operand.vmem [shape: f32[16,32], index: 5, kind: output, shape index: {}]  }
   0x1   :  { %v20_v0 = vld [vmem:[%s271_s0] sm:$0xff]  ;;  %v21_v1 = vld [vmem:[%s271_s0 + $0x8] sm:$0xff]  ;;  %v70_v16 = vld [vmem:[%s272_s3 + $0x10] sm:$0xff] }
   0x2   :  { %v25_v2 = vsel %vm24_vm0, %v20_v0, 0.0  ;;  %v28_v3 = vsel %vm24_vm0, %v21_v1, 0.0  ;;  %v68_v14 = vld [vmem:[%s272_s3] sm:$0xff]  ;;  %v69_v15 = vld [vmem:[%s272_s3 + $0x8] sm:$0xff]  ;;  %v71_v18 = vld [vmem:[%s272_s3 + $0x18] sm:$0xff] }
   0x3   :  { %26 = vadd.xlane.f32.xlu0 %v25_v2  ;;  %v188_v17 = vpack.c.bf16 %v69_v15, %v68_v14  ;;  %v192_v19 = vpack.c.bf16 %v71_v18, %v70_v16  ;;  %v166_v27 = vld [vmem:[%s273_s1] ss:$0 sm:$0xff] }
   0x4   :  { %v167_v29 = vld [vmem:[%s274_s2] ss:$0 sm:$0xff] }
   0x5   :  { %189 = vmatprep.subr.bf16.mxu0 %v188_v17  ;;  %v168_v36 = vld [vmem:[%s275_s4] ss:$0 sm:$0xff] }
   0x6   :  { %191 = vmatpush3.bf16.msra.mxu0 %v188_v17 }
   0x7   :  { %29 = vadd.xlane.f32.xlu0 %v28_v3  ;;  %193 = vmatprep.subr.bf16.mxu0 %v192_v19 }
   0xa   :  { %195 = vmatpush3.bf16.msra.mxu0 %v192_v19 }
  0x90   :  { %v27_v4 = vpop.xlane.xlu0 %26 }
  0x91   :  { %v32_v5 = vmul.f32 0.03125, %v27_v4 }
  0x93   :  { %v34_v6 = vsub.f32 %v20_v0, %v32_v5 }
  0x94   :  { %v30_v7 = vpop.xlane.xlu0 %29 }
  0x95   :  { %v33_v8 = vmul.f32 0.03125, %v30_v7  ;;  %v36_v9 = vmul.f32 %v34_v6, %v34_v6 }
  0x97   :  { %v35_v10 = vsub.f32 %v21_v1, %v33_v8  ;;  %v38_v11 = vsel %vm24_vm0, %v36_v9, 0.0 }
  0x98   :  { %39 = vadd.xlane.f32.xlu1 %v38_v11 }
  0x99   :  { %v37_v12 = vmul.f32 %v35_v10, %v35_v10 }
  0x9b   :  { %v41_v13 = vsel %vm24_vm0, %v37_v12, 0.0 }
  0x9c   :  { %42 = vadd.xlane.f32.xlu1 %v41_v13 }
 0x125   :  { %v40_v20 = vpop.xlane.xlu1 %39 }
 0x126   :  { %v44_v21 = vmul.f32 0.03125, %v40_v20 }
 0x128   :  { %v46_v22 = vadd.f32 1e-05, %v44_v21 }
 0x129   :  { %v43_v23 = vpop.xlane.xlu1 %42 }
 0x12a   :  { %196 = vrsqrt.f32 %v46_v22  ;;  %v45_v24 = vmul.f32 0.03125, %v43_v23 }
 0x12c   :  { %v47_v25 = vadd.f32 1e-05, %v45_v24 }
 0x12e   :  { %198 = vrsqrt.f32 %v47_v25 }
 0x134   :  { %v197_v26 = vpop.eup %196 }
 0x135   :  { %v50_v28 = vmul.f32 %v197_v26, %v34_v6 }
 0x137   :  { %v58_v30 = vmul.f32 %v166_v27, %v50_v28 }
 0x138   :  { %v199_v31 = vpop.eup %198 }
 0x139   :  { %v51_v32 = vmul.f32 %v199_v31, %v35_v10  ;;  %v66_v33 = vadd.f32 %v167_v29, %v58_v30 }
 0x13b   :  { %v59_v34 = vmul.f32 %v166_v27, %v51_v32  ;;  %185 = vmatprep.mubr.msk.f32.mxu0 %vm24_vm0, %v66_v33 }
 0x13d   :  { %v67_v35 = vadd.f32 %v167_v29, %v59_v34 }
 0x13f   :  { %186 = vmatmul.mubr.msk.f32.vlgmr.msra.gmra.mrb[0].mxu0 %vm24_vm0, %v67_v35 }
 0x212   :  { %v187_v37 = vpop.f32.mrb[0].mxu0 }
 0x213   :  { %v157_v38 = vadd.f32 %v187_v37, %v168_v36  ;;  %v151_v39 = vpop.f32.mrb[1].mxu0 }
 0x214   :  { %v152_v40 = vadd.f32 %v168_v36, %v151_v39 }
 0x215   :  { %161 = vst.msk [vmem:[%s276_s5 + $0x8] sm:$0xff] %vm24_vm0, %v157_v38 }
 0x216   :  { %160 = vst.msk [vmem:[%s276_s5] sm:$0xff] %vm24_vm0, %v152_v40 }

// kernel: transformer_forward.38
= control target key start
LH: loop header
LB: loop body
LE: loop exit
PB: predicated region body
PF: predicated region fallthrough
CT: control target
= control target key end

     0   :  { %s1012_s6 = smov 0   ;;  %s1107_s0 = inlined_call_operand.vmem [shape: f32[2,8,96], index: 0, kind: input, shape index: {}]   ;;  %s1108_s1 = inlined_call_operand.vmem [shape: f32[2,8,32], index: 1, kind: output, shape index: {}]  }
   0x1 LB: > { %s859_s7 = sadd.s32 4294967295, %s983_s6   ;;  %p863_p0 = scmp.ge.s32.totalorder %s983_s6, 1  ;;  %s983_s6 = sphi %s1012_s6, %s11_s6  }
   0x2   : > { %p86_p1 = scmp.lt.s32.totalorder %s983_s6, 3 }
   0x4   : > { %p87_p2 = pnand %p863_p0, %p86_p1 }
   0x5   : > { %p104_p3 = scmp.lt.s32.totalorder (!%p87_p2), %s859_s7, 1  ;;  %v985_v0 = vmov (!%p87_p2), 0.0   ;;  %vm986_vm0 = vmmov (!%p87_p2), 0   ;;  %s987_s12 = smov (!%p87_p2), 96   ;;  %vm122_vm1 = vcmask (!%p87_p2), 64512   ;;  %v113_v3 = vlaneseq (!%p87_p2) }
   0x6   : > { %90 = sbr.rel (%p87_p2) target bundleno = 1535 (0x5ff), region = 24  ;;  %896 = vmatprep.subr.mxu0 (!%p87_p2), %v985_v0  ;;  %898 = vmatprep.mubr.msk.f32.mxu0 (!%p87_p2), %vm986_vm0, %v985_v0  ;;  %s988_s13 = smov (!%p87_p2), 64   ;;  %v992_v7 = vmov (!%p87_p2), -1e+09   ;;  %vm458_vm3 = vcmask (!%p87_p2), 130112   ;;  %vm631_vm4 = vcmask (!%p87_p2), 195712  }
   0x7   : > { %901 = vmatprep.subr.mxu1 (!%p87_p2), %v985_v0  ;;  %903 = vmatprep.mubr.msk.f32.mxu1 (!%p87_p2), %vm986_vm0, %v985_v0  ;;  %s989_s14 = smov (!%p87_p2), 88   ;;  %s990_s15 = smov (!%p87_p2), 120   ;;  %v114_v4 = vshrl.u32 (!%p87_p2), %v113_v3, 7  ;;  %v116_v5 = vand.u32 (!%p87_p2), 127, %v113_v3  ;;  %vm804_vm5 = vcmask (!%p87_p2), 261312  }
   0x8   : > { %s991_s16 = smov (!%p87_p2), 80   ;;  %s993_s17 = smov (!%p87_p2), 72  }
   0x9   : > { %vm117_vm2 = vcmp.le.s32.totalorder (!%p87_p2), %v116_v5, %v114_v4  ;;  %s994_s18 = smov (!%p87_p2), 112   ;;  %s995_s19 = smov (!%p87_p2), 104  }
   0xa   : > { %v1047_v8 = vsel (!%p87_p2), %vm117_vm2, 0.0, %v992_v7  ;;  %s996_s23 = smov (!%p87_p2), 56   ;;  %s997_s24 = smov (!%p87_p2), 40  }
   0xb   : > { %s998_s25 = smov (!%p87_p2), 48   ;;  %s999_s26 = smov (!%p87_p2), 8  }
   0xc   : > { %s1000_s27 = smov (!%p87_p2), 16   ;;  %s1001_s28 = smov (!%p87_p2), 24  }
   0xd   : > { %s1110_s7 = smov (!%p104_p3, %s859_s7), 1 }
   0xe   : > { %s864_s8 = sshll.u32 %s1110_s7, 3 }
   0xf   : > { %s107_s11 = scalar_lea.vmem %s1107_s0, %s864_s8  ;;  %s1076_s22 = scalar_lea.vmem %s1108_s1, %s864_s8 }
  0x10   : > { %v1034_v1 = vld [vmem:[%s107_s11] sm:$0xff] }
  0x11   : > { %120 = vrot.lane.b32.xlu0 %v1034_v1, %s987_s12  ;;  %210 = vrot.lane.b32.xlu1 %v1034_v1, %s988_s13 }
  0x15   : > { %289 = vrot.lane.b32.xlu1 %v1034_v1, %s989_s14 }
  0x19   : > { %287 = vrot.lane.b32.xlu1 %v1034_v1, %s990_s15 }
  0x1d   : > { %462 = vrot.lane.b32.xlu1 %v1034_v1, %s991_s16 }
  0x83   : > { %v121_v2 = vpop.permute.xlu0 %120  ;;  %v211_v13 = vpop.permute.xlu1 %210 }
  0x84   : > { %897 = vmatpush3.xpose.msk.msra.mxu0 %vm122_vm1, %v121_v2  ;;  %902 = vmatpush3.msra.mxu1 %v211_v13 }
  0x85   : > { %911 = vmatprep.subr.mxu0 %v985_v0  ;;  %906 = vmatprep.subr.mxu1 %v985_v0 }
  0x87   : > { %899 = vmatmul.mubr.msk.f32.vlgmr.msra.gmra.mrb[0].mxu0 %vm122_vm1, %v1034_v1  ;;  %v290_v19 = vpop.permute.xlu1 %289 }
  0x88   : > { %913 = vmatprep.mubr.msk.f32.mxu0 %vm986_vm0, %v985_v0 }
  0x8b   : > { %v288_v20 = vpop.permute.xlu1 %287 }
  0x8f   : > { %v463_v21 = vpop.permute.xlu1 %462 }
 0x15a   : > { %v193_v6 = vpop.f32.mrb[0].mxu0 }
 0x15b   : > { %v197_v9 = vmul.f32 0.35355338, %v193_v6  ;;  %v900_v10 = vpop.f32.mrb[1].mxu0 }
 0x15d   : > { %v198_v11 = vadd.f32 %v197_v9, %v1047_v8 }
 0x15f   : > { %v199_v12 = vsel %vm122_vm1, %v198_v11, -inf }
 0x160   : > { %200 = vmax.xlane.f32.xlu0 %v199_v12 }
 0x176   : > { %635 = vrot.lane.b32.xlu0 %v1034_v1, %s993_s17 }
 0x1ed   : > { %v201_v14 = vpop.xlane.xlu0 %200 }
 0x1ee   : > { %v202_v15 = vsub.f32 %v198_v11, %v201_v14 }
 0x1f0   : > { %v203_v16 = vmul.f32 1.442695, %v202_v15 }
 0x1f1   : > { %v636_v26 = vpop.permute.xlu0 %635 }
 0x1f2   : > { %961 = vpow2.f32 %v203_v16 }
 0x1fc   : > { %v962_v17 = vpop.eup %961 }
 0x1fd   : > { %v205_v18 = vsel %vm122_vm1, %v962_v17, 0.0 }
 0x1fe   : > { %206 = vadd.xlane.f32.xlu1 %v205_v18 }
 0x20f   : > { %460 = vrot.lane.b32.xlu1 %v1034_v1, %s994_s18 }
 0x213   : > { %633 = vrot.lane.b32.xlu1 %v1034_v1, %s995_s19 }
 0x28b   : > { %v207_v22 = vpop.xlane.xlu1 %206 }
 0x28c   : > { %963 = vrcp.f32 %v207_v22 }
 0x28f   : > { %v461_v25 = vpop.permute.xlu1 %460 }
 0x293   : > { %v634_v27 = vpop.permute.xlu1 %633 }
 0x296   : > { %v964_v23 = vpop.eup %963 }
 0x297   : > { %v209_v24 = vmul.f32 %v964_v23, %v962_v17 }
 0x299   : > { %904 = vmatmul.mubr.msk.f32.vlgmr.msra.gmra.mrb[0].mxu1 %vm122_vm1, %v209_v24 }
 0x29a   : > { %907 = vmatpush3.xpose.msk.msra.mxu1 %vm122_vm1, %v290_v19  ;;  %908 = vmatprep.mubr.msk.f32.mxu1 %vm986_vm0, %v985_v0 }
 0x29b   : > { %916 = vmatprep.subr.mxu1 %v985_v0 }
 0x29d   : > { %909 = vmatmul.mubr.msk.f32.vlgmr.msra.gmra.mrb[2].mxu1 %vm122_vm1, %v288_v20 }
 0x29e   : > { %917 = vmatpush3.xpose.msk.msra.mxu1 %vm122_vm1, %v463_v21  ;;  %918 = vmatprep.mubr.msk.f32.mxu1 %vm986_vm0, %v985_v0 }
 0x29f   : > { %926 = vmatprep.subr.mxu1 %v985_v0 }
 0x2a1   : > { %919 = vmatmul.mubr.msk.f32.vlgmr.msra.gmra.mrb[4].mxu1 %vm122_vm1, %v461_v25 }
 0x2a2   : > { %927 = vmatpush3.xpose.msk.msra.mxu1 %vm122_vm1, %v636_v26  ;;  %928 = vmatprep.mubr.msk.f32.mxu1 %vm986_vm0, %v985_v0 }
 0x2a5   : > { %929 = vmatmul.mubr.msk.f32.vlgmr.msra.gmra.mrb[6].mxu1 %vm122_vm1, %v634_v27 }
 0x36c   : > { %v282_v28 = vpop.f32.mrb[0].mxu1 }
 0x36d   : > { %286 = vst.msk [vmem:[%s1076_s22] sm:$0xff] %vm122_vm1, %v282_v28  ;;  %v905_v29 = vpop.f32.mrb[1].mxu1 }
 0x370   : > { %v361_v30 = vpop.f32.mrb[2].mxu1 }
 0x371   : > { %v365_v31 = vmul.f32 0.35355338, %v361_v30  ;;  %v910_v32 = vpop.f32.mrb[3].mxu1 }
 0x373   : > { %v366_v33 = vadd.f32 %v365_v31, %v1047_v8 }
 0x374   : > { %v534_v34 = vpop.f32.mrb[4].mxu1 }
 0x375   : > { %v538_v35 = vmul.f32 0.35355338, %v534_v34  ;;  %v920_v36 = vpop.f32.mrb[5].mxu1  ;;  %v367_v37 = vsel %vm122_vm1, %v366_v33, -inf }
 0x376   : > { %368 = vmax.xlane.f32.xlu1 %v367_v37 }
 0x377   : > { %v539_v38 = vadd.f32 %v538_v35, %v1047_v8 }
 0x378   : > { %v707_v39 = vpop.f32.mrb[6].mxu1 }
 0x379   : > { %v711_v40 = vmul.f32 0.35355338, %v707_v39  ;;  %v930_v41 = vpop.f32.mrb[7].mxu1  ;;  %v540_v42 = vsel %vm122_vm1, %v539_v38, -inf }
 0x37a   : > { %541 = vmax.xlane.f32.xlu0 %v540_v42 }
 0x37b   : > { %v712_v43 = vadd.f32 %v711_v40, %v1047_v8 }
 0x37d   : > { %v713_v44 = vsel %vm122_vm1, %v712_v43, -inf }
 0x37e   : > { %714 = vmax.xlane.f32.xlu1 %v713_v44 }
 0x38f   : > { %378 = vrot.lane.b32.xlu1 %v1034_v1, %s996_s23 }
 0x403   : > { %v369_v45 = vpop.xlane.xlu1 %368 }
 0x404   : > { %v370_v46 = vsub.f32 %v366_v33, %v369_v45 }
 0x406   : > { %v371_v47 = vmul.f32 1.442695, %v370_v46 }
 0x407   : > { %v542_v48 = vpop.xlane.xlu0 %541 }
 0x408   : > { %965 = vpow2.f32 %v371_v47  ;;  %v543_v49 = vsub.f32 %v539_v38, %v542_v48 }
 0x40a   : > { %v544_v50 = vmul.f32 1.442695, %v543_v49 }
 0x40b   : > { %v715_v51 = vpop.xlane.xlu1 %714 }
 0x40c   : > { %967 = vpow2.f32 %v544_v50  ;;  %v716_v52 = vsub.f32 %v712_v43, %v715_v51 }
 0x40e   : > { %v717_v53 = vmul.f32 1.442695, %v716_v52 }
 0x40f   : > { %v379_v54 = vpop.permute.xlu1 %378 }
 0x410   : > { %969 = vpow2.f32 %v717_v53  ;;  %912 = vmatpush3.msra.mxu0 %v379_v54 }
 0x411   : > { %921 = vmatprep.subr.mxu0 %v985_v0 }
 0x412   : > { %v966_v55 = vpop.eup %965 }
 0x413   : > { %v373_v56 = vsel %vm122_vm1, %v966_v55, 0.0 }
 0x414   : > { %374 = vadd.xlane.f32.xlu1 %v373_v56 }
 0x416   : > { %v968_v57 = vpop.eup %967 }
 0x417   : > { %v546_v58 = vsel %vm122_vm1, %v968_v57, 0.0 }
 0x418   : > { %547 = vadd.xlane.f32.xlu1 %v546_v58 }
 0x41a   : > { %v970_v59 = vpop.eup %969 }
 0x41b   : > { %v719_v60 = vsel %vm122_vm1, %v970_v59, 0.0 }
 0x41c   : > { %720 = vadd.xlane.f32.xlu0 %v719_v60 }
 0x429   : > { %724 = vrot.lane.b32.xlu1 %v1034_v1, %s997_s24 }
 0x432   : > { %551 = vrot.lane.b32.xlu0 %v1034_v1, %s998_s25 }
 0x4a1   : > { %v375_v61 = vpop.xlane.xlu1 %374 }
 0x4a2   : > { %971 = vrcp.f32 %v375_v61 }
 0x4a5   : > { %v548_v62 = vpop.xlane.xlu1 %547 }
 0x4a6   : > { %973 = vrcp.f32 %v548_v62 }
 0x4a9   : > { %v721_v63 = vpop.xlane.xlu0 %720  ;;  %v725_v7 = vpop.permute.xlu1 %724 }
 0x4aa   : > { %975 = vrcp.f32 %v721_v63 }
 0x4ac   : > { %v972_v2 = vpop.eup %971 }
 0x4ad   : > { %v377_v3 = vmul.f32 %v972_v2, %v966_v55  ;;  %v552_v4 = vpop.permute.xlu0 %551 }
 0x4af   : > { %914 = vmatmul.mubr.msk.f32.vlgmr.msra.gmra.mrb[2].mxu0 %vm122_vm1, %v377_v3 }
 0x4b0   : > { %v974_v5 = vpop.eup %973  ;;  %922 = vmatpush3.msra.mxu0 %v552_v4  ;;  %923 = vmatprep.mubr.msk.f32.mxu0 %vm986_vm0, %v985_v0 }
 0x4b1   : > { %v550_v6 = vmul.f32 %v974_v5, %v968_v57  ;;  %931 = vmatprep.subr.mxu0 %v985_v0 }
 0x4b3   : > { %924 = vmatmul.mubr.msk.f32.vlgmr.msra.gmra.mrb[4].mxu0 %vm122_vm1, %v550_v6 }
 0x4b4   : > { %v976_v1 = vpop.eup %975  ;;  %932 = vmatpush3.msra.mxu0 %v725_v7  ;;  %933 = vmatprep.mubr.msk.f32.mxu0 %vm986_vm0, %v985_v0 }
 0x4b5   : > { %v723_v8 = vmul.f32 %v976_v1, %v970_v59 }
 0x4b7   : > { %934 = vmatmul.mubr.msk.f32.vlgmr.msra.gmra.mrb[6].mxu0 %vm122_vm1, %v723_v8 }
 0x582   : > { %v450_v9 = vpop.f32.mrb[2].mxu0 }
 0x583   : > { %455 = vrot.lane.b32.xlu1 %v450_v9, %s999_s26  ;;  %v915_v10 = vpop.f32.mrb[3].mxu0 }
 0x586   : > { %v623_v11 = vpop.f32.mrb[4].mxu0 }
 0x587   : > { %628 = vrot.lane.b32.xlu0 %v623_v11, %s1000_s27  ;;  %v925_v12 = vpop.f32.mrb[5].mxu0 }
 0x58a   : > { %v796_v13 = vpop.f32.mrb[6].mxu0 }
 0x58b   : > { %801 = vrot.lane.b32.xlu1 %v796_v13, %s1001_s28  ;;  %v935_v14 = vpop.f32.mrb[7].mxu0 }
 0x5f5   : > { %v456_v0 = vpop.permute.xlu1 %455 }
 0x5f6   : > { %459 = vst.msk [vmem:[%s1076_s22] sm:$0xff] %vm458_vm3, %v456_v0 }
 0x5f9   : > { %v629_v15 = vpop.permute.xlu0 %628 }
 0x5fa   : > { %632 = vst.msk [vmem:[%s1076_s22] sm:$0xff] %vm631_vm4, %v629_v15 }
 0x5fd   : > { %v802_v16 = vpop.permute.xlu1 %801 }
 0x5fe   : > { %805 = vst.msk [vmem:[%s1076_s22] sm:$0xff] %vm804_vm5, %v802_v16 }
 0x5ff PF: > { %s11_s6 = sadd.s32 1, %s983_s6  }
 0x600   : > { %p8_p4 = scmp.ge.s32.totalorder %s11_s6, 4  }
 0x602   :  { %10 = sbr.rel (!%p8_p4) target bundleno = 1 (0x1), region = 54 }

// kernel: transformer_forward.53
= control target key start
LH: loop header
LB: loop body
LE: loop exit
PB: predicated region body
PF: predicated region fallthrough
CT: control target
= control target key end

     0   :  { %12 = vsyncpa [#allocation3], 0  ;;  %vm28_vm0 = vcmask 261120   ;;  %s427_s0 = inlined_call_operand.vmem [shape: f32[16,32], index: 0, kind: input, shape index: {}]   ;;  %s428_s1 = inlined_call_operand.vmem [shape: f32[1,32], index: 1, kind: input, shape index: {}]   ;;  %s429_s2 = inlined_call_operand.vmem [shape: f32[1,32], index: 2, kind: input, shape index: {}]   ;;  %s430_s3 = inlined_call_operand.vmem [shape: f32[32,11], index: 3, kind: input, shape index: {}]   ;;  %s431_s4 = inlined_call_operand.vmem [shape: f32[1,11], index: 4, kind: input, shape index: {}]   ;;  %s432_s5 = inlined_call_operand.hbm [shape: f32[16,11], index: 5, kind: output, shape index: {0}]   ;;  %s433_s6 = inlined_call_operand.hbm [shape: f32[16,11], index: 6, kind: output, shape index: {1}]  }
   0x1   :  { %v24_v0 = vld [vmem:[%s427_s0] sm:$0xff]  ;;  %v25_v1 = vld [vmem:[%s427_s0 + $0x8] sm:$0xff] }
   0x2   :  { %13 = vsyncpa [#allocation5], 0  ;;  %v29_v2 = vsel %vm28_vm0, %v24_v0, 0.0  ;;  %v32_v3 = vsel %vm28_vm0, %v25_v1, 0.0  ;;  %v72_v14 = vld [vmem:[%s430_s3] sm:$0xff]  ;;  %v73_v15 = vld [vmem:[%s430_s3 + $0x8] sm:$0xff] }
   0x3   :  { %30 = vadd.xlane.f32.xlu0 %v29_v2  ;;  %v74_v16 = vld [vmem:[%s430_s3 + $0x10] sm:$0xff]  ;;  %v245_v17 = vpack.c.bf16 %v73_v15, %v72_v14  ;;  %v75_v18 = vld [vmem:[%s430_s3 + $0x18] sm:$0xff]  ;;  %v223_v27 = vld [vmem:[%s428_s1] ss:$0 sm:$0xff]  ;;  %vm164_vm1 = vcmask 89088   ;;  %s317_s1 = smov [#allocation2]  }
   0x4   :  { %v249_v19 = vpack.c.bf16 %v75_v18, %v74_v16  ;;  %v224_v29 = vld [vmem:[%s429_s2] ss:$0 sm:$0xff]  ;;  %s196_s2 = sshll.u32 %s317_s1, 4  ;;  %s197_s2 = int_to_ptr.vmem [resolvable:$true] %s196_s2 }
   0x5   :  { %246 = vmatprep.subr.bf16.mxu0 %v245_v17  ;;  %v225_v36 = vld [vmem:[%s431_s4] ss:$0 sm:$0xff]  ;;  %s269_s4 = scalar_lea.vmem %s197_s2, 256  ;;  %p274_p1 = scmp.lt.s32.totalorder %s197_s2, %s197_s2 }
   0x6   :  { %248 = vmatpush3.bf16.msra.mxu0 %v245_v17  ;;  %p270_p0 = scmp.ne.s32.totalorder %s197_s2, %s269_s4  ;;  %p275_p2 = scmp.lt.s32.totalorder %s269_s4, %s269_s4 }
   0x7   :  { %33 = vadd.xlane.f32.xlu0 %v32_v3  ;;  %250 = vmatprep.subr.bf16.mxu0 %v249_v19 }
   0x8   :  { %p276_p3 = por %p275_p2, %p274_p1 }
   0xa   :  { %252 = vmatpush3.bf16.msra.mxu0 %v249_v19  ;;  %p277_p4 = pnand %p276_p3, %p270_p0 }
  0x90   :  { %v31_v4 = vpop.xlane.xlu0 %30 }
  0x91   :  { %v36_v5 = vmul.f32 0.03125, %v31_v4 }
  0x93   :  { %v38_v6 = vsub.f32 %v24_v0, %v36_v5 }
  0x94   :  { %v34_v7 = vpop.xlane.xlu0 %33 }
  0x95   :  { %v37_v8 = vmul.f32 0.03125, %v34_v7  ;;  %v40_v9 = vmul.f32 %v38_v6, %v38_v6 }
  0x97   :  { %v39_v10 = vsub.f32 %v25_v1, %v37_v8  ;;  %v42_v11 = vsel %vm28_vm0, %v40_v9, 0.0 }
  0x98   :  { %43 = vadd.xlane.f32.xlu1 %v42_v11 }
  0x99   :  { %v41_v12 = vmul.f32 %v39_v10, %v39_v10 }
  0x9b   :  { %v45_v13 = vsel %vm28_vm0, %v41_v12, 0.0 }
  0x9c   :  { %46 = vadd.xlane.f32.xlu1 %v45_v13 }
 0x125   :  { %v44_v20 = vpop.xlane.xlu1 %43 }
 0x126   :  { %v48_v21 = vmul.f32 0.03125, %v44_v20 }
 0x128   :  { %v50_v22 = vadd.f32 1e-05, %v48_v21 }
 0x129   :  { %v47_v23 = vpop.xlane.xlu1 %46 }
 0x12a   :  { %257 = vrsqrt.f32 %v50_v22  ;;  %v49_v24 = vmul.f32 0.03125, %v47_v23 }
 0x12c   :  { %v51_v25 = vadd.f32 1e-05, %v49_v24 }
 0x12e   :  { %259 = vrsqrt.f32 %v51_v25 }
 0x134   :  { %v258_v26 = vpop.eup %257 }
 0x135   :  { %v54_v28 = vmul.f32 %v258_v26, %v38_v6 }
 0x137   :  { %v62_v30 = vmul.f32 %v223_v27, %v54_v28 }
 0x138   :  { %v260_v31 = vpop.eup %259 }
 0x139   :  { %v55_v32 = vmul.f32 %v260_v31, %v39_v10  ;;  %v70_v33 = vadd.f32 %v224_v29, %v62_v30 }
 0x13b   :  { %v63_v34 = vmul.f32 %v223_v27, %v55_v32  ;;  %242 = vmatprep.mubr.msk.f32.mxu0 %vm28_vm0, %v70_v33 }
 0x13d   :  { %v71_v35 = vadd.f32 %v224_v29, %v63_v34 }
 0x13f   :  { %243 = vmatmul.mubr.msk.f32.vlgmr.msra.gmra.mrb[0].mxu0 %vm28_vm0, %v71_v35 }
 0x212   :  { %v244_v37 = vpop.f32.mrb[0].mxu0 }
 0x213   :  { %v161_v38 = vadd.f32 %v244_v37, %v225_v36  ;;  %v155_v39 = vpop.f32.mrb[1].mxu0 }
 0x214   :  { %v156_v40 = vadd.f32 %v225_v36, %v155_v39 }
 0x215   :  { %166 = vst.msk [vmem:[#allocation2 + $0x8] sm:$0xff] %vm164_vm1, %v161_v38  ;;  %v170_v41 = vsel %vm164_vm1, %v161_v38, -inf }
 0x216   :  { %165 = vst.msk [vmem:[#allocation2] sm:$0xff] %vm164_vm1, %v156_v40  ;;  %171 = vmax.xlane.f32.xlu1 %v170_v41  ;;  %v167_v42 = vsel %vm164_vm1, %v156_v40, -inf }
 0x217   :  { %168 = vmax.xlane.f32.xlu0 %v167_v42 }
 0x2a3   :  { %v172_v43 = vpop.xlane.xlu1 %171 }
 0x2a4   :  { %v174_v44 = vsub.f32 %v161_v38, %v172_v43  ;;  %v169_v45 = vpop.xlane.xlu0 %168 }
 0x2a5   :  { %v173_v46 = vsub.f32 %v156_v40, %v169_v45 }
 0x2a6   :  { %v177_v47 = vmul.f32 1.442695, %v174_v44 }
 0x2a7   :  { %v175_v48 = vmul.f32 1.442695, %v173_v46 }
 0x2a8   :  { %261 = vpow2.f32 %v177_v47 }
 0x2a9   :  { %263 = vpow2.f32 %v175_v48 }
 0x2b2   :  { %v262_v49 = vpop.eup %261 }
 0x2b3   :  { %v264_v50 = vpop.eup %263  ;;  %v182_v51 = vsel %vm164_vm1, %v262_v49, 0.0 }
 0x2b4   :  { %183 = vadd.xlane.f32.xlu1 %v182_v51  ;;  %v179_v52 = vsel %vm164_vm1, %v264_v50, 0.0 }
 0x2b5   :  { %180 = vadd.xlane.f32.xlu0 %v179_v52 }
 0x2b6   :  { %280 = shalt.err (!%p277_p4)
}
 0x2b7   :  { %s281_s15 = scalar_lea.hbm %s432_s5, 256 }
 0x2b8   :  { %p282_p5 = scmp.ne.s32.totalorder %s432_s5, %s281_s15  ;;  %p285_p6 = scmp.lt.u32.totalorder %s281_s15, %s432_s5 }
 0x2ba   :  { %p287_p7 = pnand %p285_p6, %p282_p5 }
 0x2bc   :  { %290 = shalt.err (!%p287_p7)
}
 0x2bd   :  { %s318_s20 = smov 128   ;;  %s319_s21 = smov 8  }
 0x2be   :  { %202 = dma.vmem_to_hbm [thread:$0]  %s197_s2, 256, %s432_s5, [#allocation3], %s318_s20, %s318_s20, %s319_s21  }
 0x2bf   :  { %s320_s24 = smov [#allocation4]  }
 0x2c0   :  { %s208_s0 = sshll.u32 %s320_s24, 4  ;;  %s209_s0 = int_to_ptr.vmem [resolvable:$true] %s208_s0 }
 0x2c1   :  { %s291_s25 = scalar_lea.vmem %s209_s0, 256  ;;  %p296_p9 = scmp.lt.s32.totalorder %s209_s0, %s209_s0 }
 0x2c2   :  { %p292_p8 = scmp.ne.s32.totalorder %s209_s0, %s291_s25  ;;  %p297_p10 = scmp.lt.s32.totalorder %s291_s25, %s291_s25 }
 0x2c4   :  { %p298_p11 = por %p297_p10, %p296_p9 }
 0x2c6   :  { %p299_p12 = pnand %p298_p11, %p292_p8 }
 0x341   :  { %v184_v53 = vpop.xlane.xlu1 %183 }
 0x342   :  { %265 = vrcp.f32 %v184_v53  ;;  %v181_v54 = vpop.xlane.xlu0 %180 }
 0x343   :  { %267 = vrcp.f32 %v181_v54 }
 0x34c   :  { %v266_v55 = vpop.eup %265 }
 0x34d   :  { %v268_v56 = vpop.eup %267  ;;  %v188_v57 = vmul.f32 %v266_v55, %v262_v49 }
 0x34e   :  { %v186_v58 = vmul.f32 %v268_v56, %v264_v50 }
 0x34f   :  { %190 = vst.msk [vmem:[#allocation4 + $0x8] sm:$0xff] %vm164_vm1, %v188_v57 }
 0x350   :  { %189 = vst.msk [vmem:[#allocation4] sm:$0xff] %vm164_vm1, %v186_v58 }
 0x351   :  { %302 = shalt.err (!%p299_p12)
}
 0x352   :  { %s303_s27 = scalar_lea.hbm %s433_s6, 256 }
 0x353   :  { %p304_p13 = scmp.ne.s32.totalorder %s433_s6, %s303_s27  ;;  %p307_p0 = scmp.lt.u32.totalorder %s303_s27, %s433_s6 }
 0x355   :  { %p309_p1 = pnand %p307_p0, %p304_p13 }
 0x357   :  { %312 = shalt.err (!%p309_p1)
}
 0x358   :  { %214 = dma.vmem_to_hbm [thread:$0]  %s209_s0, 256, %s433_s6, [#allocation5], %s318_s20, %s318_s20, %s319_s21  }
 0x359   :  { %313 = dma.done.wait [#allocation3], 256  }
 0x35a   :  { %314 = vsyncadd [#allocation3], 4294967040 }
 0x35b   :  { %315 = dma.done.wait [#allocation5], 256  }
 0x35c   :  { %316 = vsyncadd [#allocation5], 4294967040 }
 0x35d   :  { %221 = vsyncpa [#allocation3], 1 }
 0x35e   :  { %222 = vsyncpa [#allocation5], 1 }

// kernel: transformer_forward.42
= control target key start
LH: loop header
LB: loop body
LE: loop exit
PB: predicated region body
PF: predicated region fallthrough
CT: control target
= control target key end

     0   :  { %s1054_s9 = smov 0   ;;  %s1140_s0 = inlined_call_operand.vmem [shape: f32[2,8,32], index: 0, kind: input, shape index: {}]   ;;  %s1141_s1 = inlined_call_operand.vmem [shape: f32[2,8,64], index: 1, kind: input, shape index: {}]   ;;  %s1142_s2 = inlined_call_operand.vmem [shape: f32[2,8,32], index: 2, kind: output, shape index: {}]  }
   0x1 LB: > { %s905_s10 = sadd.s32 4294967295, %s1025_s9   ;;  %p909_p0 = scmp.ge.s32.totalorder %s1025_s9, 1  ;;  %s1025_s9 = sphi %s1054_s9, %s12_s9  }
   0x2   : > { %p120_p1 = scmp.lt.s32.totalorder %s1025_s9, 3 }
   0x4   : > { %p121_p2 = pnand %p909_p0, %p120_p1 }
   0x5   : > { %p144_p3 = scmp.lt.s32.totalorder (!%p121_p2), %s905_s10, 1  ;;  %v1027_v0 = vmov (!%p121_p2), 0.0   ;;  %vm1028_vm0 = vmmov (!%p121_p2), 0   ;;  %vm158_vm1 = vcmask (!%p121_p2), 64512   ;;  %s1029_s18 = smov (!%p121_p2), 96   ;;  %vm494_vm2 = vcmask (!%p121_p2), 130112  }
   0x6   : > { %124 = sbr.rel (%p121_p2) target bundleno = 1416 (0x588), region = 28  ;;  %943 = vmatprep.subr.mxu0 (!%p121_p2), %v1027_v0  ;;  %945 = vmatprep.mubr.msk.f32.mxu0 (!%p121_p2), %vm1028_vm0, %v1027_v0  ;;  %s1030_s19 = smov (!%p121_p2), 120   ;;  %vm666_vm3 = vcmask (!%p121_p2), 195712   ;;  %vm838_vm4 = vcmask (!%p121_p2), 261312  }
   0x7   : > { %948 = vmatprep.subr.mxu1 (!%p121_p2), %v1027_v0  ;;  %950 = vmatprep.mubr.msk.f32.mxu1 (!%p121_p2), %vm1028_vm0, %v1027_v0  ;;  %s1031_s20 = smov (!%p121_p2), 112   ;;  %s1032_s21 = smov (!%p121_p2), 104  }
   0x8   : > { %s1033_s25 = smov (!%p121_p2), 88   ;;  %s1034_s26 = smov (!%p121_p2), 72  }
   0x9   : > { %s1035_s27 = smov (!%p121_p2), 80   ;;  %s1036_s28 = smov (!%p121_p2), 8  }
   0xa   : > { %s1037_s29 = smov (!%p121_p2), 16   ;;  %s1038_s30 = smov (!%p121_p2), 24  }
   0xd   : > { %s1144_s10 = smov (!%p144_p3, %s905_s10), 1 }
   0xe   : > { %s1068_s11 = sshll.u32 %s1144_s10, 3 }
   0xf   : > { %s151_s14 = scalar_lea.vmem %s1141_s1, %s1068_s11  ;;  %s147_s17 = scalar_lea.vmem %s1140_s0, %s1068_s11 }
  0x10   : > { %v1078_v1 = vld [vmem:[%s151_s14] sm:$0xff]  ;;  %s1112_s24 = scalar_lea.vmem %s1142_s2, %s1068_s11 }
  0x11   : > { %944 = vmatpush3.xpose.msk.msra.mxu0 %vm158_vm1, %v1078_v1  ;;  %v156_v2 = vld [vmem:[%s147_s17] sm:$0xff]  ;;  %247 = vrot.lane.b32.xlu1 %v1078_v1, %s1029_s18 }
  0x12   : > { %958 = vmatprep.subr.mxu0 %v1027_v0 }
  0x14   : > { %946 = vmatmul.mubr.msk.f32.vlgmr.msra.gmra.mrb[0].mxu0 %vm158_vm1, %v156_v2 }
  0x15   : > { %960 = vmatprep.mubr.msk.f32.mxu0 %vm1028_vm0, %v1027_v0  ;;  %326 = vrot.lane.b32.xlu1 %v1078_v1, %s1030_s19 }
  0x19   : > { %498 = vrot.lane.b32.xlu1 %v1078_v1, %s1031_s20 }
  0x1d   : > { %496 = vrot.lane.b32.xlu1 %v156_v2, %s1031_s20 }
  0x21   : > { %670 = vrot.lane.b32.xlu1 %v1078_v1, %s1032_s21 }
  0x25   : > { %668 = vrot.lane.b32.xlu1 %v156_v2, %s1032_s21 }
  0x83   : > { %v248_v12 = vpop.permute.xlu1 %247 }
  0x84   : > { %949 = vmatpush3.msra.mxu1 %v248_v12 }
  0x85   : > { %953 = vmatprep.subr.mxu1 %v1027_v0 }
  0x87   : > { %v327_v13 = vpop.permute.xlu1 %326 }
  0x8b   : > { %v499_v15 = vpop.permute.xlu1 %498 }
  0x8f   : > { %v497_v17 = vpop.permute.xlu1 %496 }
  0x93   : > { %v671_v20 = vpop.permute.xlu1 %670 }
  0x97   : > { %v669_v21 = vpop.permute.xlu1 %668 }
  0xe7   : > { %v231_v3 = vpop.f32.mrb[0].mxu0 }
  0xe8   : > { %v235_v4 = vmul.f32 0.35355338, %v231_v3  ;;  %v947_v5 = vpop.f32.mrb[1].mxu0 }
  0xea   : > { %v236_v6 = vsel %vm158_vm1, %v235_v4, -inf }
  0xeb   : > { %237 = vmax.xlane.f32.xlu0 %v236_v6 }
 0x178   : > { %v238_v7 = vpop.xlane.xlu0 %237 }
 0x179   : > { %v239_v8 = vsub.f32 %v235_v4, %v238_v7 }
 0x17b   : > { %v240_v9 = vmul.f32 1.442695, %v239_v8 }
 0x17d   : > { %1003 = vpow2.f32 %v240_v9 }
 0x187   : > { %v1004_v10 = vpop.eup %1003 }
 0x188   : > { %v242_v11 = vsel %vm158_vm1, %v1004_v10, 0.0 }
 0x189   : > { %243 = vadd.xlane.f32.xlu0 %v242_v11 }
 0x19f   : > { %324 = vrot.lane.b32.xlu0 %v156_v2, %s1030_s19 }
 0x216   : > { %v244_v14 = vpop.xlane.xlu0 %243 }
 0x217   : > { %1005 = vrcp.f32 %v244_v14 }
 0x21a   : > { %v325_v19 = vpop.permute.xlu0 %324 }
 0x221   : > { %v1006_v16 = vpop.eup %1005 }
 0x222   : > { %v246_v18 = vmul.f32 %v1006_v16, %v1004_v10 }
 0x224   : > { %951 = vmatmul.mubr.msk.f32.vlgmr.msra.gmra.mrb[0].mxu1 %vm158_vm1, %v246_v18 }
 0x225   : > { %954 = vmatpush3.xpose.msk.msra.mxu1 %vm158_vm1, %v327_v13  ;;  %955 = vmatprep.mubr.msk.f32.mxu1 %vm1028_vm0, %v1027_v0 }
 0x226   : > { %963 = vmatprep.subr.mxu1 %v1027_v0 }
 0x228   : > { %956 = vmatmul.mubr.msk.f32.vlgmr.msra.gmra.mrb[2].mxu1 %vm158_vm1, %v325_v19 }
 0x229   : > { %964 = vmatpush3.xpose.msk.msra.mxu1 %vm158_vm1, %v499_v15  ;;  %965 = vmatprep.mubr.msk.f32.mxu1 %vm1028_vm0, %v1027_v0 }
 0x22a   : > { %973 = vmatprep.subr.mxu1 %v1027_v0 }
 0x22c   : > { %966 = vmatmul.mubr.msk.f32.vlgmr.msra.gmra.mrb[4].mxu1 %vm158_vm1, %v497_v17 }
 0x22d   : > { %974 = vmatpush3.xpose.msk.msra.mxu1 %vm158_vm1, %v671_v20  ;;  %975 = vmatprep.mubr.msk.f32.mxu1 %vm1028_vm0, %v1027_v0 }
 0x230   : > { %976 = vmatmul.mubr.msk.f32.vlgmr.msra.gmra.mrb[6].mxu1 %vm158_vm1, %v669_v21 }
 0x2f7   : > { %v319_v22 = vpop.f32.mrb[0].mxu1 }
 0x2f8   : > { %323 = vst.msk [vmem:[%s1112_s24] sm:$0xff] %vm158_vm1, %v319_v22  ;;  %v952_v23 = vpop.f32.mrb[1].mxu1 }
 0x2fb   : > { %v398_v24 = vpop.f32.mrb[2].mxu1 }
 0x2fc   : > { %v402_v25 = vmul.f32 0.35355338, %v398_v24  ;;  %v957_v26 = vpop.f32.mrb[3].mxu1 }
 0x2fe   : > { %v403_v27 = vsel %vm158_vm1, %v402_v25, -inf }
 0x2ff   : > { %404 = vmax.xlane.f32.xlu1 %v403_v27  ;;  %v570_v28 = vpop.f32.mrb[4].mxu1 }
 0x300   : > { %v574_v29 = vmul.f32 0.35355338, %v570_v28  ;;  %v967_v30 = vpop.f32.mrb[5].mxu1 }
 0x302   : > { %v575_v31 = vsel %vm158_vm1, %v574_v29, -inf }
 0x303   : > { %576 = vmax.xlane.f32.xlu0 %v575_v31  ;;  %v742_v32 = vpop.f32.mrb[6].mxu1 }
 0x304   : > { %v746_v33 = vmul.f32 0.35355338, %v742_v32  ;;  %v977_v34 = vpop.f32.mrb[7].mxu1 }
 0x306   : > { %v747_v35 = vsel %vm158_vm1, %v746_v33, -inf }
 0x307   : > { %748 = vmax.xlane.f32.xlu1 %v747_v35 }
 0x318   : > { %414 = vrot.lane.b32.xlu1 %v1078_v1, %s1033_s25 }
 0x38c   : > { %v405_v36 = vpop.xlane.xlu1 %404 }
 0x38d   : > { %v406_v37 = vsub.f32 %v402_v25, %v405_v36 }
 0x38f   : > { %v407_v38 = vmul.f32 1.442695, %v406_v37 }
 0x390   : > { %v577_v39 = vpop.xlane.xlu0 %576 }
 0x391   : > { %1007 = vpow2.f32 %v407_v38  ;;  %v578_v40 = vsub.f32 %v574_v29, %v577_v39 }
 0x393   : > { %v579_v41 = vmul.f32 1.442695, %v578_v40 }
 0x394   : > { %v749_v42 = vpop.xlane.xlu1 %748 }
 0x395   : > { %1009 = vpow2.f32 %v579_v41  ;;  %v750_v43 = vsub.f32 %v746_v33, %v749_v42 }
 0x397   : > { %v751_v44 = vmul.f32 1.442695, %v750_v43 }
 0x398   : > { %v415_v45 = vpop.permute.xlu1 %414 }
 0x399   : > { %1011 = vpow2.f32 %v751_v44  ;;  %959 = vmatpush3.msra.mxu0 %v415_v45 }
 0x39a   : > { %968 = vmatprep.subr.mxu0 %v1027_v0 }
 0x39b   : > { %v1008_v46 = vpop.eup %1007 }
 0x39c   : > { %v409_v47 = vsel %vm158_vm1, %v1008_v46, 0.0 }
 0x39d   : > { %410 = vadd.xlane.f32.xlu0 %v409_v47 }
 0x39f   : > { %v1010_v48 = vpop.eup %1009 }
 0x3a0   : > { %v581_v49 = vsel %vm158_vm1, %v1010_v48, 0.0 }
 0x3a1   : > { %582 = vadd.xlane.f32.xlu1 %v581_v49 }
 0x3a3   : > { %v1012_v50 = vpop.eup %1011 }
 0x3a4   : > { %v753_v51 = vsel %vm158_vm1, %v1012_v50, 0.0 }
 0x3a5   : > { %754 = vadd.xlane.f32.xlu0 %v753_v51 }
 0x3b2   : > { %758 = vrot.lane.b32.xlu1 %v1078_v1, %s1034_s26 }
 0x3bb   : > { %586 = vrot.lane.b32.xlu0 %v1078_v1, %s1035_s27 }
 0x42a   : > { %v411_v52 = vpop.xlane.xlu0 %410 }
 0x42b   : > { %1013 = vrcp.f32 %v411_v52 }
 0x42e   : > { %v583_v53 = vpop.xlane.xlu1 %582 }
 0x42f   : > { %1015 = vrcp.f32 %v583_v53 }
 0x432   : > { %v755_v54 = vpop.xlane.xlu0 %754  ;;  %v759_v60 = vpop.permute.xlu1 %758 }
 0x433   : > { %1017 = vrcp.f32 %v755_v54 }
 0x435   : > { %v1014_v55 = vpop.eup %1013 }
 0x436   : > { %v413_v56 = vmul.f32 %v1014_v55, %v1008_v46  ;;  %v587_v57 = vpop.permute.xlu0 %586 }
 0x438   : > { %961 = vmatmul.mubr.msk.f32.vlgmr.msra.gmra.mrb[2].mxu0 %vm158_vm1, %v413_v56 }
 0x439   : > { %v1016_v58 = vpop.eup %1015  ;;  %969 = vmatpush3.msra.mxu0 %v587_v57  ;;  %970 = vmatprep.mubr.msk.f32.mxu0 %vm1028_vm0, %v1027_v0 }
 0x43a   : > { %v585_v59 = vmul.f32 %v1016_v58, %v1010_v48  ;;  %978 = vmatprep.subr.mxu0 %v1027_v0 }
 0x43c   : > { %971 = vmatmul.mubr.msk.f32.vlgmr.msra.gmra.mrb[4].mxu0 %vm158_vm1, %v585_v59 }
 0x43d   : > { %v1018_v61 = vpop.eup %1017  ;;  %979 = vmatpush3.msra.mxu0 %v759_v60  ;;  %980 = vmatprep.mubr.msk.f32.mxu0 %vm1028_vm0, %v1027_v0 }
 0x43e   : > { %v757_v62 = vmul.f32 %v1018_v61, %v1012_v50 }
 0x440   : > { %981 = vmatmul.mubr.msk.f32.vlgmr.msra.gmra.mrb[6].mxu0 %vm158_vm1, %v757_v62 }
 0x50b   : > { %v486_v63 = vpop.f32.mrb[2].mxu0 }
 0x50c   : > { %491 = vrot.lane.b32.xlu1 %v486_v63, %s1036_s28  ;;  %v962_v1 = vpop.f32.mrb[3].mxu0 }
 0x50f   : > { %v658_v2 = vpop.f32.mrb[4].mxu0 }
 0x510   : > { %663 = vrot.lane.b32.xlu0 %v658_v2, %s1037_s29  ;;  %v972_v3 = vpop.f32.mrb[5].mxu0 }
 0x513   : > { %v830_v4 = vpop.f32.mrb[6].mxu0 }
 0x514   : > { %835 = vrot.lane.b32.xlu1 %v830_v4, %s1038_s30  ;;  %v982_v5 = vpop.f32.mrb[7].mxu0 }
 0x57e   : > { %v492_v0 = vpop.permute.xlu1 %491 }
 0x57f   : > { %495 = vst.msk [vmem:[%s1112_s24] sm:$0xff] %vm494_vm2, %v492_v0 }
 0x582   : > { %v664_v6 = vpop.permute.xlu0 %663 }
 0x583   : > { %667 = vst.msk [vmem:[%s1112_s24] sm:$0xff] %vm666_vm3, %v664_v6 }
 0x586   : > { %v836_v7 = vpop.permute.xlu1 %835 }
 0x587   : > { %839 = vst.msk [vmem:[%s1112_s24] sm:$0xff] %vm838_vm4, %v836_v7 }
 0x588 PF: > { %s12_s9 = sadd.s32 1, %s1025_s9  }
 0x589   : > { %p9_p4 = scmp.ge.s32.totalorder %s12_s9, 4  }
 0x58b   :  { %11 = sbr.rel (!%p9_p4) target bundleno = 1 (0x1), region = 61 }

</bundles_post_ra>
